<compile_context>
chip_gen: v7x
topology: tpu7x:2x2x1
jax: 0.10.0
libtpu: 0.0.40
codegen_flags: <defaults>
</compile_context>

<pallas_src>
import functools

import jax
import jax.numpy as jnp
from jax.experimental import pallas as pl
from jax.experimental.pallas import tpu as pltpu


# --------------------------------- kernel ------------------------------------

def _concat_conv_kernel(t_ref, x_ref, w_ref, b_ref, o_ref, slab_ref, *,
                        ksize, padding):
    """B_TILE batch elems: padded [x | t] slab -> im2col -> one MXU matmul."""
    BT, Hp, Wp, Cin1 = slab_ref.shape
    H, W = x_ref.shape[1], x_ref.shape[2]
    Ho, Wo = Hp - ksize + 1, Wp - ksize + 1
    Cout_pad = w_ref.shape[1]
    p = padding
    M = BT * Ho * Wo

    t = t_ref[0, 0]                                        # scalar from SMEM

    # Clear the slab (only the halo matters, but a full clear is unmasked
    # stores and the slab is tiny).  Re-done every step so the kernel carries
    # no cross-iteration scratch state -> batch axis is safely "parallel".
    if p > 0:
        slab_ref[...] = jnp.zeros_like(slab_ref)

    # Interior: x channels first (write starts at lane 0), constant-t channel
    # last (weights were reordered in the wrapper to match).
    x = x_ref[...].astype(slab_ref.dtype)                  # (BT, H, W, C) bf16
    tt = jnp.full((BT, H, W, 1), t, slab_ref.dtype)
    slab_ref[:, p:p + H, p:p + W, :] = jnp.concatenate([x, tt], axis=-1)

    # im2col: one pass of tap reads (the only sublane-unaligned accesses), then
    # a single (M, k*k*Cin1) x (k*k*Cin1, Cout_pad) bf16 MXU matmul with f32
    # accumulation — one weight push / one result drain instead of nine.
    cols = []
    for k in range(ksize * ksize):
        ky, kx = divmod(k, ksize)
        a = slab_ref[:, ky:ky + Ho, kx:kx + Wo, :]         # (BT, Ho, Wo, Cin1)
        cols.append(a.reshape(M, Cin1))
    patches = jnp.concatenate(cols, axis=-1)               # (M, k*k*Cin1) bf16

    acc = jnp.dot(patches, w_ref[...],
                  preferred_element_type=jnp.float32)      # (M, Cout_pad) f32
    acc = acc + b_ref[...]                                 # lane-dense bias add
    o_ref[...] = acc.reshape(BT, Ho * Wo, Cout_pad).astype(o_ref.dtype)


# --------------------------------- wrapper -----------------------------------

def _pick_batch_tile(n, ho, wo):
    # Aim for ~2048 matmul rows per grid step, but keep >=2 grid steps so the
    # "parallel" batch axis can still shard across v7x's two TensorCores.
    bt = max(1, 2048 // max(ho * wo, 1))
    bt = min(bt, max(1, n // 2)) if n >= 2 else 1
    bt = min(bt, n)
    while bt > 1 and n % bt != 0:
        bt -= 1
    return max(bt, 1)


def concat_conv2d_forward(t, x_nchw, weight, bias, *, padding=0, stride=1,
                          dilation=1, groups=1, transpose=False):
    """ConcatConv2d.forward(t, x) with PyTorch NCHW / OIHW parameter layout."""
    assert stride == 1 and dilation == 1 and groups == 1 and not transpose, \
        "only the default Conv2d path (stride=1, dilation=1, groups=1) is implemented"
    N, C, H, W = x_nchw.shape
    Cout, Cin1, KH, KW = weight.shape
    assert Cin1 == C + 1 and KH == KW, "weight must be (dim_out, dim_in+1, k, k)"
    ksize = KH
    p = int(padding)
    Hp, Wp = H + 2 * p, W + 2 * p
    Ho, Wo = Hp - ksize + 1, Wp - ksize + 1
    assert Ho >= 1 and Wo >= 1

    BT = _pick_batch_tile(N, Ho, Wo)
    grid = (N // BT,)
    Cout_pad = 128 * pl.cdiv(Cout, 128)
    Kdim = ksize * ksize * Cin1

    # ---- glue: layout conversion & parameter packing (no math) ----
    # x: NCHW -> NHWC, DMA'd as bf16 (matches slab / MXU operand dtype, halves
    # the HBM->VMEM input bytes vs. the old f32 upcast).
    x_nhwc = jnp.transpose(x_nchw, (0, 2, 3, 1)).astype(jnp.bfloat16)
    # PyTorch concatenates [tt, x], so weight input-channel 0 is the t channel;
    # move it last to match the kernel's slab layout ([x..., t]).
    w_r = jnp.concatenate([weight[:, 1:], weight[:, :1]], axis=1)     # (Cout, Cin1, k, k)
    # (Cout, Cin1, ky, kx) -> (ky, kx, Cin1, Cout) -> (k*k*Cin1, Cout): rows in
    # the same (tap-major, channel-minor) order as the kernel's im2col columns.
    w_kkc = jnp.transpose(w_r, (2, 3, 1, 0)).reshape(Kdim, Cout)
    w_packed = jnp.zeros((Kdim, Cout_pad), jnp.bfloat16)
    w_packed = w_packed.at[:, :Cout].set(w_kkc.astype(jnp.bfloat16))  # bf16 MXU operand
    b_packed = jnp.zeros((1, Cout_pad), jnp.float32)
    b_packed = b_packed.at[:, :Cout].set(bias.astype(jnp.float32))
    t_arr = jnp.asarray(t, jnp.float32).reshape(1, 1)                 # scalar -> SMEM

    kernel = functools.partial(_concat_conv_kernel, ksize=ksize, padding=p)

    out = pl.pallas_call(
        kernel,
        out_shape=jax.ShapeDtypeStruct((N, Ho * Wo, Cout_pad), jnp.float32),
        grid=grid,
        in_specs=[
            pl.BlockSpec(memory_space=pltpu.MemorySpace.SMEM),           # t scalar
            pl.BlockSpec((BT, H, W, C), lambda b: (b, 0, 0, 0)),         # x (NHWC, bf16)
            pl.BlockSpec((Kdim, Cout_pad), lambda b: (0, 0)),            # packed weights
            pl.BlockSpec((1, Cout_pad), lambda b: (0, 0)),               # padded bias
        ],
        out_specs=pl.BlockSpec((BT, Ho * Wo, Cout_pad), lambda b: (b, 0, 0)),
        scratch_shapes=[pltpu.VMEM((BT, Hp, Wp, Cin1), jnp.bfloat16)],   # padded ttx slab
        compiler_params=pltpu.CompilerParams(
            dimension_semantics=("parallel",),        # batch blocks are independent
            vmem_limit_bytes=32 * 1024 * 1024),       # explicit budget (v5e default is 16 MiB)
    )(t_arr, x_nhwc, w_packed, b_packed)

    # layout plumbing back to PyTorch NCHW (and drop the Cout padding lanes)
    out = out[:, :, :Cout].reshape(N, Ho, Wo, Cout)
    return jnp.transpose(out, (0, 3, 1, 2))


# ----------------------------- pure-JAX reference -----------------------------

def concat_conv2d_reference(t, x, weight, bias, *, padding=0):
    N, C, H, W = x.shape
    tt = jnp.full((N, 1, H, W), t, x.dtype)
    ttx = jnp.concatenate([tt, x], axis=1)
    out = jax.lax.conv_general_dilated(
        ttx, weight, window_strides=(1, 1),
        padding=[(padding, padding), (padding, padding)],
        dimension_numbers=("NCHW", "OIHW", "NCHW"))
    return out + bias.reshape(1, -1, 1, 1)


# ----------------------------------- main -------------------------------------

if __name__ == "__main__":
    # standard nODE usage of ConcatConv2d: ksize=3, stride=1, padding=1
    N, C, H, W = 2, 4, 16, 16
    dim_out = 8
    pad = 1

    key = jax.random.PRNGKey(0)
    kx, kw, kb = jax.random.split(key, 3)
    x = jax.random.normal(kx, (N, C, H, W), jnp.float32)
    weight = 0.2 * jax.random.normal(kw, (dim_out, C + 1, 3, 3), jnp.float32)
    bias = 0.1 * jax.random.normal(kb, (dim_out,), jnp.float32)
    t = jnp.float32(0.5)

    out = concat_conv2d_forward(t, x, weight, bias, padding=pad)
    out = jax.block_until_ready(out)

    ref = jax.block_until_ready(
        concat_conv2d_reference(t, x, weight, bias, padding=pad))

    assert out.shape == (N, dim_out, H, W)
    max_err = float(jnp.max(jnp.abs(out - ref)))
    # bf16 MXU operands (f32 accumulation); tolerance accounts for the downcast
    assert max_err < 5e-2, f"mismatch vs reference: {max_err}"

    print("KERNEL_OK")
</pallas_src>

<mosaic_0001>
module attributes {stable_mosaic.version = 11 : i64} {
  func.func @_concat_conv_kernel(%arg0: i32, %arg1: memref<1x1xf32, #tpu.memory_space<smem>>, %arg2: memref<1x16x16x4xbf16, #tpu.memory_space<vmem>>, %arg3: memref<45x128xbf16, #tpu.memory_space<vmem>>, %arg4: memref<1x128xf32, #tpu.memory_space<vmem>>, %arg5: memref<1x256x128xf32, #tpu.memory_space<vmem>>, %arg6: memref<1x18x18x5xbf16, #tpu.memory_space<vmem>>) attributes {dimension_semantics = [#tpu.dimension_semantics<parallel>], iteration_bounds = array<i64: 2>, scalar_prefetch = 0 : i64, scratch_operands = 1 : i64, tpu.core_type = #tpu.core_type<tc>, window_params = [{transform_indices = @transform_0, window_bounds = array<i64: 1, 1>}, {transform_indices = @transform_1, window_bounds = array<i64: 1, 16, 16, 4>}, {pipeline_mode = #tpu.pipeline_mode<synchronous>, transform_indices = @transform_2, window_bounds = array<i64: 45, 128>}, {pipeline_mode = #tpu.pipeline_mode<synchronous>, transform_indices = @transform_3, window_bounds = array<i64: 1, 128>}, {transform_indices = @transform_4, window_bounds = array<i64: 1, 256, 128>}]} {
    %c0 = arith.constant 0 : index
    %c0_0 = arith.constant 0 : index
    %0 = memref.load %arg1[%c0, %c0_0] : memref<1x1xf32, #tpu.memory_space<smem>>
    %cst = arith.constant 0.000000e+00 : bf16
    %1 = vector.broadcast %cst : bf16 to vector<1x18x18x5xbf16>
    %c0_1 = arith.constant 0 : index
    %c0_2 = arith.constant 0 : index
    %c0_3 = arith.constant 0 : index
    %c0_4 = arith.constant 0 : index
    %2 = vector.load %arg6[%c0_1, %c0_2, %c0_3, %c0_4] : memref<1x18x18x5xbf16, #tpu.memory_space<vmem>>, vector<1x18x18x5xbf16>
    tpu.vector_store %arg6[%c0_1, %c0_2, %c0_3, %c0_4], %1 {strides = array<i32>} : memref<1x18x18x5xbf16, #tpu.memory_space<vmem>>, vector<1x18x18x5xbf16>,
    %c0_5 = arith.constant 0 : index
    %c0_6 = arith.constant 0 : index
    %c0_7 = arith.constant 0 : index
    %c0_8 = arith.constant 0 : index
    %3 = vector.load %arg2[%c0_5, %c0_6, %c0_7, %c0_8] : memref<1x16x16x4xbf16, #tpu.memory_space<vmem>>, vector<1x16x16x4xbf16>
    %4 = arith.truncf %0 : f32 to bf16
    %5 = vector.broadcast %4 : bf16 to vector<1x16x16x1xbf16>
    %6 = tpu.concatenate %3, %5 in 3 : vector<1x16x16x4xbf16>, vector<1x16x16x1xbf16> -> vector<1x16x16x5xbf16>
    %c0_9 = arith.constant 0 : index
    %c1 = arith.constant 1 : index
    %c1_10 = arith.constant 1 : index
    %c0_11 = arith.constant 0 : index
    %7 = vector.load %arg6[%c0_9, %c1, %c1_10, %c0_11] : memref<1x18x18x5xbf16, #tpu.memory_space<vmem>>, vector<1x16x16x5xbf16>
    tpu.vector_store %arg6[%c0_9, %c1, %c1_10, %c0_11], %6 {strides = array<i32>} : memref<1x18x18x5xbf16, #tpu.memory_space<vmem>>, vector<1x16x16x5xbf16>,
    %c0_12 = arith.constant 0 : index
    %c0_13 = arith.constant 0 : index
    %c0_14 = arith.constant 0 : index
    %c0_15 = arith.constant 0 : index
    %8 = vector.load %arg6[%c0_12, %c0_13, %c0_14, %c0_15] : memref<1x18x18x5xbf16, #tpu.memory_space<vmem>>, vector<1x16x16x5xbf16>
    %9 = vector.shape_cast %8 : vector<1x16x16x5xbf16> to vector<256x5xbf16>
    %c0_16 = arith.constant 0 : index
    %c0_17 = arith.constant 0 : index
    %c1_18 = arith.constant 1 : index
    %c0_19 = arith.constant 0 : index
    %10 = vector.load %arg6[%c0_16, %c0_17, %c1_18, %c0_19] : memref<1x18x18x5xbf16, #tpu.memory_space<vmem>>, vector<1x16x16x5xbf16>
    %11 = vector.shape_cast %10 : vector<1x16x16x5xbf16> to vector<256x5xbf16>
    %c0_20 = arith.constant 0 : index
    %c0_21 = arith.constant 0 : index
    %c2 = arith.constant 2 : index
    %c0_22 = arith.constant 0 : index
    %12 = vector.load %arg6[%c0_20, %c0_21, %c2, %c0_22] : memref<1x18x18x5xbf16, #tpu.memory_space<vmem>>, vector<1x16x16x5xbf16>
    %13 = vector.shape_cast %12 : vector<1x16x16x5xbf16> to vector<256x5xbf16>
    %c0_23 = arith.constant 0 : index
    %c1_24 = arith.constant 1 : index
    %c0_25 = arith.constant 0 : index
    %c0_26 = arith.constant 0 : index
    %14 = vector.load %arg6[%c0_23, %c1_24, %c0_25, %c0_26] : memref<1x18x18x5xbf16, #tpu.memory_space<vmem>>, vector<1x16x16x5xbf16>
    %15 = vector.shape_cast %14 : vector<1x16x16x5xbf16> to vector<256x5xbf16>
    %c0_27 = arith.constant 0 : index
    %c1_28 = arith.constant 1 : index
    %c1_29 = arith.constant 1 : index
    %c0_30 = arith.constant 0 : index
    %16 = vector.load %arg6[%c0_27, %c1_28, %c1_29, %c0_30] : memref<1x18x18x5xbf16, #tpu.memory_space<vmem>>, vector<1x16x16x5xbf16>
    %17 = vector.shape_cast %16 : vector<1x16x16x5xbf16> to vector<256x5xbf16>
    %c0_31 = arith.constant 0 : index
    %c1_32 = arith.constant 1 : index
    %c2_33 = arith.constant 2 : index
    %c0_34 = arith.constant 0 : index
    %18 = vector.load %arg6[%c0_31, %c1_32, %c2_33, %c0_34] : memref<1x18x18x5xbf16, #tpu.memory_space<vmem>>, vector<1x16x16x5xbf16>
    %19 = vector.shape_cast %18 : vector<1x16x16x5xbf16> to vector<256x5xbf16>
    %c0_35 = arith.constant 0 : index
    %c2_36 = arith.constant 2 : index
    %c0_37 = arith.constant 0 : index
    %c0_38 = arith.constant 0 : index
    %20 = vector.load %arg6[%c0_35, %c2_36, %c0_37, %c0_38] : memref<1x18x18x5xbf16, #tpu.memory_space<vmem>>, vector<1x16x16x5xbf16>
    %21 = vector.shape_cast %20 : vector<1x16x16x5xbf16> to vector<256x5xbf16>
    %c0_39 = arith.constant 0 : index
    %c2_40 = arith.constant 2 : index
    %c1_41 = arith.constant 1 : index
    %c0_42 = arith.constant 0 : index
    %22 = vector.load %arg6[%c0_39, %c2_40, %c1_41, %c0_42] : memref<1x18x18x5xbf16, #tpu.memory_space<vmem>>, vector<1x16x16x5xbf16>
    %23 = vector.shape_cast %22 : vector<1x16x16x5xbf16> to vector<256x5xbf16>
    %c0_43 = arith.constant 0 : index
    %c2_44 = arith.constant 2 : index
    %c2_45 = arith.constant 2 : index
    %c0_46 = arith.constant 0 : index
    %24 = vector.load %arg6[%c0_43, %c2_44, %c2_45, %c0_46] : memref<1x18x18x5xbf16, #tpu.memory_space<vmem>>, vector<1x16x16x5xbf16>
    %25 = vector.shape_cast %24 : vector<1x16x16x5xbf16> to vector<256x5xbf16>
    %26 = tpu.concatenate %9, %11, %13, %15, %17, %19, %21, %23, %25 in 1 : vector<256x5xbf16>, vector<256x5xbf16>, vector<256x5xbf16>, vector<256x5xbf16>, vector<256x5xbf16>, vector<256x5xbf16>, vector<256x5xbf16>, vector<256x5xbf16>, vector<256x5xbf16> -> vector<256x45xbf16>
    %c0_47 = arith.constant 0 : index
    %c0_48 = arith.constant 0 : index
    %27 = vector.load %arg3[%c0_47, %c0_48] : memref<45x128xbf16, #tpu.memory_space<vmem>>, vector<45x128xbf16>
    %cst_49 = arith.constant dense<0.000000e+00> : vector<256x128xf32>
    %28 = tpu.matmul %26, %27, %cst_49 {dimension_numbers = #tpu.dot_dimension_numbers<[1], [0], [0], [1], [0, 0, 1, 1], [], []>} : vector<256x45xbf16>, vector<45x128xbf16>, vector<256x128xf32> -> vector<256x128xf32>
    %c0_50 = arith.constant 0 : index
    %c0_51 = arith.constant 0 : index
    %29 = vector.load %arg4[%c0_50, %c0_51] : memref<1x128xf32, #tpu.memory_space<vmem>>, vector<1x128xf32>
    %30 = vector.broadcast %29 : vector<1x128xf32> to vector<256x128xf32>
    %31 = arith.addf %28, %30 : vector<256x128xf32>
    %32 = vector.shape_cast %31 : vector<256x128xf32> to vector<1x256x128xf32>
    %c0_52 = arith.constant 0 : index
    %c0_53 = arith.constant 0 : index
    %c0_54 = arith.constant 0 : index
    %33 = vector.load %arg5[%c0_52, %c0_53, %c0_54] : memref<1x256x128xf32, #tpu.memory_space<vmem>>, vector<1x256x128xf32>
    tpu.vector_store %arg5[%c0_52, %c0_53, %c0_54], %32 {strides = array<i32>} : memref<1x256x128xf32, #tpu.memory_space<vmem>>, vector<1x256x128xf32>,
    return
  }
  func.func @transform_0(%arg0: i32) -> (i32, i32) {
    %c0_i32 = arith.constant 0 : i32
    %c0_i32_0 = arith.constant 0 : i32
    %c0_i32_1 = arith.constant 0 : i32
    return %c0_i32, %c0_i32_0 : i32, i32
  }
  func.func @transform_1(%arg0: i32) -> (i32, i32, i32, i32) {
    %c0_i32 = arith.constant 0 : i32
    %c0_i32_0 = arith.constant 0 : i32
    %c0_i32_1 = arith.constant 0 : i32
    %c0_i32_2 = arith.constant 0 : i32
    return %arg0, %c0_i32, %c0_i32_0, %c0_i32_1 : i32, i32, i32, i32
  }
  func.func @transform_2(%arg0: i32) -> (i32, i32) {
    %c0_i32 = arith.constant 0 : i32
    %c0_i32_0 = arith.constant 0 : i32
    %c0_i32_1 = arith.constant 0 : i32
    return %c0_i32, %c0_i32_0 : i32, i32
  }
  func.func @transform_3(%arg0: i32) -> (i32, i32) {
    %c0_i32 = arith.constant 0 : i32
    %c0_i32_0 = arith.constant 0 : i32
    %c0_i32_1 = arith.constant 0 : i32
    return %c0_i32, %c0_i32_0 : i32, i32
  }
  func.func @transform_4(%arg0: i32) -> (i32, i32, i32) {
    %c0_i32 = arith.constant 0 : i32
    %c0_i32_0 = arith.constant 0 : i32
    %c0_i32_1 = arith.constant 0 : i32
    return %arg0, %c0_i32, %c0_i32_0 : i32, i32, i32
  }
}

</mosaic_0001>

<bundles_post_ra>
// kernel: tpu_custom_call.1
= control target key start
LH: loop header
LB: loop body
LE: loop exit
PB: predicated region body
PF: predicated region fallthrough
CT: control target
= control target key end

     0   :  { %s6849_s0 = inlined_call_operand.<no memory space> [shape: f32[1,1], index: 0, kind: input, shape index: {}]   ;;  %s6850_s1 = inlined_call_operand.vmem [shape: bf16[2,16,16,4], index: 1, kind: input, shape index: {}]   ;;  %s6851_s2 = inlined_call_operand.vmem [shape: bf16[45,128], index: 2, kind: input, shape index: {}]   ;;  %s6852_s3 = inlined_call_operand.vmem [shape: f32[1,128], index: 3, kind: input, shape index: {}]   ;;  %s6853_s4 = inlined_call_operand.hbm [shape: f32[2,256,128], index: 4, kind: output, shape index: {}]  }
   0x1   :  { %9 = sst [smem:[#allocation3]] %s6849_s0 }
   0x2   :  { %10 = vsyncpa [#allocation5], 0 }
   0x3   :  { %12 = vsyncpa [#allocation5 + $0x1], 0  ;;  %s4694_s17 = smov 0   ;;  %s4696_s18 = smov 0  }
   0x4   :  { %s4698_s19 = smov 0   ;;  %s4700_s20 = smov 0  }
   0x5 LB: > { %s4715_s0 = sadd.s32 4294967295, %s4651_s20   ;;  %s4120_s21 = sadd.s32 4294967294, %s4651_s20   ;;  %s4651_s20 = sphi %s4700_s20, %s6920_s20   ;;  %s4647_s19 = sphi %s4698_s19, %s6919_s19   ;;  %s4643_s18 = sphi %s4696_s18, %s6918_s18   ;;  %s4639_s17 = sphi %s4694_s17, %s6917_s17  }
   0x6   : > { %s4719_s22 = sadd.s32 1, %s4651_s20   ;;  %s114_s23 = sadd.s32 1, %s4647_s19 }
   0x7   : > { %s111_s24 = ssub.s32 %s4651_s20, %s4719_s22  ;;  %p124_p0 = scmp.ne.s32.totalorder %s4647_s19, %s4643_s18 }
   0x8   : > { %p112_p1 = scmp.eq.s32.totalorder %s111_s24, 0  ;;  %p125_p2 = scmp.eq.s32.totalorder %s4715_s0, 1 }
   0x9   : > { %p130_p3 = scmp.ne.s32.totalorder %s4643_s18, %s4639_s17  ;;  %p131_p4 = scmp.eq.s32.totalorder %s4120_s21, 1 }
   0xa   : > { %s4730_s25 = scalar_select %p112_p1, %s4647_s19, %s114_s23  }
   0xb   : > { %p4732_p5 = por %p125_p2, %p124_p0  ;;  %p4736_p6 = por %p131_p4, %p130_p3 }
   0xc   : > { %p4123_p7 = scmp.ge.s32.totalorder %s4651_s20, 1  ;;  %p166_p8 = scmp.lt.s32.totalorder %s4651_s20, 3 }
   0xe   : > { %p167_p9 = pnand %p4123_p7, %p166_p8 }
  0x10   : > { %170 = sbr.rel (%p167_p9) target bundleno = 790 (0x316), region = 36 }
  0x17   : > { %vm199_vm0 = vcmask 35840   ;;  %vm202_vm1 = vcmask 32768   ;;  %v4653_v0 = vmov 0   ;;  %p192_p10 = scmp.lt.s32.totalorder %s4715_s0, 1  ;;  %s4797_s28 = sld [smem:[#allocation3]]  ;;  %vm1433_vm2 = vcmask 1042432  }
  0x18   : > { %200 = vst.msk [vmem:[#allocation2] sm:$0xf] %vm199_vm0, %v4653_v0  ;;  %201 = vst.msk [vmem:[#allocation2 + $0x4] sm:$0xf] %vm199_vm0, %v4653_v0  ;;  %vm1434_vm3 = vcmask 1046532   ;;  %s4654_s13 = smov 10  }
  0x19   : > { %203 = vst.msk [vmem:[#allocation2 + $0x8] sm:$0x1] %vm202_vm1, %v4653_v0  ;;  %206 = vst.msk [vmem:[#allocation2 + $0x14] sm:$0x1] %vm202_vm1, %v4653_v0  ;;  %s193_s29 = scalar_select %p192_p10, %s4715_s0, 1  ;;  %vm380_vm8 = vcmask 31744  }
  0x1a   : > { %204 = vst.msk [vmem:[#allocation2 + $0xc] sm:$0xf] %vm199_vm0, %v4653_v0  ;;  %205 = vst.msk [vmem:[#allocation2 + $0x10] sm:$0xf] %vm199_vm0, %v4653_v0  ;;  %vm982_vm5 = vsmask.f32 3328 }
  0x1b   : > { %207 = vst.msk [vmem:[#allocation2 + $0x18] sm:$0xf] %vm199_vm0, %v4653_v0  ;;  %208 = vst.msk [vmem:[#allocation2 + $0x1c] sm:$0xf] %vm199_vm0, %v4653_v0  ;;  %s4392_s30 = sshll.u32 %s193_s29, 7  ;;  %s4655_s21 = smov 5  }
  0x1c   : > { %209 = vst.msk [vmem:[#allocation2 + $0x20] sm:$0x1] %vm202_vm1, %v4653_v0  ;;  %212 = vst.msk [vmem:[#allocation2 + $0x2c] sm:$0x1] %vm202_vm1, %v4653_v0  ;;  %s4803_s7 = scalar_lea.vmem %s6850_s1, %s4392_s30  ;;  %vm983_vm6 = vsmask.f32 7440 }
  0x1d   : > { %210 = vst.msk [vmem:[#allocation2 + $0x24] sm:$0xf] %vm199_vm0, %v4653_v0  ;;  %211 = vst.msk [vmem:[#allocation2 + $0x28] sm:$0xf] %vm199_vm0, %v4653_v0  ;;  %s289_s8 = sshrl.u32 %s4797_s28, 16  ;;  %p288_p11 = scmp.ne.f32.partialorder %s4797_s28, %s4797_s28  ;;  %v4508_v26 = vld [vmem:[%s4803_s7 + $0x40] sm:$0xff]  }
  0x1e   : > { %213 = vst.msk [vmem:[#allocation2 + $0x30] sm:$0xf] %vm199_vm0, %v4653_v0  ;;  %214 = vst.msk [vmem:[#allocation2 + $0x34] sm:$0xf] %vm199_vm0, %v4653_v0  ;;  %s290_s9 = sand.u32 1, %s289_s8  ;;  %v4510_v29 = vld [vmem:[%s4803_s7] sm:$0xff]  }
  0x1f   : > { %215 = vst.msk [vmem:[#allocation2 + $0x38] sm:$0x1] %vm202_vm1, %v4653_v0  ;;  %218 = vst.msk [vmem:[#allocation2 + $0x44] sm:$0x1] %vm202_vm1, %v4653_v0  ;;  %v935_v2 = vld [vmem:[#allocation2 + $0x4] sm:$0xf] }
  0x20   : > { %216 = vst.msk [vmem:[#allocation2 + $0x3c] sm:$0xf] %vm199_vm0, %v4653_v0  ;;  %217 = vst.msk [vmem:[#allocation2 + $0x40] sm:$0xf] %vm199_vm0, %v4653_v0  ;;  %v966_v3 = vld [vmem:[#allocation2 + $0x8] sm:$0x1] }
  0x21   : > { %219 = vst.msk [vmem:[#allocation2 + $0x48] sm:$0xf] %vm199_vm0, %v4653_v0  ;;  %220 = vst.msk [vmem:[#allocation2 + $0x4c] sm:$0xf] %vm199_vm0, %v4653_v0  ;;  %v1369_v4 = vld [vmem:[#allocation2] sm:$0xe] }
  0x22   : > { %221 = vst.msk [vmem:[#allocation2 + $0x50] sm:$0x1] %vm202_vm1, %v4653_v0  ;;  %224 = vst.msk [vmem:[#allocation2 + $0x5c] sm:$0x1] %vm202_vm1, %v4653_v0  ;;  %v1005_v5 = vshll.u32 %v966_v3, 16  ;;  %v4175_v6 = vrot.slane %v1369_v4, 9 }
  0x23   : > { %222 = vst.msk [vmem:[#allocation2 + $0x54] sm:$0xf] %vm199_vm0, %v4653_v0  ;;  %223 = vst.msk [vmem:[#allocation2 + $0x58] sm:$0xf] %vm199_vm0, %v4653_v0  ;;  %v1438_v7 = vrot.slane %v935_v2, 5  ;;  %v1441_v8 = vrot.slane %v966_v3, 5 }
  0x24   : > { %225 = vst.msk [vmem:[#allocation2 + $0x60] sm:$0xf] %vm199_vm0, %v4653_v0  ;;  %226 = vst.msk [vmem:[#allocation2 + $0x64] sm:$0xf] %vm199_vm0, %v4653_v0  ;;  %v934_v9 = vld [vmem:[#allocation2] sm:$0xf] }
  0x25   : > { %227 = vst.msk [vmem:[#allocation2 + $0x68] sm:$0x1] %vm202_vm1, %v4653_v0  ;;  %230 = vst.msk [vmem:[#allocation2 + $0x74] sm:$0x1] %vm202_vm1, %v4653_v0  ;;  %v986_v10 = vshrl.u32 %v934_v9, 16  ;;  %v989_v11 = vshll.u32 %v934_v9, 16 }
  0x26   : > { %228 = vst.msk [vmem:[#allocation2 + $0x6c] sm:$0xf] %vm199_vm0, %v4653_v0  ;;  %229 = vst.msk [vmem:[#allocation2 + $0x70] sm:$0xf] %vm199_vm0, %v4653_v0  ;;  %v995_v12 = vshll.u32 %v935_v2, 16  ;;  %v999_v13 = vshrl.u32 %v935_v2, 16 }
  0x27   : > { %231 = vst.msk [vmem:[#allocation2 + $0x78] sm:$0xf] %vm199_vm0, %v4653_v0  ;;  %232 = vst.msk [vmem:[#allocation2 + $0x7c] sm:$0xf] %vm199_vm0, %v4653_v0  ;;  %v1440_v15 = vrot.slane %v1438_v7, 4  ;;  %v988_v16 = vrot.slane %v986_v10, 4 }
  0x28   : > { %233 = vst.msk [vmem:[#allocation2 + $0x80] sm:$0x1] %vm202_vm1, %v4653_v0  ;;  %236 = vst.msk [vmem:[#allocation2 + $0x8c] sm:$0x1] %vm202_vm1, %v4653_v0  ;;  %v991_v17 = vrot.slane %v989_v11, 5  ;;  %v997_v18 = vrot.slane %v995_v12, 5 }
  0x29   : > { %234 = vst.msk [vmem:[#allocation2 + $0x84] sm:$0xf] %vm199_vm0, %v4653_v0  ;;  %235 = vst.msk [vmem:[#allocation2 + $0x88] sm:$0xf] %vm199_vm0, %v4653_v0  ;;  %v1001_v19 = vrot.slane %v999_v13, 4  ;;  %s291_s10 = sadd.s32 32767, %s290_s9 }
  0x2a   : > { %237 = vst.msk [vmem:[#allocation2 + $0x90] sm:$0xf] %vm199_vm0, %v4653_v0  ;;  %238 = vst.msk [vmem:[#allocation2 + $0x94] sm:$0xf] %vm199_vm0, %v4653_v0  ;;  %s292_s11 = sadd.s32 %s291_s10, %s4797_s28  ;;  %v992_v22 = vor.u32 %v991_v17, %v988_v16  ;;  %v1007_v24 = vrot.slane %v1005_v5, 5  ;;  %v4512_v30 = vld [vmem:[%s4803_s7 + $0x48] sm:$0xff]  }
  0x2b   : > { %239 = vst.msk [vmem:[#allocation2 + $0x98] sm:$0x1] %vm202_vm1, %v4653_v0  ;;  %242 = vst.msk [vmem:[#allocation2 + $0xa4] sm:$0x1] %vm202_vm1, %v4653_v0  ;;  %v1002_v23 = vor.u32 %v1001_v19, %v997_v18  ;;  %s293_s12 = sand.u32 4294901760, %s292_s11  ;;  %v4514_v31 = vld [vmem:[%s4803_s7 + $0x8] sm:$0xff]  }
  0x2c   : > { %240 = vst.msk [vmem:[#allocation2 + $0x9c] sm:$0xf] %vm199_vm0, %v4653_v0  ;;  %241 = vst.msk [vmem:[#allocation2 + $0xa0] sm:$0xf] %vm199_vm0, %v4653_v0  ;;  %s6922_s12 = smov (%p288_p11, %s293_s12), 2143289344  ;;  %v993_v27 = vrot.slane %v992_v22, 4 }
  0x2d   : > { %243 = vst.msk [vmem:[#allocation2 + $0xa8] sm:$0xf] %vm199_vm0, %v4653_v0  ;;  %244 = vst.msk [vmem:[#allocation2 + $0xac] sm:$0xf] %vm199_vm0, %v4653_v0  ;;  %v1003_v28 = vrot.slane %v1002_v23, 4  ;;  %s296_s14 = sshrl.u32 %s6922_s12, 16 }
  0x2e   : > { %245 = vst.msk [vmem:[#allocation2 + $0xb0] sm:$0x1] %vm202_vm1, %v4653_v0  ;;  %248 = vst.msk [vmem:[#allocation2 + $0xbc] sm:$0x1] %vm202_vm1, %v4653_v0  ;;  %s297_s15 = sshll.u32 %s296_s14, 16  ;;  %v6867_v57 = vmov 0 }
  0x2f   : > { %246 = vst.msk [vmem:[#allocation2 + $0xb4] sm:$0xf] %vm199_vm0, %v4653_v0  ;;  %247 = vst.msk [vmem:[#allocation2 + $0xb8] sm:$0xf] %vm199_vm0, %v4653_v0  ;;  %s298_s16 = sor.u32 %s297_s15, %s296_s14  ;;  %vm493_vm9 = vsmask.f32 256 }
  0x30   : > { %249 = vst.msk [vmem:[#allocation2 + $0xc0] sm:$0xf] %vm199_vm0, %v4653_v0  ;;  %250 = vst.msk [vmem:[#allocation2 + $0xc4] sm:$0xf] %vm199_vm0, %v4653_v0  ;;  %v4835_v35 = vstv %s298_s16  ;;  %vm494_vm10 = vsmask.f32 4368 }
  0x31   : > { %251 = vst.msk [vmem:[#allocation2 + $0xc8] sm:$0x1] %vm202_vm1, %v4653_v0  ;;  %254 = vst.msk [vmem:[#allocation2 + $0xd4] sm:$0x1] %vm202_vm1, %v4653_v0  ;;  %vm818_vm11 = vsmask.f32 7938  ;;  %v398_v36 = vsel %vm380_vm8, %v4508_v26, %v4835_v35  ;;  %v382_v37 = vsel %vm380_vm8, %v4510_v29, %v4835_v35  ;;  %v400_v38 = vsel %vm380_vm8, %v4512_v30, %v4835_v35 }
  0x32   : > { %252 = vst.msk [vmem:[#allocation2 + $0xcc] sm:$0xf] %vm199_vm0, %v4653_v0  ;;  %253 = vst.msk [vmem:[#allocation2 + $0xd0] sm:$0xf] %vm199_vm0, %v4653_v0  ;;  %v384_v39 = vsel %vm380_vm8, %v4514_v31, %v4835_v35  ;;  %v4159_v40 = vcombine.low %v398_v36, %v398_v36  ;;  %v4160_v41 = vcombine.high %v398_v36, %v398_v36  ;;  %v878_v52 = vld [vmem:[#allocation2 + $0x6c] sm:$0xf] }
  0x33   : > { %vm4805_vm4 = vmor %vm1433_vm2, %vm1434_vm3  ;;  %v4143_v42 = vcombine.low %v382_v37, %v382_v37  ;;  %v4144_v43 = vcombine.high %v382_v37, %v382_v37  ;;  %v4161_v44 = vcombine.low %v400_v38, %v400_v38  ;;  %v4162_v45 = vcombine.high %v400_v38, %v400_v38  ;;  %v820_v60 = vld [vmem:[#allocation2 + $0xc] sm:$0xf]  ;;  %v4518_v5 = vld [vmem:[%s4803_s7 + $0x50] sm:$0xff]   ;;  %s4656_s23 = smov 15   ;;  %s4657_s24 = smov 30  }
  0x34   : > { %v1439_v14 = vsel %vm4805_vm4, %v4175_v6, %v1438_v7  ;;  %v1442_v20 = vsel %vm4805_vm4, %v1440_v15, %v1441_v8  ;;  %vm4819_vm7 = vmor %vm982_vm5, %vm983_vm6  ;;  %v4145_v46 = vcombine.low %v384_v39, %v384_v39  ;;  %v4846_v47 = vcombine.high %v384_v39, %v384_v39  ;;  %v4520_v6 = vld [vmem:[%s4803_s7 + $0x10] sm:$0xff]   ;;  %v4522_v30 = vld [vmem:[%s4803_s7 + $0x38] sm:$0xff]   ;;  %s4658_s28 = smov 25   ;;  %s4659_s29 = smov 20  }
  0x35   : > { %v4255_v21 = vcombine.low %v1439_v14, %v1442_v20  ;;  %v998_v32 = vsel %vm4819_vm7, %v993_v27, %v997_v18  ;;  %v1008_v33 = vsel %vm4819_vm7, %v1003_v28, %v1007_v24  ;;  %v633_v48 = vshrl.u32 %v4159_v40, 16  ;;  %vm4850_vm12 = vmor %vm493_vm9, %vm494_vm10  ;;  %v885_v18 = vld [vmem:[#allocation2 + $0x78] sm:$0xf]  ;;  %s4660_s30 = smov 35   ;;  %s4661_s5 = smov 40  }
  0x36   : > { %v4239_v34 = vcombine.low %v998_v32, %v1008_v33  ;;  %v636_v49 = vshll.u32 %v4159_v40, 16  ;;  %v641_v50 = vshrl.u32 %v4160_v41, 16  ;;  %v644_v51 = vshll.u32 %v4160_v41, 16  ;;  %vm4858_vm13 = vmand %vm199_vm0, %vm818_vm11  ;;  %v829_v24 = vld [vmem:[#allocation2 + $0x18] sm:$0xf] }
  0x37   : > { %2957 = vrot.lane.b32.xlu0 %v4255_v21, %s4654_s13  ;;  %v497_v53 = vshrl.u32 %v4143_v42, 16  ;;  %v500_v54 = vshll.u32 %v4143_v42, 16  ;;  %v505_v55 = vshrl.u32 %v4144_v43, 16  ;;  %v508_v56 = vshll.u32 %v4144_v43, 16  ;;  %vm4974_vm14 = vmand %vm202_vm1, %vm493_vm9 }
  0x38   : > { %v6868_v57 = vsel %vm4850_vm12, 4294967295, %v6867_v57  ;;  %v635_v58 = vrot.slane %v633_v48, 7  ;;  %v4854_v59 = vrot.slane %v641_v50, 7  ;;  %v650_v61 = vshrl.u32 %v4161_v44, 16 }
  0x39   : > { %6869 = vst [vmem:[#allocation7_spill] sm:$0xff] %v6868_v57  ;;  %v653_v62 = vshll.u32 %v4161_v44, 16  ;;  %v6870_v63 = vmov 0  ;;  %v499_v0 = vrot.slane %v497_v53, 7  ;;  %v4862_v2 = vrot.slane %v505_v55, 7 }
  0x3a   : > { %v6871_v63 = vsel %vm4858_vm13, 4294967295, %v6870_v63  ;;  %v658_v3 = vshrl.u32 %v4162_v45, 16  ;;  %v661_v4 = vshll.u32 %v4162_v45, 16  ;;  %v638_v7 = vor.u32 %v636_v49, %v635_v58 }
  0x3b   : > { %2877 = vrot.lane.b32.xlu0 %v4239_v34, %s4655_s21  ;;  %6872 = vst [vmem:[#allocation8_spill] sm:$0xff] %v6871_v63  ;;  %v639_v8 = vrot.slane %v635_v58, 4  ;;  %v646_v9 = vor.u32 %v644_v51, %v4854_v59  ;;  %v648_v10 = vrot.slane %v4854_v59, 4  ;;  %v502_v11 = vor.u32 %v500_v54, %v499_v0 }
  0x3c   : > { %v503_v12 = vrot.slane %v499_v0, 4  ;;  %v510_v13 = vor.u32 %v508_v56, %v4862_v2  ;;  %v652_v14 = vrot.slane %v650_v61, 7  ;;  %v879_v16 = vsel %vm4858_vm13, %v638_v7, %v878_v52 }
  0x3d   : > { %v647_v15 = vsel %vm4850_vm12, %v639_v8, %v646_v9  ;;  %v4873_v17 = vrot.slane %v658_v3, 7  ;;  %v514_v19 = vshrl.u32 %v4145_v46, 16  ;;  %880 = vst [vmem:[#allocation2 + $0x6c] sm:$0xf] %v879_v16  ;;  %v821_v21 = vsel %vm4858_vm13, %v502_v11, %v820_v60 }
  0x3e   : > { %881 = vst.msk [vmem:[#allocation2 + $0x70] sm:$0xf] %vm199_vm0, %v647_v15  ;;  %v511_v20 = vsel %vm4850_vm12, %v503_v12, %v510_v13  ;;  %v655_v22 = vor.u32 %v653_v62, %v652_v14  ;;  %v656_v23 = vrot.slane %v652_v14, 4  ;;  %822 = vst [vmem:[#allocation2 + $0xc] sm:$0xf] %v821_v21  ;;  %v517_v28 = vshll.u32 %v4145_v46, 16 }
  0x3f   : > { %823 = vst.msk [vmem:[#allocation2 + $0x10] sm:$0xf] %vm199_vm0, %v511_v20  ;;  %v663_v26 = vor.u32 %v661_v4, %v4873_v17  ;;  %v516_v27 = vrot.slane %v514_v19, 7  ;;  %v522_v29 = vshrl.u32 %v4846_v47, 16  ;;  %v525_v32 = vshll.u32 %v4846_v47, 16 }
  0x40   : > { %v886_v31 = vsel %vm4858_vm13, %v655_v22, %v885_v18  ;;  %v402_v33 = vsel %vm380_vm8, %v4518_v5, %v4835_v35  ;;  %v386_v34 = vsel %vm380_vm8, %v4520_v6, %v4835_v35  ;;  %v4907_v46 = vsel %vm380_vm8, %v4522_v30, %v4835_v35  ;;  %v889_v22 = vld [vmem:[#allocation2 + $0x80] sm:$0x1] }
  0x41   : > { %v664_v36 = vsel %vm4850_vm12, %v656_v23, %v663_v26  ;;  %887 = vst [vmem:[#allocation2 + $0x78] sm:$0xf] %v886_v31  ;;  %v519_v37 = vor.u32 %v517_v28, %v516_v27  ;;  %v520_v38 = vrot.slane %v516_v27, 4  ;;  %v4893_v39 = vrot.slane %v522_v29, 7 }
  0x42   : > { %888 = vst.msk [vmem:[#allocation2 + $0x7c] sm:$0xf] %vm199_vm0, %v664_v36  ;;  %v4163_v40 = vcombine.low %v402_v33, %v402_v33  ;;  %v4896_v41 = vcombine.high %v402_v33, %v402_v33  ;;  %v4898_v42 = vcombine.low %v386_v34, %v386_v34  ;;  %v4900_v43 = vcombine.high %v386_v34, %v386_v34  ;;  %v892_v33 = vld [vmem:[#allocation2 + $0x84] sm:$0xf] }
  0x43   : > { %v527_v44 = vor.u32 %v525_v32, %v4893_v39  ;;  %v830_v45 = vsel %vm4858_vm13, %v519_v37, %v829_v24  ;;  %v512_v47 = vrot.slane %v4862_v2, 4  ;;  %v4920_v58 = vcombine.low %v4907_v46, %v4907_v46 }
  0x44   : > { %831 = vst [vmem:[#allocation2 + $0x18] sm:$0xf] %v830_v45  ;;  %v667_v48 = vshrl.u32 %v4163_v40, 16  ;;  %v670_v49 = vshll.u32 %v4163_v40, 16  ;;  %v675_v50 = vshrl.u32 %v4896_v41, 16  ;;  %v678_v51 = vshll.u32 %v4896_v41, 16 }
  0x45   : > { %v1564_v52 = vld [vmem:[#allocation2 + $0x6c] sm:$0xf]  ;;  %v4912_v53 = vld [vmem:[#allocation2 + $0x70] sm:$0xf]  ;;  %v528_v54 = vsel %vm4850_vm12, %v520_v38, %v527_v44  ;;  %v531_v55 = vshrl.u32 %v4898_v42, 16  ;;  %v534_v56 = vshll.u32 %v4898_v42, 16 }
  0x46   : > { %v1802_v61 = vshrl.u32 %v4912_v53, 16  ;;  %v4279_v62 = vcombine.low %v1564_v52, %v4912_v53  ;;  %v1789_v0 = vshrl.u32 %v1564_v52, 16  ;;  %v1548_v3 = vld [vmem:[#allocation2 + $0xc] sm:$0xf]  ;;  %832 = vst.msk [vmem:[#allocation2 + $0x1c] sm:$0xf] %vm199_vm0, %v528_v54 }
  0x47   : > { %v1792_v4 = vshll.u32 %v1564_v52, 16  ;;  %v4926_v5 = vld [vmem:[#allocation2 + $0x10] sm:$0xf]  ;;  %v1597_v6 = vshrl.u32 %v1548_v3, 16  ;;  %v1600_v7 = vshll.u32 %v1548_v3, 16  ;;  %v4928_v8 = vrot.slane %v667_v48, 7 }
  0x48   : > { %v4930_v9 = vrot.slane %v1802_v61, 4  ;;  %3069 = vrot.lane.b32.xlu1 %v4279_v62, %s4656_s23  ;;  %v1791_v11 = vrot.slane %v1789_v0, 4  ;;  %v4271_v13 = vcombine.low %v1548_v3, %v4926_v5  ;;  %v1566_v14 = vld [vmem:[#allocation2 + $0x78] sm:$0xf]  ;;  %v1378_v42 = vld [vmem:[#allocation2 + $0x6c] sm:$0xe] }
  0x49   : > { %v1794_v15 = vrot.slane %v1792_v4, 5  ;;  %v4935_v16 = vrot.slane %v1597_v6, 4  ;;  %v4937_v18 = vrot.slane %v1600_v7, 5  ;;  %v4939_v19 = vld [vmem:[#allocation2 + $0x7c] sm:$0xf]  ;;  %v1813_v20 = vshrl.u32 %v1566_v14, 16 }
  0x4a   : > { %3053 = vrot.lane.b32.xlu0 %v4271_v13, %s4656_s23  ;;  %v1816_v21 = vshll.u32 %v1566_v14, 16  ;;  %v4280_v23 = vcombine.low %v1566_v14, %v4939_v19  ;;  %v2173_v24 = vld [vmem:[#allocation2 + $0x78] sm:$0xf]  ;;  %v4944_v26 = vld [vmem:[#allocation2 + $0x7c] sm:$0xf]  ;;  %v672_v27 = vor.u32 %v670_v49, %v4928_v8  ;;  %v6873_v14 = vmov 0 }
  0x4b   : > { %v1795_v28 = vor.u32 %v1794_v15, %v1791_v11  ;;  %v4947_v29 = vrot.slane %v1813_v20, 4  ;;  %v1550_v30 = vld [vmem:[#allocation2 + $0x18] sm:$0xf]  ;;  %v2398_v31 = vshrl.u32 %v2173_v24, 16  ;;  %v2401_v32 = vshll.u32 %v2173_v24, 16 }
  0x4c   : > { %v4949_v34 = vrot.slane %v1816_v21, 5  ;;  %3071 = vrot.lane.b32.xlu1 %v4280_v23, %s4656_s23  ;;  %v1621_v36 = vshrl.u32 %v1550_v30, 16  ;;  %v1624_v37 = vshll.u32 %v1550_v30, 16  ;;  %v2157_v40 = vld [vmem:[#allocation2 + $0x18] sm:$0xf]  ;;  %v4327_v52 = vcombine.low %v2173_v24, %v4944_v26 }
  0x4d   : > { %v4953_v44 = vrot.slane %v1795_v28, 4  ;;  %v4955_v45 = vld [vmem:[#allocation2 + $0x1c] sm:$0xf]  ;;  %v4957_v48 = vrot.slane %v2398_v31, 4  ;;  %v4959_v49 = vrot.slane %v2401_v32, 5  ;;  %v2206_v4 = vshrl.u32 %v2157_v40, 16 }
  0x4e   : > { %v4962_v54 = vrot.slane %v1621_v36, 4  ;;  %v4964_v61 = vrot.slane %v1624_v37, 5  ;;  %v4272_v0 = vcombine.low %v1550_v30, %v4955_v45  ;;  %v4968_v3 = vld [vmem:[#allocation2 + $0x1c] sm:$0xf]  ;;  %v2209_v6 = vshll.u32 %v2157_v40, 16 }
  0x4f   : > { %v4319_v11 = vcombine.low %v2157_v40, %v4968_v3  ;;  %v836_v13 = vld [vmem:[#allocation2 + $0x24] sm:$0xf]  ;;  %v6874_v14 = vsel %vm4974_vm14, 4294967295, %v6873_v14  ;;  %v673_v15 = vrot.slane %v4928_v8, 4  ;;  %v4983_v20 = vrot.slane %v675_v50, 7 }
  0x50   : > { %6875 = vst [vmem:[#allocation9_spill] sm:$0xff] %v6874_v14  ;;  %3055 = vrot.lane.b32.xlu0 %v4272_v0, %s4656_s23  ;;  %3325 = vrot.lane.b32.xlu1 %v4327_v52, %s4657_s24  ;;  %v893_v21 = vsel %vm4858_vm13, %v672_v27, %v892_v33  ;;  %v533_v23 = vrot.slane %v531_v55, 7  ;;  %v826_v24 = vld [vmem:[#allocation2 + $0x14] sm:$0x1]  ;;  %v4989_v28 = vrot.slane %v2206_v4, 4  ;;  %v4991_v30 = vrot.slane %v2209_v6, 5 }
  0x51   : > { %894 = vst [vmem:[#allocation2 + $0x84] sm:$0xf] %v893_v21  ;;  %v539_v31 = vshrl.u32 %v4900_v43, 16  ;;  %v542_v8 = vshll.u32 %v4900_v43, 16  ;;  %v4995_v32 = vld [vmem:[#allocation2 + $0x10] sm:$0xf]  ;;  %v680_v27 = vor.u32 %v678_v51, %v4983_v20  ;;  %v4158_v36 = vcombine.high %v4907_v46, %v4907_v46 }
  0x52   : > { %v882_v50 = vld [vmem:[#allocation2 + $0x74] sm:$0x1]  ;;  %v536_v55 = vor.u32 %v534_v56, %v533_v23  ;;  %v537_v33 = vrot.slane %v533_v23, 4  ;;  %v1370_v37 = vld [vmem:[#allocation2 + $0xc] sm:$0xe]  ;;  %v616_v43 = vshrl.u32 %v4920_v58, 16  ;;  %v827_v41 = vsel %vm4974_vm14, %v512_v47, %v826_v24 }
  0x53   : > { %v5004_v40 = vld [vmem:[#allocation2 + $0x70] sm:$0xf]  ;;  %v5006_v52 = vrot.slane %v539_v31, 7  ;;  %v619_v0 = vshll.u32 %v4920_v58, 16  ;;  %v681_v46 = vsel %vm4850_vm12, %v673_v15, %v680_v27  ;;  %v624_v56 = vshrl.u32 %v4158_v36, 16 }
  0x54   : > { %3309 = vrot.lane.b32.xlu0 %v4319_v11, %s4657_s24  ;;  %v837_v51 = vsel %vm4858_vm13, %v536_v55, %v836_v13  ;;  %v627_v4 = vshll.u32 %v4158_v36, 16  ;;  %828 = vst [vmem:[#allocation2 + $0x14] sm:$0x1] %v827_v41  ;;  %895 = vst.msk [vmem:[#allocation2 + $0x88] sm:$0xf] %vm199_vm0, %v681_v46  ;;  %v618_v2 = vrot.slane %v616_v43, 7  ;;  %v883_v15 = vsel %vm4974_vm14, %v648_v10, %v882_v50 }
  0x55   : > { %v544_v58 = vor.u32 %v542_v8, %v5006_v52  ;;  %838 = vst [vmem:[#allocation2 + $0x24] sm:$0xf] %v837_v51  ;;  %v4176_v6 = vrot.slane %v1370_v37, 9  ;;  %v1445_v47 = vrot.slane %v4995_v32, 5  ;;  %v626_v21 = vrot.slane %v624_v56, 7 }
  0x56   : > { %v871_v11 = vld [vmem:[#allocation2 + $0x60] sm:$0xf]  ;;  %v4184_v13 = vrot.slane %v1378_v42, 9  ;;  %v1501_v23 = vrot.slane %v5004_v40, 5  ;;  %v621_v31 = vor.u32 %v619_v0, %v618_v2  ;;  %v622_v8 = vrot.slane %v618_v2, 4 }
  0x57   : > { %v545_v24 = vsel %vm4850_vm12, %v537_v33, %v544_v58  ;;  %v875_v27 = vld [vmem:[#allocation2 + $0x68] sm:$0x1]  ;;  %v5031_v55 = vsel %vm4805_vm4, %v4176_v6, %v1445_v47  ;;  %884 = vst [vmem:[#allocation2 + $0x74] sm:$0x1] %v883_v15  ;;  %v1980_v36 = vld [vmem:[#allocation2 + $0xc] sm:$0xe]  ;;  %v629_v59 = vor.u32 %v627_v4, %v626_v21 }
  0x58   : > { %v2175_v37 = vld [vmem:[#allocation2 + $0x84] sm:$0xf]  ;;  %839 = vst.msk [vmem:[#allocation2 + $0x28] sm:$0xf] %vm199_vm0, %v545_v24  ;;  %v631_v10 = vrot.slane %v626_v21, 4  ;;  %v1447_v50 = vrot.slane %v1445_v47, 4  ;;  %v5036_v43 = vsel %vm4805_vm4, %v4184_v13, %v1501_v23  ;;  %v872_v41 = vsel %vm4858_vm13, %v621_v31, %v871_v11 }
  0x59   : > { %v2422_v33 = vshrl.u32 %v2175_v37, 16  ;;  %v2425_v0 = vshll.u32 %v2175_v37, 16  ;;  %v1503_v42 = vrot.slane %v1501_v23, 4  ;;  %v630_v46 = vsel %vm4850_vm12, %v622_v8, %v629_v59  ;;  %873 = vst [vmem:[#allocation2 + $0x60] sm:$0xf] %v872_v41 }
  0x5a   : > { %v876_v51 = vsel %vm4974_vm14, %v631_v10, %v875_v27  ;;  %v4191_v56 = vrot.slane %v1980_v36, 9  ;;  %v2046_v4 = vrot.slane %v4926_v5, 5  ;;  %v1988_v58 = vld [vmem:[#allocation2 + $0x6c] sm:$0xe]  ;;  %874 = vst.msk [vmem:[#allocation2 + $0x64] sm:$0xf] %vm199_vm0, %v630_v46 }
  0x5b   : > { %v5045_v2 = vrot.slane %v2422_v33, 4  ;;  %v5047_v6 = vrot.slane %v2425_v0, 5  ;;  %877 = vst [vmem:[#allocation2 + $0x68] sm:$0x1] %v876_v51  ;;  %v5050_v47 = vld [vmem:[#allocation2 + $0x14] sm:$0x1] }
  0x5c   : > { %v5052_v21 = vld [vmem:[#allocation2 + $0x14] sm:$0x1]  ;;  %v5058_v13 = vld [vmem:[#allocation2 + $0x88] sm:$0xf]  ;;  %v2159_v23 = vld [vmem:[#allocation2 + $0x24] sm:$0xf]  ;;  %v5063_v31 = vsel %vm4805_vm4, %v4191_v56, %v2046_v4 }
  0x5d   : > { %v1448_v24 = vrot.slane %v5050_v47, 5  ;;  %v2048_v8 = vrot.slane %v2046_v4, 4  ;;  %v4328_v59 = vcombine.low %v2175_v37, %v5058_v13  ;;  %v2230_v10 = vshrl.u32 %v2159_v23, 16  ;;  %v1981_v7 = vld [vmem:[#allocation2 + $0x18] sm:$0xe] }
  0x5e   : > { %v2233_v33 = vshll.u32 %v2159_v23, 16  ;;  %v5071_v41 = vld [vmem:[#allocation2 + $0x74] sm:$0x1]  ;;  %v2049_v46 = vrot.slane %v5052_v21, 5  ;;  %v4199_v56 = vrot.slane %v1988_v58, 9  ;;  %v2102_v4 = vrot.slane %v4912_v53, 5 }
  0x5f   : > { %v1449_v0 = vsel %vm4805_vm4, %v1447_v50, %v1448_v24  ;;  %v5074_v51 = vld [vmem:[#allocation2 + $0x74] sm:$0x1]  ;;  %3327 = vrot.lane.b32.xlu1 %v4328_v59, %s4657_s24  ;;  %v5079_v36 = vld [vmem:[#allocation2 + $0x28] sm:$0xf]  ;;  %v5081_v37 = vrot.slane %v2230_v10, 4  ;;  %v1504_v24 = vrot.slane %v5071_v41, 5 }
  0x60   : > { %v5083_v38 = vrot.slane %v2233_v33, 5  ;;  %v4256_v50 = vcombine.low %v5031_v55, %v1449_v0  ;;  %v4320_v60 = vcombine.low %v2159_v23, %v5079_v36  ;;  %v2050_v58 = vsel %vm4805_vm4, %v2048_v8, %v2049_v46  ;;  %v833_v59 = vld [vmem:[#allocation2 + $0x20] sm:$0x1]  ;;  %v1377_v27 = vld [vmem:[#allocation2 + $0x60] sm:$0xe] }
  0x61   : > { %v5094_v10 = vsel %vm4805_vm4, %v1503_v42, %v1504_v24  ;;  %v4303_v55 = vcombine.low %v5063_v31, %v2050_v58  ;;  %v2105_v33 = vrot.slane %v5074_v51, 5  ;;  %v529_v0 = vrot.slane %v4893_v39, 4  ;;  %v1989_v23 = vld [vmem:[#allocation2 + $0x78] sm:$0xe]  ;;  %v951_v8 = vld [vmem:[#allocation2 + $0x64] sm:$0xf] }
  0x62   : > { %3311 = vrot.lane.b32.xlu0 %v4320_v60, %s4657_s24  ;;  %v974_v46 = vld [vmem:[#allocation2 + $0x68] sm:$0x1]  ;;  %v4183_v62 = vrot.slane %v1377_v27, 9  ;;  %v4264_v15 = vcombine.low %v5036_v43, %v5094_v10  ;;  %v5104_v42 = vsel %vm4805_vm4, %v4199_v56, %v2102_v4  ;;  %v2104_v24 = vrot.slane %v2102_v4, 4  ;;  %v950_v11 = vld [vmem:[#allocation2 + $0x60] sm:$0xf] }
  0x63   : > { %v1494_v31 = vrot.slane %v951_v8, 5  ;;  %v1497_v58 = vrot.slane %v974_v46, 5  ;;  %v834_v39 = vsel %vm4974_vm14, %v529_v0, %v833_v59  ;;  %v4192_v12 = vrot.slane %v1981_v7, 9 }
  0x64   : > { %v5110_v60 = vsel %vm4805_vm4, %v2104_v24, %v2105_v33  ;;  %835 = vst [vmem:[#allocation2 + $0x20] sm:$0x1] %v834_v39  ;;  %v2053_v27 = vrot.slane %v4955_v45, 5  ;;  %v665_v43 = vrot.slane %v4873_v17, 4  ;;  %v4200_v10 = vrot.slane %v1989_v23, 9 }
  0x65   : > { %v1495_v56 = vsel %vm4805_vm4, %v4183_v62, %v1494_v31  ;;  %v1496_v4 = vrot.slane %v1494_v31, 4  ;;  %v4311_v63 = vcombine.low %v5104_v42, %v5110_v60  ;;  %v2109_v7 = vrot.slane %v4939_v19, 5 }
  0x66   : > { %2959 = vrot.lane.b32.xlu0 %v4256_v50, %s4654_s13  ;;  %v2054_v59 = vsel %vm4805_vm4, %v4192_v12, %v2053_v27  ;;  %v2055_v33 = vrot.slane %v2053_v27, 4  ;;  %v890_v0 = vsel %vm4974_vm14, %v665_v43, %v889_v22  ;;  %v1178_v17 = vshrl.u32 %v950_v11, 16  ;;  %v936_v12 = vld [vmem:[#allocation2 + $0xc] sm:$0xf] }
  0x67   : > { %v1498_v23 = vsel %vm4805_vm4, %v1496_v4, %v1497_v58  ;;  %891 = vst [vmem:[#allocation2 + $0x80] sm:$0x1] %v890_v0  ;;  %v5128_v62 = vsel %vm4805_vm4, %v4200_v10, %v2109_v7  ;;  %v2111_v42 = vrot.slane %v2109_v7, 4  ;;  %v1181_v24 = vshll.u32 %v950_v11, 16 }
  0x68   : > { %v4263_v31 = vcombine.low %v1495_v56, %v1498_v23  ;;  %v1180_v50 = vrot.slane %v1178_v17, 4  ;;  %v1187_v39 = vshll.u32 %v951_v8, 16  ;;  %v1191_v60 = vshrl.u32 %v951_v8, 16 }
  0x69   : > { %v1183_v27 = vrot.slane %v1181_v24, 5  ;;  %v1197_v57 = vshll.u32 %v974_v46, 16  ;;  %v6876_v22 = vor.u32 %v4937_v18, %v4935_v16  ;;  %v1606_v58 = vshll.u32 %v4926_v5, 16 }
  0x6a   : > { %2973 = vrot.lane.b32.xlu1 %v4263_v31, %s4654_s13  ;;  %3213 = vrot.lane.b32.xlu0 %v4303_v55, %s4658_s28  ;;  %v1189_v10 = vrot.slane %v1187_v39, 5  ;;  %v1193_v11 = vrot.slane %v1191_v60, 4  ;;  %v6877_v56 = vshrl.u32 %v4926_v5, 16  ;;  %v1616_v8 = vshll.u32 %v5052_v21, 16 }
  0x6b   : > { %v1604_v43 = vrot.slane %v6876_v22, 4  ;;  %v1581_v7 = vld [vmem:[#allocation2 + $0x20] sm:$0x1]  ;;  %v1184_v46 = vor.u32 %v1183_v27, %v1180_v50  ;;  %v1199_v0 = vrot.slane %v1197_v57, 5  ;;  %v1608_v17 = vrot.slane %v1606_v58, 5 }
  0x6c   : > { %v1612_v4 = vrot.slane %v6877_v56, 4  ;;  %v1010_v16 = vshrl.u32 %v936_v12, 16  ;;  %v2056_v18 = vrot.slane %v1581_v7, 5  ;;  %v1194_v23 = vor.u32 %v1193_v11, %v1189_v10 }
  0x6d   : > { %v1618_v24 = vrot.slane %v1616_v8, 5  ;;  %v1013_v22 = vshll.u32 %v936_v12, 16  ;;  %v1185_v31 = vrot.slane %v1184_v46, 4  ;;  %v1609_v55 = vsel %vm4819_vm7, %v1604_v43, %v1608_v17 }
  0x6e   : > { %v1613_v39 = vor.u32 %v1612_v4, %v1608_v17  ;;  %v1012_v60 = vrot.slane %v1010_v16, 4  ;;  %2975 = vrot.lane.b32.xlu1 %v4264_v15, %s4654_s13  ;;  %v2057_v5 = vsel %vm4805_vm4, %v2055_v33, %v2056_v18  ;;  %v5144_v21 = vld [vmem:[#allocation2 + $0x80] sm:$0x1]  ;;  %v1195_v57 = vrot.slane %v1194_v23, 4 }
  0x6f   : > { %v1015_v50 = vrot.slane %v1013_v22, 5  ;;  %v1019_v27 = vshll.u32 %v4995_v32, 16  ;;  %v4304_v58 = vcombine.low %v2054_v59, %v2057_v5  ;;  %v2112_v12 = vrot.slane %v5144_v21, 5 }
  0x70   : > { %v1190_v11 = vsel %vm4819_vm7, %v1185_v31, %v1189_v10  ;;  %v1614_v43 = vrot.slane %v1613_v39, 4  ;;  %v1200_v56 = vsel %vm4819_vm7, %v1195_v57, %v1199_v0  ;;  %v1023_v33 = vshrl.u32 %v4995_v32, 16  ;;  %v952_v10 = vld [vmem:[#allocation2 + $0x6c] sm:$0xf] }
  0x71   : > { %v1016_v15 = vor.u32 %v1015_v50, %v1012_v60  ;;  %v1021_v4 = vrot.slane %v1019_v27, 5  ;;  %3215 = vrot.lane.b32.xlu0 %v4304_v58, %s4658_s28  ;;  %v2113_v8 = vsel %vm4805_vm4, %v2111_v42, %v2112_v12  ;;  %v4247_v46 = vcombine.low %v1190_v11, %v1200_v56 }
  0x72   : > { %v1619_v59 = vsel %vm4819_vm7, %v1614_v43, %v1618_v24  ;;  %v1029_v17 = vshll.u32 %v5050_v47, 16  ;;  %3229 = vrot.lane.b32.xlu1 %v4311_v63, %s4658_s28  ;;  %v4312_v0 = vcombine.low %v5128_v62, %v2113_v8  ;;  %v1025_v23 = vrot.slane %v1023_v33, 4  ;;  %v5176_v43 = vld [vmem:[#allocation2 + $0x20] sm:$0x1] }
  0x73   : > { %v4287_v16 = vcombine.low %v1609_v55, %v1619_v59  ;;  %v1017_v18 = vrot.slane %v1016_v15, 4  ;;  %v6878_v22 = vor.u32 %v4964_v61, %v4962_v54  ;;  %v1630_v42 = vshll.u32 %v4955_v45, 16 }
  0x74   : > { %v1031_v32 = vrot.slane %v1029_v17, 5  ;;  %v6879_v39 = vshrl.u32 %v4955_v45, 16  ;;  %v1026_v60 = vor.u32 %v1025_v23, %v1021_v4  ;;  %v1640_v63 = vshll.u32 %v1581_v7, 16 }
  0x75   : > { %v1628_v31 = vrot.slane %v6878_v22, 4  ;;  %v1022_v47 = vsel %vm4819_vm7, %v1017_v18, %v1021_v4  ;;  %v1202_v5 = vshrl.u32 %v952_v10, 16  ;;  %2893 = vrot.lane.b32.xlu0 %v4247_v46, %s4655_s21  ;;  %v1632_v62 = vrot.slane %v1630_v42, 5 }
  0x76   : > { %v1636_v24 = vrot.slane %v6879_v39, 4  ;;  %v1205_v55 = vshll.u32 %v952_v10, 16  ;;  %v1211_v57 = vshll.u32 %v5004_v40, 16  ;;  %v1215_v54 = vshrl.u32 %v5004_v40, 16  ;;  %3231 = vrot.lane.b32.xlu1 %v4312_v0, %s4658_s28 }
  0x77   : > { %v1027_v61 = vrot.slane %v1026_v60, 4  ;;  %v1642_v50 = vrot.slane %v1640_v63, 5  ;;  %v1204_v45 = vrot.slane %v1202_v5, 4  ;;  %v1221_v27 = vshll.u32 %v5071_v41, 16  ;;  %v840_v5 = vld [vmem:[#allocation2 + $0x2c] sm:$0x1] }
  0x78   : > { %v1633_v58 = vsel %vm4819_vm7, %v1628_v31, %v1632_v62  ;;  %v1637_v7 = vor.u32 %v1636_v24, %v1632_v62  ;;  %v1207_v12 = vrot.slane %v1205_v55, 5  ;;  %v1213_v11 = vrot.slane %v1211_v57, 5 }
  0x79   : > { %v1032_v56 = vsel %vm4819_vm7, %v1027_v61, %v1031_v32  ;;  %v1217_v15 = vrot.slane %v1215_v54, 4  ;;  %v1223_v40 = vrot.slane %v1221_v27, 5  ;;  %v6880_v4 = vor.u32 %v4991_v30, %v4989_v28  ;;  %3133 = vrot.lane.b32.xlu0 %v4287_v16, %s4659_s29 }
  0x7a   : > { %v4240_v41 = vcombine.low %v1022_v47, %v1032_v56  ;;  %v1638_v8 = vrot.slane %v1637_v7, 4  ;;  %v1208_v46 = vor.u32 %v1207_v12, %v1204_v45  ;;  %v2215_v59 = vshll.u32 %v4968_v3, 16  ;;  %v2589_v12 = vld [vmem:[#allocation2 + $0x18] sm:$0xe] }
  0x7b   : > { %v2213_v33 = vrot.slane %v6880_v4, 4  ;;  %v1218_v17 = vor.u32 %v1217_v15, %v1213_v11  ;;  %v6881_v10 = vshrl.u32 %v4968_v3, 16  ;;  %v2225_v18 = vshll.u32 %v5176_v43, 16 }
  0x7c   : > { %v6882_v23 = vshll.u32 %v4912_v53, 16  ;;  %2879 = vrot.lane.b32.xlu1 %v4240_v41, %s4655_s21  ;;  %v1643_v28 = vsel %vm4819_vm7, %v1638_v8, %v1642_v50  ;;  %v1209_v30 = vrot.slane %v1208_v46, 4  ;;  %v2217_v16 = vrot.slane %v2215_v59, 5  ;;  %v938_v59 = vld [vmem:[#allocation2 + $0x18] sm:$0xf] }
  0x7d   : > { %v2221_v0 = vrot.slane %v6881_v10, 4  ;;  %v1808_v22 = vshll.u32 %v5074_v51, 16  ;;  %v4288_v31 = vcombine.low %v1633_v58, %v1643_v28  ;;  %v1219_v42 = vrot.slane %v1218_v17, 4 }
  0x7e   : > { %v1800_v32 = vrot.slane %v6882_v23, 5  ;;  %v2227_v39 = vrot.slane %v2225_v18, 5  ;;  %v1214_v53 = vsel %vm4819_vm7, %v1209_v30, %v1213_v11  ;;  %v2218_v47 = vsel %vm4819_vm7, %v2213_v33, %v2217_v16  ;;  %v5241_v30 = vld [vmem:[#allocation2 + $0x1c] sm:$0xf] }
  0x7f   : > { %v2222_v60 = vor.u32 %v2221_v0, %v2217_v16  ;;  %3135 = vrot.lane.b32.xlu0 %v4288_v31, %s4659_s29  ;;  %v1224_v51 = vsel %vm4819_vm7, %v1219_v42, %v1223_v40  ;;  %v1810_v62 = vrot.slane %v1808_v22, 5  ;;  %v546_v55 = vrot.slane %v5006_v52, 4 }
  0x80   : > { %v1801_v24 = vsel %vm4819_vm7, %v4953_v44, %v1800_v32  ;;  %v1805_v63 = vor.u32 %v4930_v9, %v1800_v32  ;;  %v2236_v44 = vor.u32 %v5083_v38, %v5081_v37  ;;  %v4248_v57 = vcombine.low %v1214_v53, %v1224_v51 }
  0x81   : > { %v2223_v54 = vrot.slane %v2222_v60, 4  ;;  %v2239_v50 = vshll.u32 %v5079_v36, 16  ;;  %v841_v9 = vsel %vm4974_vm14, %v546_v55, %v840_v5  ;;  %v6883_v27 = vshrl.u32 %v5079_v36, 16 }
  0x82   : > { %v1806_v61 = vrot.slane %v1805_v63, 4  ;;  %v5211_v45 = vrot.slane %v2236_v44, 4  ;;  %v6884_v7 = vor.u32 %v4949_v34, %v4947_v29  ;;  %2895 = vrot.lane.b32.xlu1 %v4248_v57, %s4655_s21  ;;  %842 = vst [vmem:[#allocation2 + $0x2c] sm:$0x1] %v841_v9  ;;  %v1822_v56 = vshll.u32 %v4939_v19, 16 }
  0x83   : > { %v2245_v58 = vrot.slane %v6883_v27, 4  ;;  %v2228_v38 = vsel %vm4819_vm7, %v2223_v54, %v2227_v39  ;;  %v2241_v11 = vrot.slane %v2239_v50, 5  ;;  %v6885_v4 = vshrl.u32 %v4939_v19, 16  ;;  %v5233_v19 = vld [vmem:[#allocation2 + $0x80] sm:$0x1] }
  0x84   : > { %v1820_v52 = vrot.slane %v6884_v7, 4  ;;  %v1811_v37 = vsel %vm4819_vm7, %v1806_v61, %v1810_v62  ;;  %v4335_v15 = vcombine.low %v2218_v47, %v2228_v38  ;;  %v1832_v29 = vshll.u32 %v5144_v21, 16  ;;  %v5262_v44 = vld [vmem:[#allocation2 + $0x20] sm:$0x1]  ;;  %v896_v7 = vld [vmem:[#allocation2 + $0x8c] sm:$0x1] }
  0x85   : > { %v4295_v40 = vcombine.low %v1801_v24, %v1811_v37  ;;  %v1828_v33 = vrot.slane %v6885_v4, 4  ;;  %v2242_v34 = vsel %vm4819_vm7, %v5211_v45, %v2241_v11  ;;  %v2246_v41 = vor.u32 %v2245_v58, %v2241_v11  ;;  %v2590_v4 = vld [vmem:[#allocation2 + $0x24] sm:$0xe] }
  0x86   : > { %v1824_v8 = vrot.slane %v1822_v56, 5  ;;  %v4207_v46 = vrot.slane %v2589_v12, 9  ;;  %3389 = vrot.lane.b32.xlu0 %v4335_v15, %s4660_s30  ;;  %v1834_v17 = vrot.slane %v1832_v29, 5  ;;  %v2655_v10 = vrot.slane %v4968_v3, 5 }
  0x87   : > { %v2658_v0 = vrot.slane %v5176_v43, 5  ;;  %v2404_v21 = vor.u32 %v4959_v49, %v4957_v48  ;;  %3149 = vrot.lane.b32.xlu1 %v4295_v40, %s4659_s29  ;;  %v2247_v18 = vrot.slane %v2246_v41, 4  ;;  %v2407_v28 = vshll.u32 %v4944_v26, 16 }
  0x88   : > { %v1825_v23 = vsel %vm4819_vm7, %v1820_v52, %v1824_v8  ;;  %v1829_v32 = vor.u32 %v1828_v33, %v1824_v8  ;;  %v5245_v3 = vsel %vm4805_vm4, %v4207_v46, %v2655_v10  ;;  %v2657_v43 = vrot.slane %v2655_v10, 4 }
  0x89   : > { %v2405_v16 = vrot.slane %v2404_v21, 4  ;;  %v6886_v22 = vshrl.u32 %v4944_v26, 16  ;;  %v2409_v31 = vrot.slane %v2407_v28, 5  ;;  %v2417_v42 = vshll.u32 %v5233_v19, 16  ;;  %v5250_v24 = vld [vmem:[#allocation2 + $0x2c] sm:$0x1] }
  0x8a   : > { %v1830_v49 = vrot.slane %v1829_v32, 4  ;;  %v1034_v39 = vshrl.u32 %v938_v59, 16  ;;  %v2659_v53 = vsel %vm4805_vm4, %v2657_v43, %v2658_v0  ;;  %v1037_v47 = vshll.u32 %v938_v59, 16  ;;  %v5288_v43 = vld [vmem:[#allocation2 + $0x28] sm:$0xf] }
  0x8b   : > { %v2413_v48 = vrot.slane %v6886_v22, 4  ;;  %v1043_v60 = vshll.u32 %v5241_v30, 16  ;;  %v1047_v63 = vshrl.u32 %v5241_v30, 16  ;;  %v2249_v5 = vshll.u32 %v5250_v24, 16 }
  0x8c   : > { %v1835_v51 = vsel %vm4819_vm7, %v1830_v49, %v1834_v17  ;;  %v4351_v62 = vcombine.low %v5245_v3, %v2659_v53  ;;  %v2410_v55 = vsel %vm4819_vm7, %v2405_v16, %v2409_v31  ;;  %v2419_v61 = vrot.slane %v2417_v42, 5  ;;  %v954_v53 = vld [vmem:[#allocation2 + $0x78] sm:$0xf] }
  0x8d   : > { %v4296_v57 = vcombine.low %v1825_v23, %v1835_v51  ;;  %v2414_v54 = vor.u32 %v2413_v48, %v2409_v31  ;;  %v1036_v50 = vrot.slane %v1034_v39, 4  ;;  %v2251_v9 = vrot.slane %v2249_v5, 5 }
  0x8e   : > { %v1039_v45 = vrot.slane %v1037_v47, 5  ;;  %v1045_v27 = vrot.slane %v1043_v60, 5  ;;  %v1049_v58 = vrot.slane %v1047_v63, 4  ;;  %v1053_v12 = vshll.u32 %v5262_v44, 16  ;;  %v5298_v47 = vld [vmem:[#allocation2 + $0x2c] sm:$0x1] }
  0x8f   : > { %3151 = vrot.lane.b32.xlu1 %v4296_v57, %s4659_s29  ;;  %v2415_v52 = vrot.slane %v2414_v54, 4  ;;  %v682_v38 = vrot.slane %v4983_v20, 4  ;;  %v2428_v37 = vor.u32 %v5047_v6, %v5045_v2  ;;  %v2252_v11 = vsel %vm4819_vm7, %v2247_v18, %v2251_v9  ;;  %v2597_v20 = vld [vmem:[#allocation2 + $0x78] sm:$0xe]  ;;  %v940_v18 = vld [vmem:[#allocation2 + $0x24] sm:$0xf] }
  0x90   : > { %v1040_v56 = vor.u32 %v1039_v45, %v1036_v50  ;;  %v1050_v15 = vor.u32 %v1049_v58, %v1045_v27  ;;  %v2431_v40 = vshll.u32 %v5058_v13, 16  ;;  %v4336_v33 = vcombine.low %v2242_v34, %v2252_v11  ;;  %v5308_v57 = vld [vmem:[#allocation2 + $0x7c] sm:$0xf] }
  0x91   : > { %v2420_v29 = vsel %vm4819_vm7, %v2415_v52, %v2419_v61  ;;  %v1055_v41 = vrot.slane %v1053_v12, 5  ;;  %v897_v8 = vsel %vm4974_vm14, %v682_v38, %v896_v7  ;;  %v5276_v6 = vrot.slane %v2428_v37, 4  ;;  %v5318_v37 = vld [vmem:[#allocation2 + $0x80] sm:$0x1] }
  0x92   : > { %v4343_v46 = vcombine.low %v2410_v55, %v2420_v29  ;;  %v1041_v59 = vrot.slane %v1040_v56, 4  ;;  %v1051_v2 = vrot.slane %v1050_v15, 4  ;;  %898 = vst [vmem:[#allocation2 + $0x8c] sm:$0x1] %v897_v8  ;;  %3391 = vrot.lane.b32.xlu0 %v4336_v33, %s4660_s30  ;;  %v2433_v17 = vrot.slane %v2431_v40, 5 }
  0x93   : > { %v6887_v10 = vshrl.u32 %v5058_v13, 16  ;;  %v4208_v0 = vrot.slane %v2590_v4, 9  ;;  %v2662_v21 = vrot.slane %v5079_v36, 5  ;;  %v2665_v28 = vrot.slane %v5250_v24, 5  ;;  %v1371_v56 = vld [vmem:[#allocation2 + $0x18] sm:$0xe] }
  0x94   : > { %3405 = vrot.lane.b32.xlu1 %v4343_v46, %s4660_s30  ;;  %v1046_v23 = vsel %vm4819_vm7, %v1041_v59, %v1045_v27  ;;  %v1056_v32 = vsel %vm4819_vm7, %v1051_v2, %v1055_v41  ;;  %v4215_v3 = vrot.slane %v2597_v20, 9  ;;  %v2434_v22 = vsel %vm4819_vm7, %v5276_v6, %v2433_v17 }
  0x95   : > { %v2437_v34 = vrot.slane %v6887_v10, 4  ;;  %v4241_v16 = vcombine.low %v1046_v23, %v1056_v32  ;;  %v2663_v48 = vsel %vm4805_vm4, %v4208_v0, %v2662_v21  ;;  %v2664_v49 = vrot.slane %v2662_v21, 4 }
  0x96   : > { %v2711_v31 = vrot.slane %v4944_v26, 5  ;;  %v2714_v42 = vrot.slane %v5233_v19, 5  ;;  %v1058_v39 = vshrl.u32 %v940_v18, 16  ;;  %3469 = vrot.lane.b32.xlu0 %v4351_v62, %s4661_s5  ;;  %v1061_v60 = vshll.u32 %v940_v18, 16 }
  0x97   : > { %v2438_v36 = vor.u32 %v2437_v34, %v2433_v17  ;;  %v1067_v63 = vshll.u32 %v5288_v43, 16  ;;  %v1071_v5 = vshrl.u32 %v5288_v43, 16  ;;  %v2666_v51 = vsel %vm4805_vm4, %v2664_v49, %v2665_v28  ;;  %v2598_v17 = vld [vmem:[#allocation2 + $0x84] sm:$0xe] }
  0x98   : > { %v5306_v26 = vsel %vm4805_vm4, %v4215_v3, %v2711_v31  ;;  %v2713_v19 = vrot.slane %v2711_v31, 4  ;;  %v1060_v55 = vrot.slane %v1058_v39, 4  ;;  %v4352_v54 = vcombine.low %v2663_v48, %v2666_v51  ;;  %v1372_v3 = vld [vmem:[#allocation2 + $0x24] sm:$0xe] }
  0x99   : > { %v2439_v24 = vrot.slane %v2438_v36, 4  ;;  %v5310_v62 = vld [vmem:[#allocation2 + $0x8c] sm:$0x1]  ;;  %v1063_v61 = vrot.slane %v1061_v60, 5  ;;  %v1069_v50 = vrot.slane %v1067_v63, 5  ;;  %v1073_v9 = vrot.slane %v1071_v5, 4 }
  0x9a   : > { %v2441_v45 = vshll.u32 %v5310_v62, 16  ;;  %v2715_v27 = vsel %vm4805_vm4, %v2713_v19, %v2714_v42  ;;  %v1077_v58 = vshll.u32 %v5298_v47, 16  ;;  %v1226_v7 = vshrl.u32 %v954_v53, 16  ;;  %2881 = vrot.lane.b32.xlu0 %v4241_v16, %s4655_s21 }
  0x9b   : > { %v4359_v52 = vcombine.low %v5306_v26, %v2715_v27  ;;  %v1064_v12 = vor.u32 %v1063_v61, %v1060_v55  ;;  %v1074_v38 = vor.u32 %v1073_v9, %v1069_v50  ;;  %v1229_v11 = vshll.u32 %v954_v53, 16  ;;  %v956_v53 = vld [vmem:[#allocation2 + $0x84] sm:$0xf]  ;;  %v957_v26 = vld [vmem:[#allocation2 + $0x88] sm:$0xf] }
  0x9c   : > { %v2443_v15 = vrot.slane %v2441_v45, 5  ;;  %v1079_v40 = vrot.slane %v1077_v58, 5  ;;  %v1228_v4 = vrot.slane %v1226_v7, 4  ;;  %v1235_v33 = vshll.u32 %v5308_v57, 16 }
  0x9d   : > { %v1065_v29 = vrot.slane %v1064_v12, 4  ;;  %v1075_v41 = vrot.slane %v1074_v38, 4  ;;  %v1231_v8 = vrot.slane %v1229_v11, 5  ;;  %v1239_v20 = vshrl.u32 %v5308_v57, 16  ;;  %v5356_v12 = vld [vmem:[#allocation2 + $0x28] sm:$0xf] }
  0x9e   : > { %v2444_v46 = vsel %vm4819_vm7, %v2439_v24, %v2443_v15  ;;  %v1237_v59 = vrot.slane %v1235_v33, 5  ;;  %v1245_v2 = vshll.u32 %v5318_v37, 16  ;;  %v4177_v6 = vrot.slane %v1371_v56, 9  ;;  %3471 = vrot.lane.b32.xlu0 %v4352_v54, %s4661_s5 }
  0x9f   : > { %v4344_v10 = vcombine.low %v2434_v22, %v2444_v46  ;;  %v1070_v34 = vsel %vm4819_vm7, %v1065_v29, %v1069_v50  ;;  %v1080_v0 = vsel %vm4819_vm7, %v1075_v41, %v1079_v40  ;;  %v1232_v21 = vor.u32 %v1231_v8, %v1228_v4  ;;  %v1552_v50 = vld [vmem:[#allocation2 + $0x24] sm:$0xf]  ;;  %v1379_v40 = vld [vmem:[#allocation2 + $0x78] sm:$0xe] }
  0xa0   : > { %v4242_v18 = vcombine.low %v1070_v34, %v1080_v0  ;;  %v1241_v23 = vrot.slane %v1239_v20, 4  ;;  %v1247_v32 = vrot.slane %v1245_v2, 5  ;;  %v1452_v28 = vrot.slane %v5241_v30, 5  ;;  %v4524_v4 = vld [vmem:[%s4803_s7 + $0x18] sm:$0xff]  }
  0xa1   : > { %3407 = vrot.lane.b32.xlu1 %v4344_v10, %s4660_s30  ;;  %v1233_v16 = vrot.slane %v1232_v21, 4  ;;  %v1455_v22 = vrot.slane %v5262_v44, 5  ;;  %v4216_v36 = vrot.slane %v2598_v17, 9  ;;  %v2718_v48 = vrot.slane %v5058_v13, 5 }
  0xa2   : > { %v1242_v49 = vor.u32 %v1241_v23, %v1237_v59  ;;  %v1453_v31 = vsel %vm4805_vm4, %v4177_v6, %v1452_v28  ;;  %v1454_v42 = vrot.slane %v1452_v28, 4  ;;  %v2721_v39 = vrot.slane %v5310_v62, 5  ;;  %2883 = vrot.lane.b32.xlu0 %v4242_v18, %s4655_s21  ;;  %v5349_v62 = vld [vmem:[#allocation2 + $0x8c] sm:$0x1]  ;;  %v1380_v6 = vld [vmem:[#allocation2 + $0x84] sm:$0xe] }
  0xa3   : > { %v1238_v30 = vsel %vm4819_vm7, %v1233_v16, %v1237_v59  ;;  %v2719_v24 = vsel %vm4805_vm4, %v4216_v36, %v2718_v48  ;;  %v2720_v44 = vrot.slane %v2718_v48, 4  ;;  %v4178_v60 = vrot.slane %v1372_v3, 9 }
  0xa4   : > { %v1243_v63 = vrot.slane %v1242_v49, 4  ;;  %v1456_v13 = vsel %vm4805_vm4, %v1454_v42, %v1455_v22  ;;  %v1459_v5 = vrot.slane %v5288_v43, 5  ;;  %v1462_v51 = vrot.slane %v5298_v47, 5 }
  0xa5   : > { %3485 = vrot.lane.b32.xlu1 %v4359_v52, %s4661_s5  ;;  %v4257_v19 = vcombine.low %v1453_v31, %v1456_v13  ;;  %v2722_v55 = vsel %vm4805_vm4, %v2720_v44, %v2721_v39  ;;  %v1250_v54 = vshrl.u32 %v956_v53, 16  ;;  %v1253_v61 = vshll.u32 %v956_v53, 16 }
  0xa6   : > { %v1248_v9 = vsel %vm4819_vm7, %v1243_v63, %v1247_v32  ;;  %v4360_v45 = vcombine.low %v2719_v24, %v2722_v55  ;;  %v1460_v43 = vsel %vm4805_vm4, %v4178_v60, %v1459_v5  ;;  %v1461_v47 = vrot.slane %v1459_v5, 4  ;;  %v5382_v60 = vld [vmem:[#allocation2 + $0x2c] sm:$0x1] }
  0xa7   : > { %v4249_v27 = vcombine.low %v1238_v30, %v1248_v9  ;;  %2961 = vrot.lane.b32.xlu0 %v4257_v19, %s4654_s13  ;;  %v1252_v58 = vrot.slane %v1250_v54, 4  ;;  %v1255_v7 = vrot.slane %v1253_v61, 5  ;;  %v1259_v52 = vshll.u32 %v957_v26, 16  ;;  %v843_v19 = vld [vmem:[#allocation2 + $0x30] sm:$0xf] }
  0xa8   : > { %v1463_v38 = vsel %vm4805_vm4, %v1461_v47, %v1462_v51  ;;  %v1263_v11 = vshrl.u32 %v957_v26, 16  ;;  %v1269_v56 = vshll.u32 %v5349_v62, 16  ;;  %v1645_v15 = vshrl.u32 %v1552_v50, 16 }
  0xa9   : > { %2897 = vrot.lane.b32.xlu1 %v4249_v27, %s4655_s21  ;;  %v4258_v33 = vcombine.low %v1460_v43, %v1463_v38  ;;  %v1256_v29 = vor.u32 %v1255_v7, %v1252_v58  ;;  %v1261_v41 = vrot.slane %v1259_v52, 5  ;;  %v1648_v8 = vshll.u32 %v1552_v50, 16  ;;  %v4527_v27 = vld [vmem:[%s4803_s7 + $0x58] sm:$0xff]   ;;  %v5393_v38 = vld [vmem:[#allocation2 + $0x88] sm:$0xf] }
  0xaa   : > { %v1265_v20 = vrot.slane %v1263_v11, 4  ;;  %v1271_v46 = vrot.slane %v1269_v56, 5  ;;  %v1647_v59 = vrot.slane %v1645_v15, 4  ;;  %v1658_v2 = vshrl.u32 %v5356_v12, 16  ;;  %v6392_v15 = vld [vmem:[#allocation2 + $0x60] sm:$0xf] }
  0xab   : > { %2963 = vrot.lane.b32.xlu0 %v4258_v33, %s4654_s13  ;;  %v1257_v17 = vrot.slane %v1256_v29, 4  ;;  %v1650_v10 = vrot.slane %v1648_v8, 5  ;;  %v4273_v34 = vcombine.low %v1552_v50, %v5356_v12  ;;  %v4185_v0 = vrot.slane %v1379_v40, 9 }
  0xac   : > { %v1266_v21 = vor.u32 %v1265_v20, %v1261_v41  ;;  %v1508_v18 = vrot.slane %v5308_v57, 5  ;;  %v1511_v23 = vrot.slane %v5318_v37, 5  ;;  %v388_v32 = vsel %vm380_vm8, %v4524_v4, %v4835_v35  ;;  %v847_v20 = vld [vmem:[#allocation2 + $0x38] sm:$0x1] }
  0xad   : > { %3487 = vrot.lane.b32.xlu1 %v4360_v45, %s4661_s5  ;;  %v1262_v28 = vsel %vm4819_vm7, %v1257_v17, %v1261_v41  ;;  %v4149_v3 = vcombine.low %v388_v32, %v388_v32  ;;  %v4150_v16 = vcombine.high %v388_v32, %v388_v32  ;;  %v4186_v22 = vrot.slane %v1380_v6, 9 }
  0xae   : > { %v1267_v36 = vrot.slane %v1266_v21, 4  ;;  %v1509_v48 = vsel %vm4805_vm4, %v4185_v0, %v1508_v18  ;;  %v1510_v49 = vrot.slane %v1508_v18, 4  ;;  %v1515_v31 = vrot.slane %v957_v26, 5  ;;  %v5384_v26 = vld [vmem:[#allocation2 + $0x84] sm:$0xf] }
  0xaf   : > { %3057 = vrot.lane.b32.xlu0 %v4273_v34, %s4656_s23  ;;  %v548_v57 = vshrl.u32 %v4149_v3, 16  ;;  %v551_v37 = vshll.u32 %v4149_v3, 16  ;;  %v556_v42 = vshrl.u32 %v4150_v16, 16  ;;  %v559_v39 = vshll.u32 %v4150_v16, 16  ;;  %v5414_v3 = vpop.permute.xlu0 %2957 }
  0xb0   : > { %v1272_v53 = vsel %vm4819_vm7, %v1267_v36, %v1271_v46  ;;  %v1512_v30 = vsel %vm4805_vm4, %v1510_v49, %v1511_v23  ;;  %v1516_v24 = vsel %vm4805_vm4, %v4186_v22, %v1515_v31  ;;  %v1517_v44 = vrot.slane %v1515_v31, 4  ;;  %v1982_v46 = vld [vmem:[#allocation2 + $0x24] sm:$0xe]  ;;  %v5420_v49 = vld [vmem:[#allocation2 + $0x8c] sm:$0x1] }
  0xb1   : > { %v4250_v63 = vcombine.low %v1262_v28, %v1272_v53  ;;  %v4265_v13 = vcombine.low %v1509_v48, %v1512_v30  ;;  %v550_v5 = vrot.slane %v548_v57, 7  ;;  %v558_v51 = vrot.slane %v556_v42, 7  ;;  %v4541_v42 = vld [vmem:[%s6851_s2] sm:$0xff]  }
  0xb2   : > { %v1518_v55 = vrot.slane %v5349_v62, 5  ;;  %v1651_v54 = vor.u32 %v1650_v10, %v1647_v59  ;;  %v1654_v61 = vshll.u32 %v5356_v12, 16  ;;  %v1660_v50 = vrot.slane %v1658_v2, 4  ;;  %4413 = vmatprep.subr.bf16.mxu0 %v4541_v42  ;;  %4451 = vmatprep.subr.bf16.mxu1 %v4541_v42 }
  0xb3   : > { %2899 = vrot.lane.b32.xlu1 %v4250_v63, %s4655_s21  ;;  %v553_v9 = vor.u32 %v551_v37, %v550_v5  ;;  %v554_v45 = vrot.slane %v550_v5, 4  ;;  %v561_v43 = vor.u32 %v559_v39, %v558_v51  ;;  %v1664_v47 = vshll.u32 %v5382_v60, 16  ;;  %4414 = vmatpush3.bf16.msra.mxu0 %v4541_v42 }
  0xb4   : > { %v1519_v58 = vsel %vm4805_vm4, %v1517_v44, %v1518_v55  ;;  %v1652_v7 = vrot.slane %v1651_v54, 4  ;;  %v1656_v52 = vrot.slane %v1654_v61, 5  ;;  %v1837_v62 = vshrl.u32 %v5384_v26, 16  ;;  %v4530_v44 = vld [vmem:[%s4803_s7 + $0x20] sm:$0xff]   ;;  %4454 = vmatpush3.bf16.msra.mxu1 %v4541_v42 }
  0xb5   : > { %v562_v56 = vsel %vm4850_vm12, %v554_v45, %v561_v43  ;;  %v844_v40 = vsel %vm4858_vm13, %v553_v9, %v843_v19  ;;  %v4266_v4 = vcombine.low %v1516_v24, %v1519_v58  ;;  %v1666_v41 = vrot.slane %v1664_v47, 5 }
  0xb6   : > { %845 = vst [vmem:[#allocation2 + $0x30] sm:$0xf] %v844_v40  ;;  %846 = vst.msk [vmem:[#allocation2 + $0x34] sm:$0xf] %vm199_vm0, %v562_v56  ;;  %v1657_v33 = vsel %vm4819_vm7, %v1652_v7, %v1656_v52  ;;  %v1661_v29 = vor.u32 %v1660_v50, %v1656_v52  ;;  %v1840_v8 = vshll.u32 %v5384_v26, 16  ;;  %v5405_v59 = vrot.slane %v1837_v62, 4 }
  0xb7   : > { %2977 = vrot.lane.b32.xlu1 %v4265_v13, %s4654_s13  ;;  %v1850_v2 = vshrl.u32 %v5393_v38, 16  ;;  %v563_v6 = vrot.slane %v558_v51, 4  ;;  %v404_v17 = vsel %vm380_vm8, %v4527_v27, %v4835_v35  ;;  %v4193_v23 = vrot.slane %v1982_v46, 9  ;;  %v899_v50 = vld [vmem:[#allocation2 + $0x90] sm:$0xf]  ;;  %v5442_v27 = vpop.permute.xlu0 %2877  ;;  %v4543_v40 = vld [vmem:[%s6851_s2 + $0x8] sm:$0xff]  }
  0xb8   : > { %v1662_v10 = vrot.slane %v1661_v29, 4  ;;  %v1842_v34 = vrot.slane %v1840_v8, 5  ;;  %v4165_v0 = vcombine.low %v404_v17, %v404_v17  ;;  %v4166_v21 = vcombine.high %v404_v17, %v404_v17  ;;  %4415 = vmatprep.subr.bf16.mxu0 %v4543_v40  ;;  %4452 = vmatprep.subr.bf16.mxu1 %v4543_v40 }
  0xb9   : > { %v848_v18 = vsel %vm4974_vm14, %v563_v6, %v847_v20  ;;  %v2060_v32 = vrot.slane %v5356_v12, 5  ;;  %v2063_v28 = vrot.slane %v5382_v60, 5  ;;  %v4281_v22 = vcombine.low %v5384_v26, %v5393_v38  ;;  %4416 = vmatpush3.bf16.msra.mxu0 %v4543_v40  ;;  %4455 = vmatpush3.bf16.msra.mxu1 %v4543_v40 }
  0xba   : > { %v1667_v16 = vsel %vm4819_vm7, %v1662_v10, %v1666_v41  ;;  %849 = vst [vmem:[#allocation2 + $0x38] sm:$0x1] %v848_v18  ;;  %v684_v36 = vshrl.u32 %v4165_v0, 16  ;;  %v692_v48 = vshrl.u32 %v4166_v21, 16  ;;  %v687_v12 = vshll.u32 %v4165_v0, 16 }
  0xbb   : > { %2979 = vrot.lane.b32.xlu1 %v4266_v4, %s4654_s13  ;;  %v4289_v31 = vcombine.low %v1657_v33, %v1667_v16  ;;  %v695_v57 = vshll.u32 %v4166_v21, 16  ;;  %v2062_v37 = vrot.slane %v2060_v32, 4  ;;  %v5430_v30 = vsel %vm4805_vm4, %v4193_v23, %v2060_v32 }
  0xbc   : > { %v686_v39 = vrot.slane %v684_v36, 7  ;;  %v5426_v53 = vrot.slane %v692_v48, 7  ;;  %v1846_v24 = vshll.u32 %v5393_v38, 16  ;;  %v1843_v5 = vor.u32 %v1842_v34, %v5405_v59 }
  0xbd   : > { %v1554_v60 = vld [vmem:[#allocation2 + $0x30] sm:$0xf]  ;;  %v1555_v63 = vld [vmem:[#allocation2 + $0x34] sm:$0xf]  ;;  %v5436_v13 = vsel %vm4805_vm4, %v2062_v37, %v2063_v28  ;;  %v1852_v51 = vrot.slane %v1850_v2, 4  ;;  %v1856_v26 = vshll.u32 %v5420_v49, 16  ;;  %v5447_v56 = vsel %vm380_vm8, %v4530_v44, %v4835_v35 }
  0xbe   : > { %v1669_v19 = vshrl.u32 %v1554_v60, 16  ;;  %v1672_v55 = vshll.u32 %v1554_v60, 16  ;;  %v1682_v54 = vshrl.u32 %v1555_v63, 16  ;;  %v4274_v61 = vcombine.low %v1554_v60, %v1555_v63  ;;  %v1983_v62 = vld [vmem:[#allocation2 + $0x30] sm:$0xe] }
  0xbf   : > { %3073 = vrot.lane.b32.xlu1 %v4281_v22, %s4656_s23  ;;  %v1678_v9 = vshll.u32 %v1555_v63, 16  ;;  %v689_v45 = vor.u32 %v687_v12, %v686_v39  ;;  %v690_v43 = vrot.slane %v686_v39, 4  ;;  %v697_v47 = vor.u32 %v695_v57, %v5426_v53  ;;  %v5457_v0 = vld [vmem:[#allocation2 + $0x30] sm:$0xf]  ;;  %v903_v28 = vld [vmem:[#allocation2 + $0x98] sm:$0x1]  ;;  %v5469_v57 = vpop.permute.xlu0 %3053 }
  0xc0   : > { %v1671_v58 = vrot.slane %v1669_v19, 4  ;;  %v1674_v7 = vrot.slane %v1672_v55, 5  ;;  %3059 = vrot.lane.b32.xlu0 %v4274_v61, %s4656_s23  ;;  %v1684_v52 = vrot.slane %v1682_v54, 4  ;;  %v1844_v8 = vrot.slane %v1843_v5, 4  ;;  %v5467_v12 = vld [vmem:[#allocation2 + $0x34] sm:$0xf]  ;;  %v5488_v55 = vpop.permute.xlu1 %3069 }
  0xc1   : > { %v1583_v4 = vld [vmem:[#allocation2 + $0x38] sm:$0x1]  ;;  %v1680_v33 = vrot.slane %v1678_v9, 5  ;;  %v698_v29 = vsel %vm4850_vm12, %v690_v43, %v697_v47  ;;  %v900_v41 = vsel %vm4858_vm13, %v689_v45, %v899_v50  ;;  %v1848_v59 = vrot.slane %v1846_v24, 5  ;;  %v1990_v24 = vld [vmem:[#allocation2 + $0x84] sm:$0xe] }
  0xc2   : > { %v1675_v20 = vor.u32 %v1674_v7, %v1671_v58  ;;  %v1688_v46 = vshll.u32 %v1583_v4, 16  ;;  %901 = vst [vmem:[#allocation2 + $0x90] sm:$0xf] %v900_v41  ;;  %902 = vst.msk [vmem:[#allocation2 + $0x94] sm:$0xf] %vm199_vm0, %v698_v29  ;;  %v1858_v2 = vrot.slane %v1856_v26, 5  ;;  %v4305_v60 = vcombine.low %v5430_v30, %v5436_v13 }
  0xc3   : > { %v1685_v6 = vor.u32 %v1684_v52, %v1680_v33  ;;  %v4194_v17 = vrot.slane %v1983_v62, 9  ;;  %v2067_v10 = vrot.slane %v1555_v63, 5  ;;  %v2070_v34 = vrot.slane %v1583_v4, 5  ;;  %v5498_v4 = vpop.permute.xlu0 %3055 }
  0xc4   : > { %3137 = vrot.lane.b32.xlu0 %v4289_v31, %s4659_s29  ;;  %v1676_v21 = vrot.slane %v1675_v20, 4  ;;  %v1690_v18 = vrot.slane %v1688_v46, 5  ;;  %v1849_v23 = vsel %vm4819_vm7, %v1844_v8, %v1848_v59  ;;  %v1853_v32 = vor.u32 %v1852_v51, %v1848_v59 }
  0xc5   : > { %v1686_v16 = vrot.slane %v1685_v6, 4  ;;  %v5464_v22 = vsel %vm4805_vm4, %v4194_v17, %v2067_v10  ;;  %v2069_v36 = vrot.slane %v2067_v10, 4  ;;  %v699_v48 = vrot.slane %v5426_v53, 4 }
  0xc6   : > { %v1681_v31 = vsel %vm4819_vm7, %v1676_v21, %v1680_v33  ;;  %v1854_v37 = vrot.slane %v1853_v32, 4  ;;  %v2254_v42 = vshrl.u32 %v5457_v0, 16  ;;  %v2257_v39 = vshll.u32 %v5457_v0, 16 }
  0xc7   : > { %v1691_v44 = vsel %vm4819_vm7, %v1686_v16, %v1690_v18  ;;  %v2071_v53 = vsel %vm4805_vm4, %v2069_v36, %v2070_v34  ;;  %v904_v63 = vsel %vm4974_vm14, %v699_v48, %v903_v28  ;;  %v2267_v19 = vshrl.u32 %v5467_v12, 16  ;;  %v5506_v34 = vpop.permute.xlu1 %3071  ;;  %v850_v36 = vld [vmem:[#allocation2 + $0x3c] sm:$0xf] }
  0xc8   : > { %v4290_v5 = vcombine.low %v1681_v31, %v1691_v44  ;;  %v1859_v51 = vsel %vm4819_vm7, %v1854_v37, %v1858_v2  ;;  %905 = vst [vmem:[#allocation2 + $0x98] sm:$0x1] %v904_v63  ;;  %v5485_v26 = vrot.slane %v2254_v42, 4  ;;  %v4306_v13 = vcombine.low %v5464_v22, %v2071_v53  ;;  %v5520_v63 = vld [vmem:[#allocation2 + $0x38] sm:$0x1] }
  0xc9   : > { %v1570_v54 = vld [vmem:[#allocation2 + $0x90] sm:$0xf]  ;;  %v1571_v61 = vld [vmem:[#allocation2 + $0x94] sm:$0xf]  ;;  %v4297_v30 = vcombine.low %v1849_v23, %v1859_v51  ;;  %v5491_v50 = vrot.slane %v2257_v39, 5  ;;  %v4201_v9 = vrot.slane %v1990_v24, 9  ;;  %v4151_v40 = vcombine.low %v5447_v56, %v5447_v56  ;;  %v5515_v39 = vpop.permute.xlu0 %3309 }
  0xca   : > { %3139 = vrot.lane.b32.xlu0 %v4290_v5, %s4659_s29  ;;  %v1861_v45 = vshrl.u32 %v1570_v54, 16  ;;  %v1864_v43 = vshll.u32 %v1570_v54, 16  ;;  %v1874_v47 = vshrl.u32 %v1571_v61, 16  ;;  %v4282_v58 = vcombine.low %v1570_v54, %v1571_v61  ;;  %v1991_v20 = vld [vmem:[#allocation2 + $0x90] sm:$0xe] }
  0xcb   : > { %v1870_v7 = vshll.u32 %v1571_v61, 16  ;;  %v2116_v52 = vrot.slane %v5393_v38, 5  ;;  %v2119_v62 = vrot.slane %v5420_v49, 5  ;;  %v4152_v8 = vcombine.high %v5447_v56, %v5447_v56 }
  0xcc   : > { %v1863_v33 = vrot.slane %v1861_v45, 4  ;;  %v1866_v29 = vrot.slane %v1864_v43, 5  ;;  %3075 = vrot.lane.b32.xlu1 %v4282_v58, %s4656_s23  ;;  %v1876_v41 = vrot.slane %v1874_v47, 4  ;;  %v4321_v38 = vcombine.low %v5457_v0, %v5467_v12  ;;  %v5539_v47 = vpop.permute.xlu1 %3325 }
  0xcd   : > { %v1872_v46 = vrot.slane %v1870_v7, 5  ;;  %v2118_v59 = vrot.slane %v2116_v52, 4  ;;  %v565_v49 = vshrl.u32 %v4151_v40, 16  ;;  %v568_v6 = vshll.u32 %v4151_v40, 16 }
  0xce   : > { %3217 = vrot.lane.b32.xlu0 %v4305_v60, %s4658_s28  ;;  %v1867_v2 = vor.u32 %v1866_v29, %v1863_v33  ;;  %v573_v17 = vshrl.u32 %v4152_v8, 16  ;;  %v576_v10 = vshll.u32 %v4152_v8, 16  ;;  %v5510_v56 = vsel %vm4805_vm4, %v4201_v9, %v2116_v52  ;;  %v5545_v52 = vld [vmem:[#allocation2 + $0x94] sm:$0xf]  ;;  %v854_v29 = vld [vmem:[#allocation2 + $0x44] sm:$0x1] }
  0xcf   : > { %v1591_v21 = vld [vmem:[#allocation2 + $0x98] sm:$0x1]  ;;  %v1877_v18 = vor.u32 %v1876_v41, %v1872_v46  ;;  %v567_v23 = vrot.slane %v565_v49, 7  ;;  %v4202_v32 = vrot.slane %v1991_v20, 9  ;;  %v2120_v16 = vsel %vm4805_vm4, %v2118_v59, %v2119_v62  ;;  %v4533_v62 = vld [vmem:[%s4803_s7 + $0x60] sm:$0xff]  }
  0xd0   : > { %3153 = vrot.lane.b32.xlu1 %v4297_v30, %s4659_s29  ;;  %v1868_v0 = vrot.slane %v1867_v2, 4  ;;  %v1880_v28 = vshll.u32 %v1591_v21, 16  ;;  %v575_v22 = vrot.slane %v573_v17, 7  ;;  %v2123_v42 = vrot.slane %v1571_v61, 5  ;;  %v5530_v30 = vld [vmem:[#allocation2 + $0x90] sm:$0xf] }
  0xd1   : > { %v1878_v48 = vrot.slane %v1877_v18, 4  ;;  %v570_v31 = vor.u32 %v568_v6, %v567_v23  ;;  %v571_v37 = vrot.slane %v567_v23, 4  ;;  %v2126_v53 = vrot.slane %v1591_v21, 5  ;;  %v2591_v17 = vld [vmem:[#allocation2 + $0x30] sm:$0xe] }
  0xd2   : > { %3219 = vrot.lane.b32.xlu0 %v4306_v13, %s4658_s28  ;;  %v1873_v24 = vsel %vm4819_vm7, %v1868_v0, %v1872_v46  ;;  %v1882_v44 = vrot.slane %v1880_v28, 5  ;;  %v578_v60 = vor.u32 %v576_v10, %v575_v22  ;;  %v5526_v51 = vsel %vm4805_vm4, %v4202_v32, %v2123_v42  ;;  %v5565_v28 = vld [vmem:[#allocation2 + $0x4] sm:$0xf] }
  0xd3   : > { %v851_v5 = vsel %vm4858_vm13, %v570_v31, %v850_v36  ;;  %v2125_v54 = vrot.slane %v2123_v42, 4  ;;  %v2260_v61 = vor.u32 %v5491_v50, %v5485_v26  ;;  %v2263_v45 = vshll.u32 %v5467_v12, 16  ;;  %v5571_v36 = vpop.permute.xlu1 %3327 }
  0xd4   : > { %v1883_v13 = vsel %vm4819_vm7, %v1878_v48, %v1882_v44  ;;  %v579_v9 = vsel %vm4850_vm12, %v571_v37, %v578_v60  ;;  %852 = vst [vmem:[#allocation2 + $0x3c] sm:$0xf] %v851_v5  ;;  %v2269_v43 = vrot.slane %v2267_v19, 4  ;;  %v2273_v7 = vshll.u32 %v5520_v63, 16  ;;  %v5554_v59 = vpop.permute.xlu0 %3311 }
  0xd5   : > { %v4298_v58 = vcombine.low %v1873_v24, %v1883_v13  ;;  %853 = vst.msk [vmem:[#allocation2 + $0x40] sm:$0xf] %vm199_vm0, %v579_v9  ;;  %v2127_v26 = vsel %vm4805_vm4, %v2125_v54, %v2126_v53  ;;  %v2261_v50 = vrot.slane %v2260_v61, 4  ;;  %v2265_v40 = vrot.slane %v2263_v45, 5 }
  0xd6   : > { %3313 = vrot.lane.b32.xlu0 %v4321_v38, %s4657_s24  ;;  %v2446_v33 = vshrl.u32 %v5530_v30, 16  ;;  %v2449_v19 = vshll.u32 %v5530_v30, 16  ;;  %v4313_v41 = vcombine.low %v5510_v56, %v2120_v16  ;;  %v4314_v8 = vcombine.low %v5526_v51, %v2127_v26  ;;  %v5567_v16 = vld [vmem:[#allocation2] sm:$0xf] }
  0xd7   : > { %3155 = vrot.lane.b32.xlu1 %v4298_v58, %s4659_s29  ;;  %v2275_v20 = vrot.slane %v2273_v7, 5  ;;  %v580_v46 = vrot.slane %v575_v22, 4  ;;  %v2270_v49 = vor.u32 %v2269_v43, %v2265_v40  ;;  %v2459_v38 = vshrl.u32 %v5545_v52, 16 }
  0xd8   : > { %v2448_v2 = vrot.slane %v2446_v33, 4  ;;  %v2451_v6 = vrot.slane %v2449_v19, 5  ;;  %v2266_v10 = vsel %vm4819_vm7, %v2261_v50, %v2265_v40  ;;  %v4329_v21 = vcombine.low %v5530_v30, %v5545_v52  ;;  %v5576_v44 = vpop.permute.xlu0 %2959 }
  0xd9   : > { %v855_v18 = vsel %vm4974_vm14, %v580_v46, %v854_v29  ;;  %v406_v56 = vsel %vm380_vm8, %v4533_v62, %v4835_v35  ;;  %v2271_v23 = vrot.slane %v2270_v49, 4  ;;  %v4223_v22 = vcombine.low %v5567_v16, %v5565_v28  ;;  %v906_v62 = vld [vmem:[#allocation2 + $0x9c] sm:$0xf] }
  0xda   : > { %856 = vst [vmem:[#allocation2 + $0x44] sm:$0x1] %v855_v18  ;;  %v4167_v32 = vcombine.low %v406_v56, %v406_v56  ;;  %v4168_v0 = vcombine.high %v406_v56, %v406_v56  ;;  %vm3501_vm15 = vcmask 39936   ;;  %v4209_v31 = vrot.slane %v2591_v17, 9  ;;  %v5600_v56 = vld [vmem:[#allocation2 + $0x98] sm:$0x1] }
  0xdb   : > { %3233 = vrot.lane.b32.xlu1 %v4313_v41, %s4658_s28  ;;  %v2163_v48 = vld [vmem:[#allocation2 + $0x3c] sm:$0xf]  ;;  %v2669_v37 = vrot.slane %v5467_v12, 5  ;;  %v2672_v42 = vrot.slane %v5520_v63, 5  ;;  %v2452_v24 = vor.u32 %v2451_v6, %v2448_v2  ;;  %v2276_v51 = vsel %vm4819_vm7, %v2271_v23, %v2275_v20 }
  0xdc   : > { %v5578_v60 = vld [vmem:[#allocation2 + $0x40] sm:$0xf]  ;;  %v2278_v53 = vshrl.u32 %v2163_v48, 16  ;;  %v2281_v5 = vshll.u32 %v2163_v48, 16  ;;  %v701_v54 = vshrl.u32 %v4167_v32, 16  ;;  %v4337_v13 = vcombine.low %v2266_v10, %v2276_v51  ;;  %v5591_v41 = vpop.permute.xlu1 %2973  ;;  %v5595_v6 = vpop.permute.xlu0 %3213 }
  0xdd   : > { %v2291_v61 = vshrl.u32 %v5578_v60, 16  ;;  %v4322_v30 = vcombine.low %v2163_v48, %v5578_v60  ;;  %v2287_v12 = vshll.u32 %v5578_v60, 16  ;;  %v704_v43 = vshll.u32 %v4167_v32, 16 }
  0xde   : > { %v2280_v9 = vrot.slane %v2278_v53, 4  ;;  %v2283_v63 = vrot.slane %v2281_v5, 5  ;;  %v703_v45 = vrot.slane %v701_v54, 7  ;;  %v709_v50 = vshrl.u32 %v4168_v0, 16  ;;  %v942_v5 = vld [vmem:[#allocation2 + $0x30] sm:$0xf] }
  0xdf   : > { %3315 = vrot.lane.b32.xlu0 %v4322_v30, %s4657_s24  ;;  %3235 = vrot.lane.b32.xlu1 %v4314_v8, %s4658_s28  ;;  %v2289_v58 = vrot.slane %v2287_v12, 5  ;;  %v2293_v26 = vrot.slane %v2291_v61, 4  ;;  %v712_v7 = vshll.u32 %v4168_v0, 16  ;;  %v5589_v29 = vsel %vm4805_vm4, %v4209_v31, %v2669_v37  ;;  %v5614_v54 = vld [vmem:[#allocation2 + $0x34] sm:$0xf] }
  0xe0   : > { %v2284_v40 = vor.u32 %v2283_v63, %v2280_v9  ;;  %v706_v33 = vor.u32 %v704_v43, %v703_v45  ;;  %v707_v19 = vrot.slane %v703_v45, 4  ;;  %v711_v49 = vrot.slane %v709_v50, 7  ;;  %v2592_v12 = vld [vmem:[#allocation2 + $0x3c] sm:$0xe]  ;;  %v5629_v9 = vpop.permute.xlu1 %2975  ;;  %v910_v50 = vld [vmem:[#allocation2 + $0xa4] sm:$0x1] }
  0xe1   : > { %v5593_v20 = vld [vmem:[#allocation2 + $0x44] sm:$0x1]  ;;  %v2294_v46 = vor.u32 %v2293_v26, %v2289_v58  ;;  %v2671_v2 = vrot.slane %v2669_v37, 4  ;;  %v2453_v8 = vrot.slane %v2452_v24, 4  ;;  %v2455_v23 = vshll.u32 %v5545_v52, 16 }
  0xe2   : > { %v2285_v17 = vrot.slane %v2284_v40, 4  ;;  %v2297_v10 = vshll.u32 %v5593_v20, 16  ;;  %v907_v18 = vsel %vm4858_vm13, %v706_v33, %v906_v62  ;;  %v714_v0 = vor.u32 %v712_v7, %v711_v49 }
  0xe3   : > { %3393 = vrot.lane.b32.xlu0 %v4337_v13, %s4660_s30  ;;  %3329 = vrot.lane.b32.xlu1 %v4329_v21, %s4657_s24  ;;  %v2295_v32 = vrot.slane %v2294_v46, 4  ;;  %908 = vst [vmem:[#allocation2 + $0x9c] sm:$0xf] %v907_v18  ;;  %v2673_v48 = vsel %vm4805_vm4, %v2671_v2, %v2672_v42  ;;  %v2461_v31 = vrot.slane %v2459_v38, 4  ;;  %v2457_v53 = vrot.slane %v2455_v23, 5  ;;  %v5633_v26 = vpop.permute.xlu0 %3215 }
  0xe4   : > { %v2290_v37 = vsel %vm4819_vm7, %v2285_v17, %v2289_v58  ;;  %v2299_v24 = vrot.slane %v2297_v10, 5  ;;  %v715_v51 = vsel %vm4850_vm12, %v707_v19, %v714_v0  ;;  %v2465_v21 = vshll.u32 %v5600_v56, 16  ;;  %v5627_v13 = vld [vmem:[#allocation2 + $0x38] sm:$0x1]  ;;  %v2599_v19 = vld [vmem:[#allocation2 + $0x90] sm:$0xe] }
  0xe5   : > { %909 = vst.msk [vmem:[#allocation2 + $0xa0] sm:$0xf] %vm199_vm0, %v715_v51  ;;  %v5624_v38 = vsel %vm3501_vm15, %v4223_v22, %v5442_v27  ;;  %v4353_v42 = vcombine.low %v5589_v29, %v2673_v48  ;;  %v2462_v30 = vor.u32 %v2461_v31, %v2457_v53  ;;  %v2458_v45 = vsel %vm4819_vm7, %v2453_v8, %v2457_v53 }
  0xe6   : > { %v2300_v61 = vsel %vm4819_vm7, %v2295_v32, %v2299_v24  ;;  %v2467_v43 = vrot.slane %v2465_v21, 5  ;;  %v1082_v58 = vshrl.u32 %v942_v5, 16  ;;  %v1085_v16 = vshll.u32 %v942_v5, 16 }
  0xe7   : > { %v4338_v63 = vcombine.low %v2290_v37, %v2300_v61  ;;  %v2463_v28 = vrot.slane %v2462_v30, 4  ;;  %v1091_v27 = vshll.u32 %v5614_v54, 16  ;;  %v1095_v22 = vshrl.u32 %v5614_v54, 16  ;;  %v5644_v37 = vpop.permute.xlu1 %3229  ;;  %v5650_v61 = vpop.permute.xlu0 %2893 }
  0xe8   : > { %v1084_v7 = vrot.slane %v1082_v58, 4  ;;  %v1101_v62 = vshll.u32 %v5627_v13, 16  ;;  %v716_v40 = vrot.slane %v711_v49, 4  ;;  %v4210_v33 = vrot.slane %v2592_v12, 9 }
  0xe9   : > { %3395 = vrot.lane.b32.xlu0 %v4338_v63, %s4660_s30  ;;  %v2468_v46 = vsel %vm4819_vm7, %v2463_v28, %v2467_v43  ;;  %v1087_v2 = vrot.slane %v1085_v16, 5  ;;  %v1093_v8 = vrot.slane %v1091_v27, 5  ;;  %v1097_v17 = vrot.slane %v1095_v22, 4  ;;  %v944_v22 = vld [vmem:[#allocation2 + $0x3c] sm:$0xf] }
  0xea   : > { %v2179_v29 = vld [vmem:[#allocation2 + $0x9c] sm:$0xf]  ;;  %v4345_v23 = vcombine.low %v2458_v45, %v2468_v46  ;;  %v1103_v32 = vrot.slane %v1101_v62, 5  ;;  %v911_v31 = vsel %vm4974_vm14, %v716_v40, %v910_v50  ;;  %v2676_v49 = vrot.slane %v5578_v60, 5 }
  0xeb   : > { %v2470_v10 = vshrl.u32 %v2179_v29, 16  ;;  %v2473_v18 = vshll.u32 %v2179_v29, 16  ;;  %v1088_v0 = vor.u32 %v1087_v2, %v1084_v7  ;;  %v1098_v48 = vor.u32 %v1097_v17, %v1093_v8  ;;  %912 = vst [vmem:[#allocation2 + $0xa4] sm:$0x1] %v911_v31  ;;  %v5681_v31 = vpop.permute.xlu0 %3133 }
  0xec   : > { %v5646_v24 = vld [vmem:[#allocation2 + $0xa0] sm:$0xf]  ;;  %v2679_v51 = vrot.slane %v5593_v20, 5  ;;  %v4217_v21 = vrot.slane %v2599_v19, 9  ;;  %v2677_v58 = vsel %vm4805_vm4, %v4210_v33, %v2676_v49  ;;  %v2678_v28 = vrot.slane %v2676_v49, 4 }
  0xed   : > { %v2472_v53 = vrot.slane %v2470_v10, 4  ;;  %v2475_v5 = vrot.slane %v2473_v18, 5  ;;  %3473 = vrot.lane.b32.xlu0 %v4353_v42, %s4661_s5  ;;  %v2483_v30 = vshrl.u32 %v5646_v24, 16  ;;  %v4330_v12 = vcombine.low %v2179_v29, %v5646_v24  ;;  %v5665_v33 = vld [vmem:[#allocation2 + $0x40] sm:$0xf] }
  0xee   : > { %v1089_v63 = vrot.slane %v1088_v0, 4  ;;  %v1099_v60 = vrot.slane %v1098_v48, 4  ;;  %v2479_v43 = vshll.u32 %v5646_v24, 16  ;;  %v2725_v27 = vrot.slane %v5545_v52, 5  ;;  %v5667_v19 = vld [vmem:[#allocation2 + $0x44] sm:$0x1]  ;;  %v5674_v52 = vpop.permute.xlu1 %3231 }
  0xef   : > { %v2476_v45 = vor.u32 %v2475_v5, %v2472_v53  ;;  %3331 = vrot.lane.b32.xlu1 %v4330_v12, %s4657_s24  ;;  %v2485_v16 = vrot.slane %v2483_v30, 4  ;;  %v2680_v40 = vsel %vm4805_vm4, %v2678_v28, %v2679_v51  ;;  %v1106_v18 = vshrl.u32 %v944_v22, 16  ;;  %v958_v0 = vld [vmem:[#allocation2 + $0x90] sm:$0xf]  ;;  %v5679_v48 = vld [vmem:[#allocation2 + $0x94] sm:$0xf] }
  0xf0   : > { %v1094_v20 = vsel %vm4819_vm7, %v1089_v63, %v1093_v8  ;;  %v1104_v42 = vsel %vm4819_vm7, %v1099_v60, %v1103_v32  ;;  %v2481_v62 = vrot.slane %v2479_v43, 5  ;;  %v4354_v29 = vcombine.low %v2677_v58, %v2680_v40  ;;  %v5693_v60 = vld [vmem:[#allocation2 + $0x98] sm:$0x1] }
  0xf1   : > { %v4243_v50 = vcombine.low %v1094_v20, %v1104_v42  ;;  %v2477_v7 = vrot.slane %v2476_v45, 4  ;;  %v5671_v46 = vsel %vm4805_vm4, %v4217_v21, %v2725_v27  ;;  %v2727_v2 = vrot.slane %v2725_v27, 4 }
  0xf2   : > { %v2728_v8 = vrot.slane %v5600_v56, 5  ;;  %v2486_v10 = vor.u32 %v2485_v16, %v2481_v62  ;;  %v1109_v32 = vshll.u32 %v944_v22, 16  ;;  %v5684_v49 = vld [vmem:[#allocation2 + $0xa4] sm:$0x1]  ;;  %v1115_v53 = vshll.u32 %v5665_v33, 16  ;;  %v5699_v40 = vpop.permute.xlu1 %2879 }
  0xf3   : > { %2885 = vrot.lane.b32.xlu0 %v4243_v50, %s4655_s21  ;;  %v2482_v17 = vsel %vm4819_vm7, %v2477_v7, %v2481_v62  ;;  %3409 = vrot.lane.b32.xlu1 %v4345_v23, %s4660_s30  ;;  %v1119_v5 = vshrl.u32 %v5665_v33, 16  ;;  %v1125_v51 = vshll.u32 %v5667_v19, 16  ;;  %v2489_v30 = vshll.u32 %v5684_v49, 16  ;;  %v1373_v62 = vld [vmem:[#allocation2 + $0x30] sm:$0xe] }
  0xf4   : > { %v2729_v56 = vsel %vm4805_vm4, %v2727_v2, %v2728_v8  ;;  %v2487_v21 = vrot.slane %v2486_v10, 4  ;;  %v1108_v63 = vrot.slane %v1106_v18, 4  ;;  %v1111_v23 = vrot.slane %v1109_v32, 5 }
  0xf5   : > { %v4361_v12 = vcombine.low %v5671_v46, %v2729_v56  ;;  %v1117_v45 = vrot.slane %v1115_v53, 5  ;;  %v1121_v43 = vrot.slane %v1119_v5, 4  ;;  %v1127_v58 = vrot.slane %v1125_v51, 5 }
  0xf6   : > { %v2491_v28 = vrot.slane %v2489_v30, 5  ;;  %v1274_v20 = vshrl.u32 %v958_v0, 16  ;;  %v1277_v42 = vshll.u32 %v958_v0, 16  ;;  %v1283_v16 = vshll.u32 %v5679_v48, 16 }
  0xf7   : > { %3475 = vrot.lane.b32.xlu0 %v4354_v29, %s4661_s5  ;;  %v1112_v27 = vor.u32 %v1111_v23, %v1108_v63  ;;  %v1122_v22 = vor.u32 %v1121_v43, %v1117_v45  ;;  %v1287_v50 = vshrl.u32 %v5679_v48, 16  ;;  %v1293_v7 = vshll.u32 %v5693_v60, 16  ;;  %v5703_v29 = vpop.permute.xlu0 %3135  ;;  %v2600_v63 = vld [vmem:[#allocation2 + $0x9c] sm:$0xe] }
  0xf8   : > { %v2492_v46 = vsel %vm4819_vm7, %v2487_v21, %v2491_v28  ;;  %v1276_v2 = vrot.slane %v1274_v20, 4  ;;  %v1279_v8 = vrot.slane %v1277_v42, 5  ;;  %v1285_v10 = vrot.slane %v1283_v16, 5  ;;  %v1374_v28 = vld [vmem:[#allocation2 + $0x3c] sm:$0xe] }
  0xf9   : > { %v4346_v18 = vcombine.low %v2482_v17, %v2492_v46  ;;  %v1113_v32 = vrot.slane %v1112_v27, 4  ;;  %v1123_v0 = vrot.slane %v1122_v22, 4  ;;  %v1289_v56 = vrot.slane %v1287_v50, 4 }
  0xfa   : > { %v1280_v53 = vor.u32 %v1279_v8, %v1276_v2  ;;  %v1295_v5 = vrot.slane %v1293_v7, 5  ;;  %v4179_v51 = vrot.slane %v1373_v62, 9  ;;  %v1466_v30 = vrot.slane %v5614_v54, 5  ;;  %v960_v2 = vld [vmem:[#allocation2 + $0x9c] sm:$0xf] }
  0xfb   : > { %3411 = vrot.lane.b32.xlu1 %v4346_v18, %s4660_s30  ;;  %v1118_v21 = vsel %vm4819_vm7, %v1113_v32, %v1117_v45  ;;  %v1128_v23 = vsel %vm4819_vm7, %v1123_v0, %v1127_v58  ;;  %v1290_v43 = vor.u32 %v1289_v56, %v1285_v10  ;;  %v1469_v17 = vrot.slane %v5627_v13, 5  ;;  %v5716_v45 = vpop.permute.xlu1 %2895  ;;  %v5724_v8 = vld [vmem:[#allocation2 + $0xa0] sm:$0xf]  ;;  %v5726_v18 = vpop.permute.xlu0 %3389  ;;  %v5733_v0 = vld [vmem:[#allocation2 + $0xa4] sm:$0x1] }
  0xfc   : > { %v4244_v20 = vcombine.low %v1118_v21, %v1128_v23  ;;  %v1281_v42 = vrot.slane %v1280_v53, 4  ;;  %v1467_v16 = vsel %vm4805_vm4, %v4179_v51, %v1466_v30  ;;  %v1468_v27 = vrot.slane %v1466_v30, 4  ;;  %v1556_v21 = vld [vmem:[#allocation2 + $0x3c] sm:$0xf] }
  0xfd   : > { %v1291_v54 = vrot.slane %v1290_v43, 4  ;;  %v4218_v22 = vrot.slane %v2600_v63, 9  ;;  %v2732_v50 = vrot.slane %v5646_v24, 5  ;;  %v2735_v7 = vrot.slane %v5684_v49, 5 }
  0xfe   : > { %2887 = vrot.lane.b32.xlu0 %v4244_v20, %s4655_s21  ;;  %v1286_v13 = vsel %vm4819_vm7, %v1281_v42, %v1285_v10  ;;  %v1470_v58 = vsel %vm4805_vm4, %v1468_v27, %v1469_v17  ;;  %v4180_v62 = vrot.slane %v1374_v28, 9  ;;  %v1473_v46 = vrot.slane %v5665_v33, 5  ;;  %v1381_v20 = vld [vmem:[#allocation2 + $0x90] sm:$0xe] }
  0xff   : > { %3489 = vrot.lane.b32.xlu1 %v4361_v12, %s4661_s5  ;;  %v1296_v24 = vsel %vm4819_vm7, %v1291_v54, %v1295_v5  ;;  %v4259_v49 = vcombine.low %v1467_v16, %v1470_v58  ;;  %v2733_v10 = vsel %vm4805_vm4, %v4218_v22, %v2732_v50  ;;  %v2734_v32 = vrot.slane %v2732_v50, 4  ;;  %v4536_v22 = vld [vmem:[%s4803_s7 + $0x28] sm:$0xff]   ;;  %v5750_v50 = vpop.permute.xlu1 %3149 }
 0x100   : > { %vm3550_vm1 = vcmask 80896   ;;  %v4251_v56 = vcombine.low %v1286_v13, %v1296_v24  ;;  %v1474_v33 = vsel %vm4805_vm4, %v4180_v62, %v1473_v46  ;;  %v1475_v53 = vrot.slane %v1473_v46, 4  ;;  %v1382_v46 = vld [vmem:[#allocation2 + $0x9c] sm:$0xe] }
 0x101   : > { %v1476_v51 = vrot.slane %v5667_v19, 5  ;;  %v2736_v12 = vsel %vm4805_vm4, %v2734_v32, %v2735_v7  ;;  %v1298_v30 = vshrl.u32 %v960_v2, 16  ;;  %v1301_v5 = vshll.u32 %v960_v2, 16  ;;  %v5746_v19 = vld [vmem:[#allocation2 + $0x40] sm:$0xf] }
 0x102   : > { %v1307_v63 = vshll.u32 %v5724_v8, 16  ;;  %2965 = vrot.lane.b32.xlu0 %v4259_v49, %s4654_s13  ;;  %v4362_v23 = vcombine.low %v2733_v10, %v2736_v12  ;;  %v1311_v17 = vshrl.u32 %v5724_v8, 16  ;;  %v1317_v28 = vshll.u32 %v5733_v0, 16 }
 0x103   : > { %v1477_v43 = vsel %vm4805_vm4, %v1475_v53, %v1476_v51  ;;  %2901 = vrot.lane.b32.xlu1 %v4251_v56, %s4655_s21  ;;  %v1300_v16 = vrot.slane %v1298_v30, 4  ;;  %v1303_v27 = vrot.slane %v1301_v5, 5  ;;  %v1693_v58 = vshrl.u32 %v1556_v21, 16 }
 0x104   : > { %v4260_v42 = vcombine.low %v1474_v33, %v1477_v43  ;;  %v1309_v54 = vrot.slane %v1307_v63, 5  ;;  %v1313_v7 = vrot.slane %v1311_v17, 4  ;;  %v1319_v13 = vrot.slane %v1317_v28, 5  ;;  %v5752_v2 = vpop.permute.xlu0 %3391 }
 0x105   : > { %v1696_v62 = vshll.u32 %v1556_v21, 16  ;;  %v1304_v24 = vor.u32 %v1303_v27, %v1300_v16  ;;  %v1706_v49 = vshrl.u32 %v5746_v19, 16  ;;  %v4275_v10 = vcombine.low %v1556_v21, %v5746_v19  ;;  %v5770_v16 = vpop.permute.xlu1 %3151 }
 0x106   : > { %v4187_v32 = vrot.slane %v1381_v20, 9  ;;  %vm3583_vm2 = vcmask 121856   ;;  %2967 = vrot.lane.b32.xlu0 %v4260_v42, %s4654_s13  ;;  %v1314_v56 = vor.u32 %v1313_v7, %v1309_v54  ;;  %v1695_v33 = vrot.slane %v1693_v58, 4 }
 0x107   : > { %v1698_v53 = vrot.slane %v1696_v62, 5  ;;  %v1522_v51 = vrot.slane %v5679_v48, 5  ;;  %3491 = vrot.lane.b32.xlu1 %v4362_v23, %s4661_s5  ;;  %v1305_v12 = vrot.slane %v1304_v24, 4  ;;  %v1525_v30 = vrot.slane %v5693_v60, 5 }
 0x108   : > { %v392_v5 = vsel %vm380_vm8, %v4536_v22, %v4835_v35  ;;  %v4188_v63 = vrot.slane %v1382_v46, 9  ;;  %v1315_v43 = vrot.slane %v1314_v56, 4  ;;  %v5764_v20 = vpop.permute.xlu0 %3469  ;;  %v1529_v23 = vrot.slane %v5724_v8, 5  ;;  %v4561_v56 = vld [vmem:[#allocation2 + $0x64] sm:$0xf] }
 0x109   : > { %v1523_v21 = vsel %vm4805_vm4, %v4187_v32, %v1522_v51  ;;  %v1524_v17 = vrot.slane %v1522_v51, 4  ;;  %v4153_v28 = vcombine.low %v392_v5, %v392_v5  ;;  %v1310_v48 = vsel %vm4819_vm7, %v1305_v12, %v1309_v54  ;;  %v4562_v51 = vld [vmem:[#allocation2 + $0x60] sm:$0xf]  ;;  %v857_v12 = vld [vmem:[#allocation2 + $0x48] sm:$0xf] }
 0x10a   : > { %v4154_v42 = vcombine.high %v392_v5, %v392_v5  ;;  %v1532_v60 = vrot.slane %v5733_v0, 5  ;;  %v1320_v27 = vsel %vm4819_vm7, %v1315_v43, %v1319_v13  ;;  %3061 = vrot.lane.b32.xlu0 %v4275_v10, %s4656_s23  ;;  %v3552_v54 = vsel %vm3550_vm1, %v5624_v38, %v5414_v3  ;;  %v5783_v5 = vld [vmem:[#allocation2 + $0x44] sm:$0x1] }
 0x10b   : > { %v1526_v22 = vsel %vm4805_vm4, %v1524_v17, %v1525_v30  ;;  %v582_v7 = vshrl.u32 %v4153_v28, 16  ;;  %v585_v58 = vshll.u32 %v4153_v28, 16  ;;  %v4252_v62 = vcombine.low %v1310_v48, %v1320_v27 }
 0x10c   : > { %v590_v8 = vshrl.u32 %v4154_v42, 16  ;;  %v593_v46 = vshll.u32 %v4154_v42, 16  ;;  %v4267_v0 = vcombine.low %v1523_v21, %v1526_v22  ;;  %v1531_v32 = vrot.slane %v1529_v23, 4  ;;  %v5788_v48 = vpop.permute.xlu0 %2881  ;;  %v1572_v22 = vld [vmem:[#allocation2 + $0x9c] sm:$0xf] }
 0x10d   : > { %v584_v24 = vrot.slane %v582_v7, 7  ;;  %v4231_v13 = vcombine.low %v4562_v51, %v4561_v56  ;;  %2903 = vrot.lane.b32.xlu1 %v4252_v62, %s4655_s21  ;;  %v1530_v30 = vsel %vm4805_vm4, %v4188_v63, %v1529_v23  ;;  %v1699_v43 = vor.u32 %v1698_v53, %v1695_v33  ;;  %v5792_v63 = vpop.permute.xlu1 %3405 }
 0x10e   : > { %v592_v10 = vrot.slane %v590_v8, 7  ;;  %v1702_v3 = vshll.u32 %v5746_v19, 16  ;;  %v1533_v17 = vsel %vm4805_vm4, %v1531_v32, %v1532_v60  ;;  %v1708_v28 = vrot.slane %v1706_v49, 4  ;;  %v4539_v60 = vld [vmem:[%s4803_s7 + $0x68] sm:$0xff]  }
 0x10f   : > { %v587_v38 = vor.u32 %v585_v58, %v584_v24  ;;  %v588_v21 = vrot.slane %v584_v24, 4  ;;  %v3528_v27 = vsel %vm3501_vm15, %v4231_v13, %v5650_v61  ;;  %v1700_v53 = vrot.slane %v1699_v43, 4  ;;  %v5797_v58 = vld [vmem:[#allocation2 + $0xa0] sm:$0xf] }
 0x110   : > { %v595_v42 = vor.u32 %v593_v46, %v592_v10  ;;  %v1704_v23 = vrot.slane %v1702_v3, 5  ;;  %v1712_v7 = vshll.u32 %v5783_v5, 16  ;;  %v3585_v49 = vsel %vm3583_vm2, %v3552_v54, %v5469_v57  ;;  %v4563_v54 = vld [vmem:[#allocation2 + $0x10] sm:$0xf] }
 0x111   : > { %v858_v33 = vsel %vm4858_vm13, %v587_v38, %v857_v12  ;;  %2981 = vrot.lane.b32.xlu1 %v4267_v0, %s4654_s13  ;;  %v4268_v62 = vcombine.low %v1530_v30, %v1533_v17  ;;  %v1885_v24 = vshrl.u32 %v1572_v22, 16  ;;  %v1888_v32 = vshll.u32 %v1572_v22, 16  ;;  %v4564_v0 = vld [vmem:[#allocation2 + $0xc] sm:$0xf]  ;;  %v861_v12 = vld [vmem:[#allocation2 + $0x50] sm:$0x1] }
 0x112   : > { %v596_v61 = vsel %vm4850_vm12, %v588_v21, %v595_v42  ;;  %859 = vst [vmem:[#allocation2 + $0x48] sm:$0xf] %v858_v33  ;;  %v1709_v8 = vor.u32 %v1708_v28, %v1704_v23  ;;  %v1714_v46 = vrot.slane %v1712_v7, 5  ;;  %v5808_v56 = vsel %vm3550_vm1, %v3528_v27, %v5591_v41  ;;  %v5816_v21 = vpop.permute.xlu0 %3471 }
 0x113   : > { %860 = vst.msk [vmem:[#allocation2 + $0x4c] sm:$0xf] %vm199_vm0, %v596_v61  ;;  %v4283_v57 = vcombine.low %v1572_v22, %v5797_v58  ;;  %v4224_v13 = vcombine.low %v4564_v0, %v4563_v54  ;;  %v1705_v30 = vsel %vm4819_vm7, %v1700_v53, %v1704_v23  ;;  %v597_v3 = vrot.slane %v592_v10, 4  ;;  %v5821_v42 = vpop.permute.xlu1 %3407  ;;  %v1984_v54 = vld [vmem:[#allocation2 + $0x3c] sm:$0xe] }
 0x114   : > { %v1710_v43 = vrot.slane %v1709_v8, 4  ;;  %v408_v38 = vsel %vm380_vm8, %v4539_v60, %v4835_v35  ;;  %vm6858_vm3 = vcmask 162816   ;;  %v5825_v22 = vrot.slane %v1885_v24, 4  ;;  %v4566_v24 = vld [vmem:[#allocation2 + $0x6c] sm:$0xf] }
 0x115   : > { %2983 = vrot.lane.b32.xlu1 %v4268_v62, %s4654_s13  ;;  %v3507_v41 = vsel %vm3501_vm15, %v4224_v13, %v5699_v40  ;;  %v4169_v17 = vcombine.low %v408_v38, %v408_v38  ;;  %v4170_v28 = vcombine.high %v408_v38, %v408_v38  ;;  %v5827_v10 = vrot.slane %v1888_v32, 5 }
 0x116   : > { %v1715_v27 = vsel %vm4819_vm7, %v1710_v43, %v1714_v46  ;;  %v862_v33 = vsel %vm4974_vm14, %v597_v3, %v861_v12  ;;  %vm6859_vm5 = vcmask 203776   ;;  %v3554_v53 = vsel %vm3550_vm1, %v3507_v41, %v5576_v44  ;;  %v4565_v46 = vld [vmem:[#allocation2 + $0x70] sm:$0xf]  ;;  %v5845_v41 = vpop.permute.xlu0 %2883 }
 0x117   : > { %863 = vst [vmem:[#allocation2 + $0x50] sm:$0x1] %v862_v33  ;;  %v718_v40 = vshrl.u32 %v4169_v17, 16  ;;  %v721_v23 = vshll.u32 %v4169_v17, 16  ;;  %v726_v7 = vshrl.u32 %v4170_v28, 16  ;;  %v4291_v61 = vcombine.low %v1705_v30, %v1715_v27 }
 0x118   : > { %v3618_v62 = vsel %vm6858_vm3, %v3585_v49, %v5681_v31  ;;  %v729_v8 = vshll.u32 %v4170_v28, 16  ;;  %v4232_v32 = vcombine.low %v4566_v24, %v4565_v46  ;;  %v913_v49 = vld [vmem:[#allocation2 + $0xa8] sm:$0xf]  ;;  %v3587_v38 = vsel %vm3583_vm2, %v3554_v53, %v5498_v4 }
 0x119   : > { %v1558_v60 = vld [vmem:[#allocation2 + $0x48] sm:$0xf]  ;;  %3077 = vrot.lane.b32.xlu1 %v4283_v57, %s4656_s23  ;;  %v720_v44 = vrot.slane %v718_v40, 7  ;;  %v5838_v43 = vrot.slane %v726_v7, 7  ;;  %v5847_v57 = vpop.permute.xlu1 %3485  ;;  %v4195_v46 = vrot.slane %v1984_v54, 9  ;;  %v2074_v53 = vrot.slane %v5746_v19, 5 }
 0x11a   : > { %v5835_v0 = vld [vmem:[#allocation2 + $0x4c] sm:$0xf]  ;;  %v1717_v13 = vshrl.u32 %v1558_v60, 16  ;;  %v1720_v12 = vshll.u32 %v1558_v60, 16  ;;  %v3531_v4 = vsel %vm3501_vm15, %v4232_v32, %v5716_v45  ;;  %v1891_v54 = vor.u32 %v5827_v10, %v5825_v22  ;;  %v5875_v10 = vpop.permute.xlu0 %2961 }
 0x11b   : > { %v1730_v3 = vshrl.u32 %v5835_v0, 16  ;;  %v4276_v30 = vcombine.low %v1558_v60, %v5835_v0  ;;  %v1726_v31 = vshll.u32 %v5835_v0, 16  ;;  %v723_v27 = vor.u32 %v721_v23, %v720_v44 }
 0x11c   : > { %v1719_v17 = vrot.slane %v1717_v13, 4  ;;  %v1722_v28 = vrot.slane %v1720_v12, 5  ;;  %v724_v33 = vrot.slane %v720_v44, 4  ;;  %v731_v60 = vor.u32 %v729_v8, %v5838_v43  ;;  %v5861_v8 = vld [vmem:[#allocation2 + $0xa4] sm:$0x1] }
 0x11d   : > { %3063 = vrot.lane.b32.xlu0 %v4276_v30, %s4656_s23  ;;  %v1728_v40 = vrot.slane %v1726_v31, 5  ;;  %v1732_v7 = vrot.slane %v1730_v3, 4  ;;  %v914_v51 = vsel %vm4858_vm13, %v723_v27, %v913_v49  ;;  %v2077_v44 = vrot.slane %v5783_v5, 5 }
 0x11e   : > { %v1723_v24 = vor.u32 %v1722_v28, %v1719_v17  ;;  %v5856_v23 = vld [vmem:[#allocation2 + $0x50] sm:$0x1]  ;;  %v732_v12 = vsel %vm4850_vm12, %v724_v33, %v731_v60  ;;  %915 = vst [vmem:[#allocation2 + $0xa8] sm:$0xf] %v914_v51  ;;  %v3620_v45 = vsel %vm6858_vm3, %v3587_v38, %v5703_v29  ;;  %v2076_v19 = vrot.slane %v2074_v53, 4  ;;  %v5882_v38 = vpop.permute.xlu1 %2897 }
 0x11f   : > { %v1733_v13 = vor.u32 %v1732_v7, %v1728_v40  ;;  %v1736_v30 = vshll.u32 %v5856_v23, 16  ;;  %916 = vst.msk [vmem:[#allocation2 + $0xac] sm:$0xf] %vm199_vm0, %v732_v12  ;;  %v2075_v5 = vsel %vm4805_vm4, %v4195_v46, %v2074_v53  ;;  %v1894_v51 = vshll.u32 %v5797_v58, 16  ;;  %v1985_v60 = vld [vmem:[#allocation2 + $0x48] sm:$0xe] }
 0x120   : > { %v1724_v3 = vrot.slane %v1723_v24, 4  ;;  %v6890_v31 = vshrl.u32 %v5797_v58, 16  ;;  %v2078_v29 = vsel %vm4805_vm4, %v2076_v19, %v2077_v44  ;;  %v3651_v28 = vsel %vm6859_vm5, %v3618_v62, %v5595_v6  ;;  %v5902_v19 = vpop.permute.xlu0 %2963 }
 0x121   : > { %3141 = vrot.lane.b32.xlu0 %v4291_v61, %s4659_s29  ;;  %v1734_v32 = vrot.slane %v1733_v13, 4  ;;  %v1738_v17 = vrot.slane %v1736_v30, 5  ;;  %v1904_v61 = vshll.u32 %v5861_v8, 16  ;;  %v3653_v27 = vsel %vm6859_vm5, %v3620_v45, %v5633_v26 }
 0x122   : > { %v1900_v22 = vrot.slane %v6890_v31, 4  ;;  %v1729_v49 = vsel %vm4819_vm7, %v1724_v3, %v1728_v40  ;;  %v1892_v33 = vrot.slane %v1891_v54, 4  ;;  %v1896_v7 = vrot.slane %v1894_v51, 5 }
 0x123   : > { %v1739_v40 = vsel %vm4819_vm7, %v1734_v32, %v1738_v17  ;;  %v3570_v46 = vsel %vm3550_vm1, %v3531_v4, %v5629_v9  ;;  %v4307_v24 = vcombine.low %v2075_v5, %v2078_v29  ;;  %vm3682_vm6 = vcmask 244736   ;;  %v5908_v5 = vpop.permute.xlu1 %3487 }
 0x124   : > { %v4292_v53 = vcombine.low %v1729_v49, %v1739_v40  ;;  %v1901_v13 = vor.u32 %v1900_v22, %v1896_v7  ;;  %v1906_v12 = vrot.slane %v1904_v61, 5  ;;  %vm3715_vm9 = vcmask 285696  }
 0x125   : > { %v1574_v44 = vld [vmem:[#allocation2 + $0xa8] sm:$0xf]  ;;  %v3601_v6 = vsel %vm3583_vm2, %v5808_v56, %v5488_v55  ;;  %v4196_v26 = vrot.slane %v1985_v60, 9  ;;  %v2081_v62 = vrot.slane %v5835_v0, 5  ;;  %v2084_v54 = vrot.slane %v5856_v23, 5 }
 0x126   : > { %3143 = vrot.lane.b32.xlu0 %v4292_v53, %s4659_s29  ;;  %v5898_v3 = vld [vmem:[#allocation2 + $0xac] sm:$0xf]  ;;  %v1909_v9 = vshrl.u32 %v1574_v44, 16  ;;  %v1912_v4 = vshll.u32 %v1574_v44, 16  ;;  %v1897_v30 = vsel %vm4819_vm7, %v1892_v33, %v1896_v7  ;;  %v1902_v45 = vrot.slane %v1901_v13, 4 }
 0x127   : > { %v1922_v32 = vshrl.u32 %v5898_v3, 16  ;;  %v4284_v55 = vcombine.low %v1574_v44, %v5898_v3  ;;  %v2082_v56 = vsel %vm4805_vm4, %v4196_v26, %v2081_v62  ;;  %v2083_v0 = vrot.slane %v2081_v62, 4  ;;  %v917_v23 = vld [vmem:[#allocation2 + $0xb0] sm:$0x1]  ;;  %v2165_v7 = vld [vmem:[#allocation2 + $0x48] sm:$0xf] }
 0x128   : > { %v1911_v51 = vrot.slane %v1909_v9, 4  ;;  %v1914_v31 = vrot.slane %v1912_v4, 5  ;;  %v1907_v22 = vsel %vm4819_vm7, %v1902_v45, %v1906_v12  ;;  %v733_v49 = vrot.slane %v5838_v43, 4  ;;  %v4544_v44 = vld [vmem:[%s4803_s7 + $0x30] sm:$0xff]   ;;  %v1992_v62 = vld [vmem:[#allocation2 + $0x9c] sm:$0xe]  ;;  %v5946_v4 = vpop.permute.xlu1 %2899 }
 0x129   : > { %3079 = vrot.lane.b32.xlu1 %v4284_v55, %s4656_s23  ;;  %v4299_v17 = vcombine.low %v1897_v30, %v1907_v22  ;;  %v3634_v29 = vsel %vm6858_vm3, %v3601_v6, %v5750_v50  ;;  %v2085_v61 = vsel %vm4805_vm4, %v2083_v0, %v2084_v54  ;;  %v1918_v33 = vshll.u32 %v5898_v3, 16  ;;  %v5926_v50 = vld [vmem:[#allocation2 + $0x4c] sm:$0xf]  ;;  %v5933_v54 = vpop.permute.xlu0 %3057 }
 0x12a   : > { %3221 = vrot.lane.b32.xlu0 %v4307_v24, %s4658_s28  ;;  %v4308_v60 = vcombine.low %v2082_v56, %v2085_v61  ;;  %v918_v40 = vsel %vm4974_vm14, %v733_v49, %v917_v23  ;;  %v1915_v43 = vor.u32 %v1914_v31, %v1911_v51  ;;  %v1924_v53 = vrot.slane %v1922_v32, 4 }
 0x12b   : > { %v3684_v13 = vsel %vm3682_vm6, %v3651_v28, %v5515_v39  ;;  %919 = vst [vmem:[#allocation2 + $0xb0] sm:$0x1] %v918_v40  ;;  %v5924_v12 = vrot.slane %v1918_v33, 5  ;;  %v3686_v24 = vsel %vm3682_vm6, %v3653_v27, %v5554_v59  ;;  %v2302_v26 = vshrl.u32 %v2165_v7, 16 }
 0x12c   : > { %v3717_v6 = vsel %vm3715_vm9, %v3684_v13, %v5726_v18  ;;  %v5938_v39 = vsel %vm6859_vm5, %v3634_v29, %v5644_v37  ;;  %v1916_v28 = vrot.slane %v1915_v43, 4  ;;  %v5942_v9 = vsel %vm3715_vm9, %v3686_v24, %v5752_v2 }
 0x12d   : > { %3157 = vrot.lane.b32.xlu1 %v4299_v17, %s4659_s29  ;;  %v3603_v18 = vsel %vm3583_vm2, %v3570_v46, %v5506_v34  ;;  %v1925_v59 = vor.u32 %v1924_v53, %v5924_v12  ;;  %v4323_v37 = vcombine.low %v2165_v7, %v5926_v50  ;;  %v2130_v30 = vrot.slane %v5797_v58, 5  ;;  %v1993_v58 = vld [vmem:[#allocation2 + $0xa8] sm:$0xe] }
 0x12e   : > { %3223 = vrot.lane.b32.xlu0 %v4308_v60, %s4658_s28  ;;  %v3636_v27 = vsel %vm6858_vm3, %v3603_v18, %v5770_v16  ;;  %v2305_v45 = vshll.u32 %v2165_v7, 16  ;;  %v2315_v2 = vshrl.u32 %v5926_v50, 16  ;;  %v4203_v32 = vrot.slane %v1992_v62, 9  ;;  %v5971_v60 = vpop.permute.xlu1 %2977 }
 0x12f   : > { %v394_v34 = vsel %vm380_vm8, %v4544_v44, %v4835_v35  ;;  %v5957_v46 = vrot.slane %v2302_v26, 4  ;;  %v2132_v55 = vrot.slane %v2130_v30, 4  ;;  %v2133_v56 = vrot.slane %v5861_v8, 5 }
 0x130   : > { %v4155_v0 = vcombine.low %v394_v34, %v394_v34  ;;  %v1921_v16 = vsel %vm4819_vm7, %v1916_v28, %v5924_v12  ;;  %v4156_v23 = vcombine.high %v394_v34, %v394_v34  ;;  %vm3748_vm10 = vcmask 326656   ;;  %v5996_v34 = vld [vmem:[#allocation2 + $0xa8] sm:$0xf] }
 0x131   : > { %vm3811_vm11 = vcmask 367616   ;;  %v1926_v31 = vrot.slane %v1925_v59, 4  ;;  %v3750_v17 = vsel %vm3748_vm10, %v3717_v6, %v5764_v20  ;;  %v2131_v61 = vsel %vm4805_vm4, %v4203_v32, %v2130_v30  ;;  %v864_v6 = vld [vmem:[#allocation2 + $0x54] sm:$0xf] }
 0x132   : > { %v1593_v51 = vld [vmem:[#allocation2 + $0xb0] sm:$0x1]  ;;  %3317 = vrot.lane.b32.xlu0 %v4323_v37, %s4657_s24  ;;  %v599_v22 = vshrl.u32 %v4155_v0, 16  ;;  %v602_v49 = vshll.u32 %v4155_v0, 16  ;;  %v5966_v29 = vpop.permute.xlu0 %3059  ;;  %v607_v33 = vshrl.u32 %v4156_v23, 16  ;;  %v610_v7 = vshll.u32 %v4156_v23, 16  ;;  %4419 = vmatprep.mubr.msk.bf16.mxu0 %vm3811_vm11, %v3750_v17  ;;  %v6005_v23 = vpop.permute.xlu1 %2979 }
 0x133   : > { %v1928_v8 = vshll.u32 %v1593_v51, 16  ;;  %v2134_v40 = vsel %vm4805_vm4, %v2132_v55, %v2133_v56  ;;  %v4204_v53 = vrot.slane %v1993_v58, 9  ;;  %v2137_v13 = vrot.slane %v5898_v3, 5  ;;  %v5985_v3 = vld [vmem:[#allocation2 + $0x50] sm:$0x1] }
 0x134   : > { %v601_v43 = vrot.slane %v599_v22, 7  ;;  %v2307_v12 = vrot.slane %v2305_v45, 5  ;;  %v5976_v44 = vrot.slane %v607_v33, 7  ;;  %v2140_v24 = vrot.slane %v1593_v51, 5  ;;  %v4548_v17 = vld [vmem:[%s4803_s7 + $0x70] sm:$0xff]  }
 0x135   : > { %v1930_v20 = vrot.slane %v1928_v8, 5  ;;  %v5980_v26 = vsel %vm6859_vm5, %v3636_v27, %v5674_v52  ;;  %v2139_v18 = vrot.slane %v2137_v13, 4  ;;  %v4315_v37 = vcombine.low %v2131_v61, %v2134_v40  ;;  %v4546_v27 = vld [vmem:[%s6851_s2 + $0x10] sm:$0x7f]  }
 0x136   : > { %v604_v62 = vor.u32 %v602_v49, %v601_v43  ;;  %v605_v28 = vrot.slane %v601_v43, 4  ;;  %v612_v30 = vor.u32 %v610_v7, %v5976_v44  ;;  %vm3844_vm3 = vcmask 1045504   ;;  %v5998_v55 = vpop.permute.xlu0 %3137 }
 0x137   : > { %v1931_v59 = vsel %vm4819_vm7, %v1926_v31, %v1930_v20  ;;  %v5991_v52 = vsel %vm4805_vm4, %v4204_v53, %v2137_v13  ;;  %vm3845_vm5 = vcmask 1046528   ;;  %v2141_v0 = vsel %vm4805_vm4, %v2139_v18, %v2140_v24  ;;  %v6024_v20 = vld [vmem:[#allocation2 + $0x18] sm:$0xf]  ;;  %v868_v24 = vld [vmem:[#allocation2 + $0x5c] sm:$0x1] }
 0x138   : > { %v4300_v45 = vcombine.low %v1921_v16, %v1931_v59  ;;  %v865_v32 = vsel %vm4858_vm13, %v604_v62, %v864_v6  ;;  %v613_v56 = vsel %vm4850_vm12, %v605_v28, %v612_v30  ;;  %v2308_v16 = vor.u32 %v2307_v12, %v5957_v46  ;;  %v6026_v12 = vld [vmem:[#allocation2 + $0x1c] sm:$0xf] }
 0x139   : > { %866 = vst [vmem:[#allocation2 + $0x54] sm:$0xf] %v865_v32  ;;  %867 = vst.msk [vmem:[#allocation2 + $0x58] sm:$0xf] %vm199_vm0, %v613_v56  ;;  %v4662_v58 = vmov 65535   ;;  %v2311_v31 = vshll.u32 %v5926_v50, 16  ;;  %v3700_v8 = vsel %vm3682_vm6, %v5938_v39, %v5539_v47  ;;  %v4316_v13 = vcombine.low %v5991_v52, %v2141_v0  ;;  %v6047_v52 = vpop.permute.xlu1 %3073 }
 0x13a   : > { %3159 = vrot.lane.b32.xlu1 %v4300_v45, %s4659_s29  ;;  %v3846_v51 = vsel %vm3844_vm3, 4294967295, %v4662_v58  ;;  %v2317_v22 = vrot.slane %v2315_v2, 4  ;;  %v2321_v49 = vshll.u32 %v5985_v3, 16  ;;  %v2494_v61 = vshrl.u32 %v5996_v34, 16  ;;  %v6021_v2 = vld [vmem:[#allocation2 + $0xac] sm:$0xf] }
 0x13b   : > { %v3847_v46 = vsel %vm3845_vm5, %v3846_v51, 0  ;;  %v2497_v33 = vshll.u32 %v5996_v34, 16  ;;  %v3733_v7 = vsel %vm3715_vm9, %v3700_v8, %v5792_v63  ;;  %v2309_v43 = vrot.slane %v2308_v16, 4 }
 0x13c   : > { %v3849_v40 = vand.u32 %v4546_v27, %v3847_v46  ;;  %v2313_v53 = vrot.slane %v2311_v31, 5  ;;  %v4225_v47 = vcombine.low %v6024_v20, %v6026_v12  ;;  %v2323_v39 = vrot.slane %v2321_v49, 5  ;;  %v6038_v59 = vpop.permute.xlu0 %3139 }
 0x13d   : > { %v6030_v6 = vrot.slane %v2494_v61, 4  ;;  %v6033_v62 = vrot.slane %v2497_v33, 5  ;;  %v614_v28 = vrot.slane %v5976_v44, 4  ;;  %v410_v18 = vsel %vm380_vm8, %v4548_v17, %v4835_v35  ;;  %v2593_v17 = vld [vmem:[#allocation2 + $0x48] sm:$0xe] }
 0x13e   : > { %3237 = vrot.lane.b32.xlu1 %v4315_v37, %s4658_s28  ;;  %4417 = vmatprep.subr.bf16.mxu0 %v3849_v40  ;;  %v2318_v63 = vor.u32 %v2317_v22, %v2313_v53  ;;  %v4331_v30 = vcombine.low %v5996_v34, %v6021_v2  ;;  %v3752_v45 = vsel %vm3748_vm10, %v5942_v9, %v5816_v21  ;;  %vm6893_vm3 = vcmask 162816  }
 0x13f   : > { %4418 = vmatpush3.bf16.msra.mxu0 %v3849_v40  ;;  %v4171_v37 = vcombine.low %v410_v18, %v410_v18  ;;  %v3766_v32 = vsel %vm3748_vm10, %v3733_v7, %v5847_v57  ;;  %v2314_v27 = vsel %vm4819_vm7, %v2309_v43, %v2313_v53  ;;  %v869_v0 = vsel %vm4974_vm14, %v614_v28, %v868_v24  ;;  %v920_v24 = vld [vmem:[#allocation2 + $0xb4] sm:$0xf]  ;;  %vm6894_vm5 = vmmov %vm6893_vm3 }
 0x140   : > { %v2167_v44 = vld [vmem:[#allocation2 + $0x54] sm:$0xf]  ;;  %v2319_v56 = vrot.slane %v2318_v63, 4  ;;  %v4172_v34 = vcombine.high %v410_v18, %v410_v18  ;;  %4435 = vmatprep.mubr.msk.bf16.mxu1 %vm3811_vm11, %v3766_v32  ;;  %4453 = vmatprep.subr.bf16.mxu1 %v3849_v40  ;;  %v6054_v16 = vld [vmem:[#allocation2 + $0x58] sm:$0xf]  ;;  %v4211_v18 = vrot.slane %v2593_v17, 9 }
 0x141   : > { %v2326_v21 = vshrl.u32 %v2167_v44, 16  ;;  %v2329_v9 = vshll.u32 %v2167_v44, 16  ;;  %870 = vst [vmem:[#allocation2 + $0x5c] sm:$0x1] %v869_v0  ;;  %v735_v57 = vshrl.u32 %v4171_v37, 16  ;;  %v738_v58 = vshll.u32 %v4171_v37, 16  ;;  %4456 = vmatpush3.bf16.msra.mxu1 %v3849_v40 }
 0x142   : > { %v2339_v51 = vshrl.u32 %v6054_v16, 16  ;;  %v4324_v31 = vcombine.low %v2167_v44, %v6054_v16  ;;  %3239 = vrot.lane.b32.xlu1 %v4316_v13, %s4658_s28  ;;  %v2324_v22 = vsel %vm4819_vm7, %v2319_v56, %v2323_v39  ;;  %v2335_v49 = vshll.u32 %v6054_v16, 16  ;;  %4420 = vmatmul.mubr.msk.bf16.vlgmr.msra.gmra.mrb[0].mxu0 %vm3811_vm11, %v3752_v45  ;;  %v6064_v13 = vpop.permute.xlu0 %3217  ;;  %v6067_v45 = vpop.permute.xlu1 %3075 }
 0x143   : > { %v2328_v8 = vrot.slane %v2326_v21, 4  ;;  %v2331_v46 = vrot.slane %v2329_v9, 5  ;;  %v4339_v61 = vcombine.low %v2314_v27, %v2324_v22  ;;  %v737_v33 = vrot.slane %v735_v57, 7  ;;  %v6078_v21 = vld [vmem:[#allocation2 + $0xb0] sm:$0x1] }
 0x144   : > { %3319 = vrot.lane.b32.xlu0 %v4324_v31, %s4657_s24  ;;  %v2337_v7 = vrot.slane %v2335_v49, 5  ;;  %v2341_v40 = vrot.slane %v2339_v51, 4  ;;  %v743_v43 = vshrl.u32 %v4172_v34, 16  ;;  %v746_v53 = vshll.u32 %v4172_v34, 16  ;;  %v6090_v31 = vld [vmem:[#allocation2 + $0x24] sm:$0xf] }
 0x145   : > { %v2507_v39 = vshrl.u32 %v6021_v2, 16  ;;  %v2332_v63 = vor.u32 %v2331_v46, %v2328_v8  ;;  %v740_v28 = vor.u32 %v738_v58, %v737_v33  ;;  %v741_v32 = vrot.slane %v737_v33, 4  ;;  %v6092_v22 = vld [vmem:[#allocation2 + $0x28] sm:$0xf]  ;;  %v6102_v46 = vld [vmem:[#allocation2 + $0x4c] sm:$0xf] }
 0x146   : > { %3333 = vrot.lane.b32.xlu1 %v4331_v30, %s4657_s24  ;;  %v2342_v37 = vor.u32 %v2341_v40, %v2337_v7  ;;  %v6070_v44 = vrot.slane %v743_v43, 7  ;;  %v2683_v27 = vrot.slane %v5926_v50, 5  ;;  %v3702_v56 = vsel %vm3682_vm6, %v5980_v26, %v5571_v36 }
 0x147   : > { %v2333_v0 = vrot.slane %v2332_v63, 4  ;;  %v921_v34 = vsel %vm4858_vm13, %v740_v28, %v920_v24  ;;  %v2500_v9 = vor.u32 %v6033_v62, %v6030_v6  ;;  %v3735_v30 = vsel %vm3715_vm9, %v3702_v56, %v5821_v42  ;;  %v946_v62 = vld [vmem:[#allocation2 + $0x48] sm:$0xf]  ;;  %v6109_v24 = vpop.permute.xlu1 %3153  ;;  %v6115_v28 = vld [vmem:[#allocation2 + $0x50] sm:$0x1] }
 0x148   : > { %3397 = vrot.lane.b32.xlu0 %v4339_v61, %s4660_s30  ;;  %v6085_v57 = vld [vmem:[#allocation2 + $0x5c] sm:$0x1]  ;;  %v748_v50 = vor.u32 %v746_v53, %v6070_v44  ;;  %922 = vst [vmem:[#allocation2 + $0xb4] sm:$0xf] %v921_v34  ;;  %v2685_v36 = vrot.slane %v2683_v27, 4  ;;  %v2686_v26 = vrot.slane %v5985_v3, 5  ;;  %v4226_v42 = vcombine.low %v6090_v31, %v6092_v22  ;;  %v6104_v61 = vpop.permute.xlu0 %3219 }
 0x149   : > { %v2343_v58 = vrot.slane %v2342_v37, 4  ;;  %v2345_v51 = vshll.u32 %v6085_v57, 16  ;;  %v2503_v6 = vshll.u32 %v6021_v2, 16  ;;  %v2684_v17 = vsel %vm4805_vm4, %v4211_v18, %v2683_v27  ;;  %v948_v22 = vld [vmem:[#allocation2 + $0x54] sm:$0xf] }
 0x14a   : > { %v749_v49 = vsel %vm4850_vm12, %v741_v32, %v748_v50  ;;  %v2509_v3 = vrot.slane %v2507_v39, 4  ;;  %v2513_v8 = vshll.u32 %v6078_v21, 16  ;;  %v2338_v33 = vsel %vm4819_vm7, %v2333_v0, %v2337_v7 }
 0x14b   : > { %v2347_v40 = vrot.slane %v2345_v51, 5  ;;  %923 = vst.msk [vmem:[#allocation2 + $0xb8] sm:$0xf] %vm199_vm0, %v749_v49  ;;  %v2501_v43 = vrot.slane %v2500_v9, 4  ;;  %v2505_v53 = vrot.slane %v2503_v6, 5  ;;  %v2687_v63 = vsel %vm4805_vm4, %v2685_v36, %v2686_v26 }
 0x14c   : > { %v3768_v39 = vsel %vm3748_vm10, %v3735_v30, %v5908_v5  ;;  %v1130_v18 = vshrl.u32 %v946_v62, 16  ;;  %v1133_v37 = vshll.u32 %v946_v62, 16  ;;  %v2515_v27 = vrot.slane %v2513_v8, 5  ;;  %v6124_v8 = vpop.permute.xlu0 %3313 }
 0x14d   : > { %v2348_v7 = vsel %vm4819_vm7, %v2343_v58, %v2347_v40  ;;  %v2510_v32 = vor.u32 %v2509_v3, %v2505_v53  ;;  %v1139_v56 = vshll.u32 %v6102_v46, 16  ;;  %4436 = vmatmul.mubr.msk.bf16.vlgmr.msra.gmra.mrb[0].mxu1 %vm3811_vm11, %v3768_v39  ;;  %v1143_v50 = vshrl.u32 %v6102_v46, 16  ;;  %v924_v3 = vld [vmem:[#allocation2 + $0xbc] sm:$0x1] }
 0x14e   : > { %v4340_v0 = vcombine.low %v2338_v33, %v2348_v7  ;;  %v1132_v34 = vrot.slane %v1130_v18, 4  ;;  %v1135_v9 = vrot.slane %v1133_v37, 5  ;;  %v4355_v5 = vcombine.low %v2684_v17, %v2687_v63  ;;  %v4571_v33 = vld [vmem:[#allocation2 + $0x78] sm:$0xf]  ;;  %v4572_v40 = vld [vmem:[#allocation2 + $0x7c] sm:$0xf]  ;;  %v6131_v7 = vpop.permute.xlu1 %3155 }
 0x14f   : > { %v2183_v36 = vld [vmem:[#allocation2 + $0xb4] sm:$0xf]  ;;  %v2511_v30 = vrot.slane %v2510_v32, 4  ;;  %v1141_v26 = vrot.slane %v1139_v56, 5  ;;  %v1149_v51 = vshll.u32 %v6115_v28, 16  ;;  %v1145_v49 = vrot.slane %v1143_v50, 4 }
 0x150   : > { %3399 = vrot.lane.b32.xlu0 %v4340_v0, %s4660_s30  ;;  %v2518_v58 = vshrl.u32 %v2183_v36, 16  ;;  %v2521_v6 = vshll.u32 %v2183_v36, 16  ;;  %v1136_v62 = vor.u32 %v1135_v9, %v1132_v34  ;;  %v4233_v39 = vcombine.low %v4571_v33, %v4572_v40  ;;  %v2594_v37 = vld [vmem:[#allocation2 + $0x54] sm:$0xe] }
 0x151   : > { %v2506_v18 = vsel %vm4819_vm7, %v2501_v43, %v2505_v53  ;;  %v2516_v17 = vsel %vm4819_vm7, %v2511_v30, %v2515_v27  ;;  %v750_v63 = vrot.slane %v6070_v44, 4  ;;  %v1151_v9 = vrot.slane %v1149_v51, 5 }
 0x152   : > { %v6133_v32 = vld [vmem:[#allocation2 + $0xb8] sm:$0xf]  ;;  %v2520_v56 = vrot.slane %v2518_v58, 4  ;;  %v2523_v0 = vrot.slane %v2521_v6, 5  ;;  %v1137_v34 = vrot.slane %v1136_v62, 4  ;;  %v1146_v40 = vor.u32 %v1145_v49, %v1141_v26  ;;  %v6164_v12 = vpop.permute.xlu1 %3233 }
 0x153   : > { %v2531_v50 = vshrl.u32 %v6133_v32, 16  ;;  %v4332_v33 = vcombine.low %v2183_v36, %v6133_v32  ;;  %v925_v43 = vsel %vm4974_vm14, %v750_v63, %v924_v3  ;;  %v4347_v44 = vcombine.low %v2506_v18, %v2516_v17  ;;  %v2601_v3 = vld [vmem:[#allocation2 + $0xa8] sm:$0xe]  ;;  %v6151_v18 = vpop.permute.xlu0 %3315 }
 0x154   : > { %3477 = vrot.lane.b32.xlu0 %v4355_v5, %s4661_s5  ;;  %v1142_v53 = vsel %vm4819_vm7, %v1137_v34, %v1141_v26  ;;  %926 = vst [vmem:[#allocation2 + $0xbc] sm:$0x1] %v925_v43  ;;  %v2524_v27 = vor.u32 %v2523_v0, %v2520_v56  ;;  %v2527_v30 = vshll.u32 %v6133_v32, 16  ;;  %v1147_v51 = vrot.slane %v1146_v40, 4  ;;  %v962_v0 = vld [vmem:[#allocation2 + $0xa8] sm:$0xf] }
 0x155   : > { %3335 = vrot.lane.b32.xlu1 %v4332_v33, %s4657_s24  ;;  %v2533_v58 = vrot.slane %v2531_v50, 4  ;;  %v4212_v6 = vrot.slane %v2594_v37, 9  ;;  %v2690_v36 = vrot.slane %v6054_v16, 5  ;;  %v3510_v5 = vsel %vm3501_vm15, %v4225_v47, %v5788_v48 }
 0x156   : > { %v2525_v62 = vrot.slane %v2524_v27, 4  ;;  %v2529_v49 = vrot.slane %v2527_v30, 5  ;;  %v2693_v26 = vrot.slane %v6085_v57, 5  ;;  %v6158_v17 = vsel %vm3501_vm15, %v4226_v42, %v5845_v41  ;;  %v6171_v41 = vld [vmem:[#allocation2 + $0x58] sm:$0xf] }
 0x157   : > { %v1152_v16 = vsel %vm4819_vm7, %v1147_v51, %v1151_v9  ;;  %v2691_v48 = vsel %vm4805_vm4, %v4212_v6, %v2690_v36  ;;  %v2692_v20 = vrot.slane %v2690_v36, 4  ;;  %v6168_v47 = vsel %vm3501_vm15, %v4233_v39, %v5882_v38  ;;  %v6181_v39 = vld [vmem:[#allocation2 + $0x5c] sm:$0x1]  ;;  %v6193_v51 = vld [vmem:[#allocation2 + $0xac] sm:$0xf]  ;;  %v6195_v6 = vpop.permute.xlu0 %3393 }
 0x158   : > { %v4245_v57 = vcombine.low %v1142_v53, %v1152_v16  ;;  %v2534_v63 = vor.u32 %v2533_v58, %v2529_v49  ;;  %v2739_v31 = vrot.slane %v6021_v2, 5  ;;  %v6176_v42 = vsel %vm3550_vm1, %v3510_v5, %v5875_v10  ;;  %6891 = vst [vmem:[#allocation7_spill] sm:$0xff] %v6195_v6 }
 0x159   : > { %3413 = vrot.lane.b32.xlu1 %v4347_v44, %s4660_s30  ;;  %v2694_v56 = vsel %vm4805_vm4, %v2692_v20, %v2693_v26  ;;  %v4219_v38 = vrot.slane %v2601_v3, 9  ;;  %v2530_v2 = vsel %vm4819_vm7, %v2525_v62, %v2529_v49  ;;  %v2742_v50 = vrot.slane %v6078_v21, 5  ;;  %v6199_v49 = vld [vmem:[#allocation2 + $0xb0] sm:$0x1]  ;;  %v6201_v26 = vpop.permute.xlu1 %3235 }
 0x15a   : > { %2889 = vrot.lane.b32.xlu0 %v4245_v57, %s4655_s21  ;;  %v4356_v34 = vcombine.low %v2691_v48, %v2694_v56  ;;  %v2741_v9 = vrot.slane %v2739_v31, 4  ;;  %v1154_v33 = vshrl.u32 %v948_v22, 16  ;;  %v1157_v40 = vshll.u32 %v948_v22, 16 }
 0x15b   : > { %v6187_v10 = vld [vmem:[#allocation2 + $0xbc] sm:$0x1]  ;;  %v1163_v43 = vshll.u32 %v6171_v41, 16  ;;  %v1167_v44 = vshrl.u32 %v6171_v41, 16  ;;  %v2535_v53 = vrot.slane %v2534_v63, 4  ;;  %v1173_v30 = vshll.u32 %v6181_v39, 16  ;;  %v6211_v14 = vpop.permute.xlu0 %3395 }
 0x15c   : > { %v2537_v27 = vshll.u32 %v6187_v10, 16  ;;  %v1322_v58 = vshrl.u32 %v962_v0, 16  ;;  %v2740_v21 = vsel %vm4805_vm4, %v4219_v38, %v2739_v31  ;;  %v1156_v36 = vrot.slane %v1154_v33, 4 }
 0x15d   : > { %v1159_v5 = vrot.slane %v1157_v40, 5  ;;  %v1165_v62 = vrot.slane %v1163_v43, 5  ;;  %v2743_v16 = vsel %vm4805_vm4, %v2741_v9, %v2742_v50  ;;  %v1169_v48 = vrot.slane %v1167_v44, 4  ;;  %v1375_v43 = vld [vmem:[#allocation2 + $0x48] sm:$0xe] }
 0x15e   : > { %v2539_v3 = vrot.slane %v2537_v27, 5  ;;  %3479 = vrot.lane.b32.xlu0 %v4356_v34, %s4661_s5  ;;  %v1324_v20 = vrot.slane %v1322_v58, 4  ;;  %v1325_v63 = vshll.u32 %v962_v0, 16  ;;  %v1331_v22 = vshll.u32 %v6193_v51, 16  ;;  %v2602_v50 = vld [vmem:[#allocation2 + $0xb4] sm:$0xe] }
 0x15f   : > { %v1160_v57 = vor.u32 %v1159_v5, %v1156_v36  ;;  %v1335_v31 = vshrl.u32 %v6193_v51, 16  ;;  %v1170_v38 = vor.u32 %v1169_v48, %v1165_v62  ;;  %v1175_v33 = vrot.slane %v1173_v30, 5  ;;  %v4573_v44 = vld [vmem:[#allocation2 + $0x84] sm:$0xf]  ;;  %v4574_v58 = vld [vmem:[#allocation2 + $0x88] sm:$0xf]  ;;  %v6216_v48 = vpop.permute.xlu1 %3329 }
 0x160   : > { %v2540_v56 = vsel %vm4819_vm7, %v2535_v53, %v2539_v3  ;;  %v1341_v40 = vshll.u32 %v6199_v49, 16  ;;  %v1327_v37 = vrot.slane %v1325_v63, 5  ;;  %v1333_v9 = vrot.slane %v1331_v22, 5 }
 0x161   : > { %v4348_v34 = vcombine.low %v2530_v2, %v2540_v56  ;;  %v1161_v27 = vrot.slane %v1160_v57, 4  ;;  %v4234_v0 = vcombine.low %v4573_v44, %v4574_v58  ;;  %v4363_v36 = vcombine.low %v2740_v21, %v2743_v16  ;;  %v6249_v44 = vpop.permute.xlu0 %3473 }
 0x162   : > { %v1171_v5 = vrot.slane %v1170_v38, 4  ;;  %v1337_v6 = vrot.slane %v1335_v31, 4  ;;  %v1328_v30 = vor.u32 %v1327_v37, %v1324_v20  ;;  %v1343_v3 = vrot.slane %v1341_v40, 5 }
 0x163   : > { %3415 = vrot.lane.b32.xlu1 %v4348_v34, %s4660_s30  ;;  %v1166_v53 = vsel %vm4819_vm7, %v1161_v27, %v1165_v62  ;;  %v4181_v2 = vrot.slane %v1375_v43, 9  ;;  %v1480_v21 = vrot.slane %v6102_v46, 5  ;;  %v4220_v16 = vrot.slane %v2602_v50, 9  ;;  %v1376_v34 = vld [vmem:[#allocation2 + $0x54] sm:$0xe] }
 0x164   : > { %v1176_v57 = vsel %vm4819_vm7, %v1171_v5, %v1175_v33  ;;  %v1338_v63 = vor.u32 %v1337_v6, %v1333_v9  ;;  %v1329_v31 = vrot.slane %v1328_v30, 4  ;;  %v2746_v56 = vrot.slane %v6133_v32, 5  ;;  %v6245_v50 = vld [vmem:[#allocation2 + $0xb8] sm:$0xf] }
 0x165   : > { %v4246_v22 = vcombine.low %v1166_v53, %v1176_v57  ;;  %v2749_v38 = vrot.slane %v6187_v10, 5  ;;  %v3558_v37 = vsel %vm3550_vm1, %v6158_v17, %v5902_v19  ;;  %v1481_v20 = vsel %vm4805_vm4, %v4181_v2, %v1480_v21  ;;  %v6236_v19 = vld [vmem:[#allocation2 + $0xb4] sm:$0xf] }
 0x166   : > { %v1339_v62 = vrot.slane %v1338_v63, 4  ;;  %v1482_v33 = vrot.slane %v1480_v21, 4  ;;  %v3537_v46 = vsel %vm3501_vm15, %v4234_v0, %v5946_v4  ;;  %v1334_v32 = vsel %vm4819_vm7, %v1329_v31, %v1333_v9  ;;  %v6247_v9 = vld [vmem:[#allocation2 + $0xbc] sm:$0x1]  ;;  %v1560_v21 = vld [vmem:[#allocation2 + $0x54] sm:$0xf] }
 0x167   : > { %3493 = vrot.lane.b32.xlu1 %v4363_v36, %s4661_s5  ;;  %2891 = vrot.lane.b32.xlu0 %v4246_v22, %s4655_s21  ;;  %v2747_v10 = vsel %vm4805_vm4, %v4220_v16, %v2746_v56  ;;  %v2748_v6 = vrot.slane %v2746_v56, 4  ;;  %v6892_v40 = vrot.slane %v6115_v28, 5  ;;  %v4182_v43 = vrot.slane %v1376_v34, 9  ;;  %v6254_v28 = vpop.permute.xlu1 %3331  ;;  %v1383_v34 = vld [vmem:[#allocation2 + $0xa8] sm:$0xe] }
 0x168   : > { %v1344_v17 = vsel %vm4819_vm7, %v1339_v62, %v1343_v3  ;;  %v1487_v27 = vrot.slane %v6171_v41, 5  ;;  %v1490_v5 = vrot.slane %v6181_v39, 5  ;;  %v1346_v3 = vshrl.u32 %v6236_v19, 16 }
 0x169   : > { %v1484_v4 = vsel %vm4805_vm4, %v1482_v33, %v6892_v40  ;;  %v4253_v58 = vcombine.low %v1334_v32, %v1344_v17  ;;  %v2750_v36 = vsel %vm4805_vm4, %v2748_v6, %v2749_v38  ;;  %v1349_v2 = vshll.u32 %v6236_v19, 16  ;;  %v6273_v38 = vld [vmem:[#allocation2 + $0x58] sm:$0xf]  ;;  %v6276_v40 = vpop.permute.xlu0 %2885 }
 0x16a   : > { %v4261_v0 = vcombine.low %v1481_v20, %v1484_v4  ;;  %v4364_v53 = vcombine.low %v2747_v10, %v2750_v36  ;;  %v1488_v30 = vsel %vm4805_vm4, %v4182_v43, %v1487_v27  ;;  %v1489_v41 = vrot.slane %v1487_v27, 4 }
 0x16b   : > { %2905 = vrot.lane.b32.xlu1 %v4253_v58, %s4655_s21  ;;  %v1355_v57 = vshll.u32 %v6245_v50, 16  ;;  %v1359_v63 = vshrl.u32 %v6245_v50, 16  ;;  %v1365_v39 = vshll.u32 %v6247_v9, 16  ;;  %v3589_v16 = vsel %vm3583_vm2, %v6176_v42, %v5933_v54  ;;  %v1562_v42 = vld [vmem:[#allocation2 + $0x60] sm:$0xf]  ;;  %v6281_v27 = vpop.permute.xlu1 %3409 }
 0x16c   : > { %2969 = vrot.lane.b32.xlu0 %v4261_v0, %s4654_s13  ;;  %v3572_v22 = vsel %vm3550_vm1, %v6168_v47, %v5971_v60  ;;  %v1491_v31 = vsel %vm4805_vm4, %v1489_v41, %v1490_v5  ;;  %v1348_v56 = vrot.slane %v1346_v3, 4  ;;  %v1351_v20 = vrot.slane %v1349_v2, 5  ;;  %v6290_v5 = vld [vmem:[#allocation2 + $0x64] sm:$0xf]  ;;  %v1384_v2 = vld [vmem:[#allocation2 + $0xb4] sm:$0xe] }
 0x16d   : > { %v4262_v62 = vcombine.low %v1488_v30, %v1491_v31  ;;  %v1357_v33 = vrot.slane %v1355_v57, 5  ;;  %v1361_v32 = vrot.slane %v1359_v63, 4  ;;  %v1539_v10 = vrot.slane %v6199_v49, 5 }
 0x16e   : > { %v1367_v6 = vrot.slane %v1365_v39, 5  ;;  %v1741_v17 = vshrl.u32 %v1560_v21, 16  ;;  %v1744_v54 = vshll.u32 %v1560_v21, 16  ;;  %v1352_v60 = vor.u32 %v1351_v20, %v1348_v56  ;;  %v6305_v56 = vld [vmem:[#allocation2 + $0x5c] sm:$0x1] }
 0x16f   : > { %3495 = vrot.lane.b32.xlu1 %v4364_v53, %s4661_s5  ;;  %v1362_v47 = vor.u32 %v1361_v32, %v1357_v33  ;;  %v4277_v4 = vcombine.low %v1560_v21, %v6273_v38  ;;  %v4189_v43 = vrot.slane %v1383_v34, 9  ;;  %v3591_v49 = vsel %vm3583_vm2, %v3558_v37, %v5966_v29  ;;  %v6307_v34 = vpop.permute.xlu0 %3475 }
 0x170   : > { %2971 = vrot.lane.b32.xlu0 %v4262_v62, %s4654_s13  ;;  %v3574_v58 = vsel %vm3550_vm1, %v3537_v46, %v6005_v23  ;;  %v3622_v0 = vsel %vm6893_vm3, %v3589_v16, %v5998_v55  ;;  %v1536_v36 = vrot.slane %v6193_v51, 5  ;;  %v1353_v53 = vrot.slane %v1352_v60, 4 }
 0x171   : > { %v1363_v30 = vrot.slane %v1362_v47, 4  ;;  %v1754_v41 = vshrl.u32 %v6273_v38, 16  ;;  %v1765_v3 = vshrl.u32 %v1562_v42, 16  ;;  %v1743_v57 = vrot.slane %v1741_v17, 4 }
 0x172   : > { %v1746_v63 = vrot.slane %v1744_v54, 5  ;;  %v1537_v29 = vsel %vm4805_vm4, %v4189_v43, %v1536_v36  ;;  %v1538_v37 = vrot.slane %v1536_v36, 4  ;;  %v1358_v23 = vsel %vm4819_vm7, %v1353_v53, %v1357_v33  ;;  %v1576_v54 = vld [vmem:[#allocation2 + $0xb4] sm:$0xf]  ;;  %v6328_v36 = vld [vmem:[#allocation2 + $0xb8] sm:$0xf] }
 0x173   : > { %v1368_v55 = vsel %vm4819_vm7, %v1363_v30, %v1367_v6  ;;  %v1768_v51 = vshll.u32 %v1562_v42, 16  ;;  %v4278_v46 = vcombine.low %v1562_v42, %v6290_v5  ;;  %v3605_v39 = vsel %vm3583_vm2, %v3572_v22, %v6047_v52  ;;  %v6315_v6 = vpop.permute.xlu1 %3411  ;;  %v4553_v53 = vld [vmem:[%s4803_s7 + $0x78] sm:$0xff]   ;;  %s189_s7 = sand.u32 1, %s4643_s18  }
 0x174   : > { %3065 = vrot.lane.b32.xlu0 %v4277_v4, %s4656_s23  ;;  %v4254_v21 = vcombine.low %v1358_v23, %v1368_v55  ;;  %v1540_v16 = vsel %vm4805_vm4, %v1538_v37, %v1539_v10  ;;  %v4190_v31 = vrot.slane %v1384_v2, 9  ;;  %v6311_v62 = vsel %vm6894_vm5, %v3591_v49, %v6038_v59  ;;  %v6344_v37 = vpop.permute.xlu0 %2887 }
 0x175   : > { %v1767_v20 = vrot.slane %v1765_v3, 4  ;;  %v1543_v33 = vrot.slane %v6245_v50, 5  ;;  %v1546_v32 = vrot.slane %v6247_v9, 5  ;;  %v4269_v52 = vcombine.low %v1537_v29, %v1540_v16 }
 0x176   : > { %2907 = vrot.lane.b32.xlu1 %v4254_v21, %s4655_s21  ;;  %v1747_v22 = vor.u32 %v1746_v63, %v1743_v57  ;;  %v1750_v10 = vshll.u32 %v6273_v38, 16  ;;  %v1756_v17 = vrot.slane %v1754_v41, 4  ;;  %v1770_v42 = vrot.slane %v1768_v51, 5  ;;  %s4393_s21 = sshll.u32 %s4715_s0, 12  ;;  %s6808_s0 = scalar_lea.sflag [#allocation5], %s189_s7 }
 0x177   : > { %v1544_v59 = vsel %vm4805_vm4, %v4190_v31, %v1543_v33  ;;  %v1545_v60 = vrot.slane %v1543_v33, 4  ;;  %v1760_v9 = vshll.u32 %v6305_v56, 16  ;;  %v6325_v47 = vsel %vm3583_vm2, %v3574_v58, %v6067_v45  ;;  %v6341_v58 = vld [vmem:[#allocation2 + $0x68] sm:$0x1]  ;;  %v6350_v55 = vpop.permute.xlu1 %3489 }
 0x178   : > { %3067 = vrot.lane.b32.xlu0 %v4278_v46, %s4656_s23  ;;  %v1778_v4 = vshrl.u32 %v6290_v5, 16  ;;  %v1748_v43 = vrot.slane %v1747_v22, 4  ;;  %v1752_v49 = vrot.slane %v1750_v10, 5  ;;  %vm6895_vm3 = vcmask 203776  }
 0x179   : > { %v6333_v30 = vsel %vm6895_vm3, %v3622_v0, %v6064_v13  ;;  %v6337_v41 = vsel %vm6894_vm5, %v3605_v39, %v6109_v24  ;;  %v1547_v3 = vsel %vm4805_vm4, %v1545_v60, %v1546_v32  ;;  %v1933_v45 = vshrl.u32 %v1576_v54, 16 }
 0x17a   : > { %2985 = vrot.lane.b32.xlu1 %v4269_v52, %s4654_s13  ;;  %v4270_v2 = vcombine.low %v1544_v59, %v1547_v3  ;;  %v1757_v57 = vor.u32 %v1756_v17, %v1752_v49  ;;  %v1762_v63 = vrot.slane %v1760_v9, 5  ;;  %v1936_v29 = vshll.u32 %v1576_v54, 16  ;;  %v1986_v52 = vld [vmem:[#allocation2 + $0x54] sm:$0xe] }
 0x17b   : > { %v1753_v13 = vsel %vm4819_vm7, %v1748_v43, %v1752_v49  ;;  %v1946_v24 = vshrl.u32 %v6328_v36, 16  ;;  %v1771_v0 = vor.u32 %v1770_v42, %v1767_v20  ;;  %v1774_v23 = vshll.u32 %v6290_v5, 16 }
 0x17c   : > { %v1758_v51 = vrot.slane %v1757_v57, 4  ;;  %v1780_v46 = vrot.slane %v1778_v4, 4  ;;  %v1784_v39 = vshll.u32 %v6341_v58, 16  ;;  %v412_v21 = vsel %vm380_vm8, %v4553_v53, %v4835_v35  ;;  %v6359_v53 = vpop.permute.xlu0 %2965  ;;  %v927_v57 = vld [vmem:[#allocation2 + $0xc0] sm:$0xf]  ;;  %vm6896_vm8 = vmmov %vm6895_vm3 }
 0x17d   : > { %v1772_v16 = vrot.slane %v1771_v0, 4  ;;  %v1776_v31 = vrot.slane %v1774_v23, 5  ;;  %v4173_v33 = vcombine.low %v412_v21, %v412_v21  ;;  %v4174_v32 = vcombine.high %v412_v21, %v412_v21  ;;  %v6369_v0 = vld [vmem:[#allocation2 + $0xbc] sm:$0x1]  ;;  %vm6897_vm3 = vmmov %vm6894_vm5 }
 0x17e   : > { %2987 = vrot.lane.b32.xlu1 %v4270_v2, %s4654_s13  ;;  %v1763_v20 = vsel %vm4819_vm7, %v1758_v51, %v1762_v63  ;;  %v1935_v22 = vrot.slane %v1933_v45, 4  ;;  %v1938_v10 = vrot.slane %v1936_v29, 5  ;;  %v4285_v17 = vcombine.low %v1576_v54, %v6328_v36  ;;  %v6365_v63 = vpop.permute.xlu1 %2901  ;;  %vm6906_vm5 = vmmov %vm6897_vm3  ;;  %s4124_s13 = sshll.u32 %s189_s7, 8 }
 0x17f   : > { %v4293_v42 = vcombine.low %v1753_v13, %v1763_v20  ;;  %v1781_v59 = vor.u32 %v1780_v46, %v1776_v31  ;;  %v1786_v60 = vrot.slane %v1784_v39, 5  ;;  %v752_v9 = vshrl.u32 %v4173_v33, 16  ;;  %s6687_s16 = scalar_lea.vmem [#allocation4], %s4124_s13 }
 0x180   : > { %v755_v4 = vshll.u32 %v4173_v33, 16  ;;  %v760_v35 = vshrl.u32 %v4174_v32, 16  ;;  %v763_v43 = vshll.u32 %v4174_v32, 16  ;;  %v4197_v49 = vrot.slane %v1986_v52, 9 }
 0x181   : > { %3145 = vrot.lane.b32.xlu0 %v4293_v42, %s4659_s29  ;;  %v1777_v3 = vsel %vm4819_vm7, %v1772_v16, %v1776_v31  ;;  %v1782_v2 = vrot.slane %v1781_v59, 4  ;;  %v754_v45 = vrot.slane %v752_v9, 7  ;;  %v2088_v54 = vrot.slane %v6273_v38, 5  ;;  %v1987_v31 = vld [vmem:[#allocation2 + $0x60] sm:$0xe]  ;;  %v6394_v42 = vpop.permute.xlu0 %2967 }
 0x182   : > { %3081 = vrot.lane.b32.xlu1 %v4285_v17, %s4656_s23  ;;  %v762_v29 = vrot.slane %v760_v35, 7  ;;  %v2091_v13 = vrot.slane %v6305_v56, 5  ;;  %v1939_v23 = vor.u32 %v1938_v10, %v1935_v22  ;;  %v1942_v51 = vshll.u32 %v6328_v36, 16  ;;  %v6401_v9 = vpop.permute.xlu1 %3491 }
 0x183   : > { %v1787_v46 = vsel %vm4819_vm7, %v1782_v2, %v1786_v60  ;;  %v757_v39 = vor.u32 %v755_v4, %v754_v45  ;;  %v758_v21 = vrot.slane %v754_v45, 4  ;;  %v1948_v16 = vrot.slane %v1946_v24, 4  ;;  %v931_v60 = vld [vmem:[#allocation2 + $0xc8] sm:$0x1]  ;;  %v6410_v2 = vld [vmem:[#allocation2 + $0x64] sm:$0xf] }
 0x184   : > { %v4294_v38 = vcombine.low %v1777_v3, %v1787_v46  ;;  %v765_v33 = vor.u32 %v763_v43, %v762_v29  ;;  %v2089_v32 = vsel %vm4805_vm4, %v4197_v49, %v2088_v54  ;;  %v2090_v52 = vrot.slane %v2088_v54, 4  ;;  %v6901_v54 = vld [vmem:[#allocation7_spill] sm:$0xff] }
 0x185   : > { %v3657_v56 = vsel %vm6896_vm8, %v6311_v62, %v6104_v61  ;;  %v928_v20 = vsel %vm4858_vm13, %v757_v39, %v927_v57  ;;  %v6381_v22 = vrot.slane %v1942_v51, 5  ;;  %v1952_v10 = vshll.u32 %v6369_v0, 16  ;;  %vm6904_vm13 = vmmov %vm6897_vm3 }
 0x186   : > { %v3640_v24 = vsel %vm6897_vm3, %v6325_v47, %v6131_v7  ;;  %3147 = vrot.lane.b32.xlu0 %v4294_v38, %s4659_s29  ;;  %v766_v17 = vsel %vm4850_vm12, %v758_v21, %v765_v33  ;;  %929 = vst [vmem:[#allocation2 + $0xc0] sm:$0xf] %v928_v20  ;;  %v2092_v61 = vsel %vm4805_vm4, %v2090_v52, %v2091_v13  ;;  %v4198_v62 = vrot.slane %v1987_v31, 9  ;;  %vm6898_vm12 = vmmov %vm6896_vm8  ;;  %v6446_v52 = vpop.permute.xlu1 %2903 }
 0x187   : > { %v3688_v59 = vsel %vm3682_vm6, %v6333_v30, %v6124_v8  ;;  %930 = vst.msk [vmem:[#allocation2 + $0xc4] sm:$0xf] %vm199_vm0, %v766_v17  ;;  %v4309_v7 = vcombine.low %v2089_v32, %v2092_v61  ;;  %v1940_v47 = vrot.slane %v1939_v23, 4  ;;  %v1949_v11 = vor.u32 %v1948_v16, %v6381_v22  ;;  %vm6899_vm0 = vmmov %vm6896_vm8  ;;  %v1994_v23 = vld [vmem:[#allocation2 + $0xb4] sm:$0xe]  ;;  %v6440_v16 = vpop.permute.xlu0 %3061 }
 0x188   : > { %v3671_v4 = vsel %vm6898_vm12, %v6337_v41, %v6164_v12  ;;  %v2095_v35 = vrot.slane %v6290_v5, 5  ;;  %v2098_v43 = vrot.slane %v6341_v58, 5  ;;  %v767_v49 = vrot.slane %v762_v29, 4  ;;  %v2171_v32 = vld [vmem:[#allocation2 + $0x6c] sm:$0xf]  ;;  %vm6907_vm8 = vmmov %vm6899_vm0 }
 0x189   : > { %v3690_v8 = vsel %vm3682_vm6, %v3657_v56, %v6151_v18  ;;  %v1950_v30 = vrot.slane %v1949_v11, 4  ;;  %v1954_v3 = vrot.slane %v1952_v10, 5  ;;  %v2350_v45 = vshrl.u32 %v6392_v15, 16  ;;  %vm6908_vm12 = vmmov %vm6899_vm0 }
 0x18a   : > { %v6415_v57 = vsel %vm6899_vm0, %v3640_v24, %v6201_v26  ;;  %3225 = vrot.lane.b32.xlu0 %v4309_v7, %s4658_s28  ;;  %v2096_v12 = vsel %vm4805_vm4, %v4198_v62, %v2095_v35  ;;  %v2097_v5 = vrot.slane %v2095_v35, 4  ;;  %v932_v58 = vsel %vm4974_vm14, %v767_v49, %v931_v60  ;;  %vm6905_vm14 = vmmov %vm6899_vm0 }
 0x18b   : > { %v1945_v18 = vsel %vm4819_vm7, %v1940_v47, %v6381_v22  ;;  %v3721_v29 = vsel %vm3715_vm9, %v3688_v59, %v6901_v54  ;;  %v6429_v26 = vsel %vm3682_vm6, %v3671_v4, %v6216_v48  ;;  %933 = vst [vmem:[#allocation2 + $0xc8] sm:$0x1] %v932_v58  ;;  %v6433_v13 = vsel %vm3715_vm9, %v3690_v8, %v6211_v14 }
 0x18c   : > { %v2099_v51 = vsel %vm4805_vm4, %v2097_v5, %v2098_v43  ;;  %v2353_v46 = vshll.u32 %v6392_v15, 16  ;;  %v2363_v39 = vshrl.u32 %v6410_v2, 16  ;;  %v2144_v21 = vrot.slane %v6328_v36, 5 }
 0x18d   : > { %v1578_v31 = vld [vmem:[#allocation2 + $0xc0] sm:$0xf]  ;;  %v1955_v48 = vsel %vm4819_vm7, %v1950_v30, %v1954_v3  ;;  %v4310_v38 = vcombine.low %v2096_v12, %v2099_v51  ;;  %v2352_v33 = vrot.slane %v2350_v45, 4  ;;  %v3754_v14 = vsel %vm3748_vm10, %v3721_v29, %v6249_v44  ;;  %v6453_v44 = vld [vmem:[#allocation2 + $0x70] sm:$0xf] }
 0x18e   : > { %v1579_v56 = vld [vmem:[#allocation2 + $0xc4] sm:$0xf]  ;;  %v1957_v20 = vshrl.u32 %v1578_v31, 16  ;;  %v1960_v22 = vshll.u32 %v1578_v31, 16  ;;  %v4325_v36 = vcombine.low %v6392_v15, %v6410_v2  ;;  %v4205_v10 = vrot.slane %v1994_v23, 9  ;;  %4423 = vmatprep.mubr.msk.bf16.mxu0 %vm3811_vm11, %v3754_v14 }
 0x18f   : > { %v1970_v24 = vshrl.u32 %v1579_v56, 16  ;;  %v4286_v17 = vcombine.low %v1578_v31, %v1579_v56  ;;  %3227 = vrot.lane.b32.xlu0 %v4310_v38, %s4658_s28  ;;  %v1966_v61 = vshll.u32 %v1579_v56, 16  ;;  %v2147_v62 = vrot.slane %v6369_v0, 5  ;;  %v1995_v60 = vld [vmem:[#allocation2 + $0xc0] sm:$0xe]  ;;  %v6461_v45 = vpop.permute.xlu0 %3063 }
 0x190   : > { %v1959_v59 = vrot.slane %v1957_v20, 4  ;;  %v1962_v7 = vrot.slane %v1960_v22, 5  ;;  %v2146_v47 = vrot.slane %v2144_v21, 4  ;;  %v2374_v11 = vshrl.u32 %v2171_v32, 16  ;;  %v6475_v22 = vld [vmem:[#allocation2 + $0xc0] sm:$0xf] }
 0x191   : > { %3083 = vrot.lane.b32.xlu1 %v4286_v17, %s4656_s23  ;;  %v4301_v15 = vcombine.low %v1945_v18, %v1955_v48  ;;  %v1968_v4 = vrot.slane %v1966_v61, 5  ;;  %v1972_v35 = vrot.slane %v1970_v24, 4  ;;  %v2377_v43 = vshll.u32 %v2171_v32, 16  ;;  %v6464_v18 = vpop.permute.xlu1 %2981  ;;  %s4058_s23 = sshll.u32 %s6687_s16, 4  ;;  %s6800_s23 = int_to_ptr.vmem [resolvable:$true] %s4058_s23 }
 0x192   : > { %v1595_v49 = vld [vmem:[#allocation2 + $0xc8] sm:$0x1]  ;;  %v1963_v8 = vor.u32 %v1962_v7, %v1959_v59  ;;  %v2355_v30 = vrot.slane %v2353_v46, 5  ;;  %v6458_v3 = vsel %vm4805_vm4, %v4205_v10, %v2144_v21  ;;  %v4326_v0 = vcombine.low %v2171_v32, %v6453_v44 }
 0x193   : > { %v1973_v12 = vor.u32 %v1972_v35, %v1968_v4  ;;  %v1976_v5 = vshll.u32 %v1595_v49, 16  ;;  %3321 = vrot.lane.b32.xlu0 %v4325_v36, %s4657_s24  ;;  %v4206_v41 = vrot.slane %v1995_v60, 9  ;;  %v2151_v58 = vrot.slane %v1579_v56, 5  ;;  %v6468_v46 = vld [vmem:[#allocation2 + $0x68] sm:$0x1]  ;;  %v6487_v7 = vpop.permute.xlu0 %3141 }
 0x194   : > { %v1964_v54 = vrot.slane %v1963_v8, 4  ;;  %v2148_v29 = vsel %vm4805_vm4, %v2146_v47, %v2147_v62  ;;  %v2376_v23 = vrot.slane %v2374_v11, 4  ;;  %v2154_v51 = vrot.slane %v1595_v49, 5  ;;  %v6510_v8 = vld [vmem:[#allocation2 + $0xc4] sm:$0xf] }
 0x195   : > { %3161 = vrot.lane.b32.xlu1 %v4301_v15, %s4659_s29  ;;  %v1974_v21 = vrot.slane %v1973_v12, 4  ;;  %v1978_v31 = vrot.slane %v1976_v5, 5  ;;  %v2379_v48 = vrot.slane %v2377_v43, 5  ;;  %v2153_v38 = vrot.slane %v2151_v58, 4  ;;  %v6497_v15 = vld [vmem:[#allocation2 + $0x74] sm:$0x1] }
 0x196   : > { %v1969_v14 = vsel %vm4819_vm7, %v1964_v54, %v1968_v4  ;;  %v2387_v32 = vshrl.u32 %v6453_v44, 16  ;;  %v2356_v56 = vor.u32 %v2355_v30, %v2352_v33  ;;  %v2359_v20 = vshll.u32 %v6410_v2, 16  ;;  %v6499_v4 = vpop.permute.xlu1 %2983 }
 0x197   : > { %v1979_v36 = vsel %vm4819_vm7, %v1974_v21, %v1978_v31  ;;  %3323 = vrot.lane.b32.xlu0 %v4326_v0, %s4657_s24  ;;  %v2152_v10 = vsel %vm4805_vm4, %v4206_v41, %v2151_v58  ;;  %v2365_v24 = vrot.slane %v2363_v39, 4  ;;  %v2369_v17 = vshll.u32 %v6468_v46, 16 }
 0x198   : > { %v4302_v61 = vcombine.low %v1969_v14, %v1979_v36  ;;  %v2155_v33 = vsel %vm4805_vm4, %v2153_v38, %v2154_v51  ;;  %v2357_v62 = vrot.slane %v2356_v56, 4  ;;  %v2361_v59 = vrot.slane %v2359_v20, 5 }
 0x199   : > { %v3706_v47 = vsel %vm3682_vm6, %v6415_v57, %v6254_v28  ;;  %v3737_v11 = vsel %vm3715_vm9, %v6429_v26, %v6281_v27  ;;  %v2542_v39 = vshrl.u32 %v6475_v22, 16  ;;  %v2545_v60 = vshll.u32 %v6475_v22, 16  ;;  %v6506_v57 = vld [vmem:[#allocation2 + $0xcc] sm:$0xf] }
 0x19a   : > { %3163 = vrot.lane.b32.xlu1 %v4302_v61, %s4659_s29  ;;  %v4317_v35 = vcombine.low %v6458_v3, %v2148_v29  ;;  %v2366_v43 = vor.u32 %v2365_v24, %v2361_v59  ;;  %v2371_v49 = vrot.slane %v2369_v17, 5  ;;  %v3756_v28 = vsel %vm3748_vm10, %v6433_v13, %v6307_v34  ;;  %v6517_v13 = vld [vmem:[#allocation2 + $0xd0] sm:$0xf]  ;;  %v6533_v20 = vpop.permute.xlu1 %3077  ;;  %v6535_v61 = vld [vmem:[#allocation2 + $0xc8] sm:$0x1]  ;;  %s6798_s29 = scalar_lea.hbm %s6853_s4, %s4393_s21 }
 0x19b   : > { %v4318_v27 = vcombine.low %v2152_v10, %v2155_v33  ;;  %v2362_v26 = vsel %vm4819_vm7, %v2357_v62, %v2361_v59  ;;  %v3770_v30 = vsel %vm3748_vm10, %v3737_v11, %v6350_v55  ;;  %v2380_v0 = vor.u32 %v2379_v48, %v2376_v23  ;;  %4424 = vmatmul.mubr.msk.bf16.gmra.mrb[4].mxu0 %vm3811_vm11, %v3756_v28  ;;  %v2595_v55 = vld [vmem:[#allocation2 + $0x60] sm:$0xe]  ;;  %v6526_v48 = vpop.permute.xlu0 %3143 }
 0x19c   : > { %v2367_v3 = vrot.slane %v2366_v43, 4  ;;  %v2383_v12 = vshll.u32 %v6453_v44, 16  ;;  %v2389_v5 = vrot.slane %v2387_v32, 4  ;;  %v2393_v34 = vshll.u32 %v6497_v15, 16  ;;  %4439 = vmatprep.mubr.msk.bf16.mxu1 %vm3811_vm11, %v3770_v30 }
 0x19d   : > { %v2544_v41 = vrot.slane %v2542_v39, 4  ;;  %v2547_v58 = vrot.slane %v2545_v60, 5  ;;  %v2566_v54 = vshrl.u32 %v6506_v57, 16  ;;  %v2569_v29 = vshll.u32 %v6506_v57, 16  ;;  %v2596_v60 = vld [vmem:[#allocation2 + $0x6c] sm:$0xe] }
 0x19e   : > { %3241 = vrot.lane.b32.xlu1 %v4317_v35, %s4658_s28  ;;  %v2372_v23 = vsel %vm4819_vm7, %v2367_v3, %v2371_v49  ;;  %v2555_v51 = vshrl.u32 %v6510_v8, 16  ;;  %v2381_v21 = vrot.slane %v2380_v0, 4  ;;  %v2385_v31 = vrot.slane %v2383_v12, 5 }
 0x19f   : > { %v3739_v38 = vsel %vm3715_vm9, %v3706_v47, %v6315_v6  ;;  %v4341_v14 = vcombine.low %v2362_v26, %v2372_v23  ;;  %v4333_v32 = vcombine.low %v6475_v22, %v6510_v8  ;;  %v2579_v56 = vshrl.u32 %v6517_v13, 16  ;;  %v6553_v30 = vpop.permute.xlu0 %3221 }
 0x1a0   : > { %v2390_v36 = vor.u32 %v2389_v5, %v2385_v31  ;;  %v2395_v10 = vrot.slane %v2393_v34, 5  ;;  %v2568_v24 = vrot.slane %v2566_v54, 4  ;;  %v4213_v17 = vrot.slane %v2595_v55, 9  ;;  %v2204_v34 = vld [vmem:[#allocation2 + $0xd4] sm:$0x1] }
 0x1a1   : > { %3401 = vrot.lane.b32.xlu0 %v4341_v14, %s4660_s30  ;;  %v2571_v33 = vrot.slane %v2569_v29, 5  ;;  %v2697_v62 = vrot.slane %v6410_v2, 5  ;;  %v2700_v6 = vrot.slane %v6468_v46, 5  ;;  %v2548_v59 = vor.u32 %v2547_v58, %v2544_v41  ;;  %v6558_v41 = vpop.permute.xlu1 %3079 }
 0x1a2   : > { %3243 = vrot.lane.b32.xlu1 %v4318_v27, %s4658_s28  ;;  %v2386_v22 = vsel %vm4819_vm7, %v2381_v21, %v2385_v31  ;;  %v2391_v47 = vrot.slane %v2390_v36, 4  ;;  %v2551_v11 = vshll.u32 %v6510_v8, 16  ;;  %v2557_v39 = vrot.slane %v2555_v51, 4 }
 0x1a3   : > { %v2698_v35 = vsel %vm4805_vm4, %v4213_v17, %v2697_v62  ;;  %v2699_v43 = vrot.slane %v2697_v62, 4  ;;  %v2549_v49 = vrot.slane %v2548_v59, 4  ;;  %v2561_v2 = vshll.u32 %v6535_v61, 16  ;;  %v3224_v17 = vpop.permute.xlu0 %3223  ;;  %v2604_v59 = vld [vmem:[#allocation2 + $0xcc] sm:$0xe] }
 0x1a4   : > { %v2396_v46 = vsel %vm4819_vm7, %v2391_v47, %v2395_v10  ;;  %v4334_v28 = vcombine.low %v6506_v57, %v6517_v13  ;;  %v2553_v27 = vrot.slane %v2551_v11, 5  ;;  %v3772_v26 = vsel %vm3748_vm10, %v3739_v38, %v6401_v9 }
 0x1a5   : > { %v4342_v0 = vcombine.low %v2386_v22, %v2396_v46  ;;  %v2701_v3 = vsel %vm4805_vm4, %v2699_v43, %v2700_v6  ;;  %v2563_v12 = vrot.slane %v2561_v2, 5  ;;  %v4214_v5 = vrot.slane %v2596_v60, 9  ;;  %4440 = vmatmul.mubr.msk.bf16.gmra.mrb[4].mxu1 %vm3811_vm11, %v3772_v26  ;;  %v6575_v22 = vpop.permute.xlu1 %3157 }
 0x1a6   : > { %3337 = vrot.lane.b32.xlu1 %v4333_v32, %s4657_s24  ;;  %v4357_v57 = vcombine.low %v2698_v35, %v2701_v3  ;;  %v2554_v58 = vsel %vm4819_vm7, %v2549_v49, %v2553_v27  ;;  %v2558_v9 = vor.u32 %v2557_v39, %v2553_v27  ;;  %v2704_v54 = vrot.slane %v6453_v44, 5  ;;  %v2603_v32 = vld [vmem:[#allocation2 + $0xc0] sm:$0xe] }
 0x1a7   : > { %3403 = vrot.lane.b32.xlu0 %v4342_v0, %s4660_s30  ;;  %v2707_v29 = vrot.slane %v6497_v15, 5  ;;  %v2572_v55 = vor.u32 %v2571_v33, %v2568_v24  ;;  %v2575_v23 = vshll.u32 %v6517_v13, 16  ;;  %v2581_v51 = vrot.slane %v2579_v56, 4  ;;  %v3318_v26 = vpop.permute.xlu0 %3317 }
 0x1a8   : > { %v2559_v21 = vrot.slane %v2558_v9, 4  ;;  %v2705_v31 = vsel %vm4805_vm4, %v4214_v5, %v2704_v54  ;;  %v2706_v38 = vrot.slane %v2704_v54, 4  ;;  %v2585_v14 = vshll.u32 %v2204_v34, 16 }
 0x1a9   : > { %v2573_v36 = vrot.slane %v2572_v55, 4  ;;  %v2577_v10 = vrot.slane %v2575_v23, 5  ;;  %v4221_v6 = vrot.slane %v2603_v32, 9  ;;  %v2753_v47 = vrot.slane %v6510_v8, 5 }
 0x1aa   : > { %3339 = vrot.lane.b32.xlu1 %v4334_v28, %s4657_s24  ;;  %v2564_v44 = vsel %vm4819_vm7, %v2559_v21, %v2563_v12  ;;  %v2708_v15 = vsel %vm4805_vm4, %v2706_v38, %v2707_v29  ;;  %v2587_v24 = vrot.slane %v2585_v14, 5  ;;  %v2756_v11 = vrot.slane %v6535_v61, 5  ;;  %v4577_v38 = vld [vmem:[#allocation2 + $0x3c] sm:$0xf]  ;;  %v4578_v14 = vld [vmem:[#allocation2 + $0x40] sm:$0xf] }
 0x1ab   : > { %3481 = vrot.lane.b32.xlu0 %v4357_v57, %s4661_s5  ;;  %v4349_v56 = vcombine.low %v2554_v58, %v2564_v44  ;;  %v4358_v33 = vcombine.low %v2705_v31, %v2708_v15  ;;  %v2582_v62 = vor.u32 %v2581_v51, %v2577_v10  ;;  %v2578_v39 = vsel %vm4819_vm7, %v2573_v36, %v2577_v10  ;;  %v4575_v57 = vld [vmem:[#allocation2 + $0x30] sm:$0xf]  ;;  %v4576_v58 = vld [vmem:[#allocation2 + $0x34] sm:$0xf] }
 0x1ac   : > { %v2760_v35 = vrot.slane %v6517_v13, 5  ;;  %v2755_v43 = vrot.slane %v2753_v47, 4  ;;  %v4222_v49 = vrot.slane %v2604_v59, 9  ;;  %v2754_v8 = vsel %vm4805_vm4, %v4221_v6, %v2753_v47  ;;  %v6590_v13 = vpop.permute.xlu1 %3159  ;;  %v4580_v6 = vld [vmem:[#allocation2 + $0x94] sm:$0xf] }
 0x1ad   : > { %v2583_v60 = vrot.slane %v2582_v62, 4  ;;  %v2763_v61 = vrot.slane %v2204_v34, 5  ;;  %v4227_v9 = vcombine.low %v4575_v57, %v4576_v58  ;;  %v4228_v32 = vcombine.low %v4577_v38, %v4578_v14  ;;  %v4579_v62 = vld [vmem:[#allocation2 + $0x90] sm:$0xf] }
 0x1ae   : > { %3417 = vrot.lane.b32.xlu1 %v4349_v56, %s4660_s30  ;;  %v2762_v46 = vrot.slane %v2760_v35, 4  ;;  %v2757_v27 = vsel %vm4805_vm4, %v2755_v43, %v2756_v11  ;;  %v2761_v3 = vsel %vm4805_vm4, %v4222_v49, %v2760_v35  ;;  %v4235_v59 = vcombine.low %v4579_v62, %v4580_v6  ;;  %v4581_v43 = vld [vmem:[#allocation2 + $0x9c] sm:$0xf]  ;;  %v4582_v49 = vld [vmem:[#allocation2 + $0xa0] sm:$0xf] }
 0x1af   : > { %3483 = vrot.lane.b32.xlu0 %v4358_v33, %s4661_s5  ;;  %v2588_v2 = vsel %vm4819_vm7, %v2583_v60, %v2587_v24  ;;  %v4365_v0 = vcombine.low %v2754_v8, %v2757_v27  ;;  %v3516_v55 = vsel %vm3501_vm15, %v4227_v9, %v6276_v40  ;;  %vm6903_vm7 = vmmov %vm6899_vm0 }
 0x1b0   : > { %v4350_v28 = vcombine.low %v2578_v39, %v2588_v2  ;;  %v2764_v25 = vsel %vm4805_vm4, %v2762_v46, %v2763_v61  ;;  %v3238_v34 = vpop.permute.xlu1 %3237  ;;  %v3560_v23 = vsel %vm3550_vm1, %v3516_v55, %v6359_v53  ;;  %vm6902_vm4 = vmmov %vm6897_vm3  ;;  %v4236_v2 = vcombine.low %v4581_v43, %v4582_v49 }
 0x1b1   : > { %v4366_v12 = vcombine.low %v2761_v3, %v2764_v25  ;;  %v3593_v1 = vsel %vm3583_vm2, %v3560_v23, %v6440_v16  ;;  %v3519_v16 = vsel %vm3501_vm15, %v4228_v32, %v6344_v37  ;;  %vm6909_vm0 = vmmov %vm6897_vm3 }
 0x1b2   : > { %3419 = vrot.lane.b32.xlu1 %v4350_v28, %s4660_s30  ;;  %v3626_v21 = vsel %vm6902_vm4, %v3593_v1, %v6487_v7  ;;  %v3562_v15 = vsel %vm3550_vm1, %v3519_v16, %v6394_v42  ;;  %vm6910_vm4 = vmmov %vm6903_vm7  ;;  %s4589_s30 = scalar_lea.vmem %s6800_s23, 4096 }
 0x1b3   : > { %v3659_v36 = vsel %vm6903_vm7, %v3626_v21, %v6553_v30  ;;  %v3595_v24 = vsel %vm3583_vm2, %v3562_v15, %v6461_v45  ;;  %v3540_v45 = vsel %vm3501_vm15, %v4235_v59, %v6365_v63  ;;  %v4586_v15 = vld [vmem:[#allocation2 + $0x58] sm:$0xf]  ;;  %vm6911_vm7 = vmmov %vm6909_vm0  ;;  %p4590_p12 = scmp.ne.s32.totalorder %s6800_s23, %s4589_s30 }
 0x1b4   : > { %v3240_v29 = vpop.permute.xlu1 %3239  ;;  %v3692_v10 = vsel %vm3682_vm6, %v3659_v36, %v3318_v26  ;;  %v3628_v56 = vsel %vm6904_vm13, %v3595_v24, %v6526_v48  ;;  %v3576_v48 = vsel %vm3550_vm1, %v3540_v45, %v6464_v18  ;;  %v4583_v36 = vld [vmem:[#allocation2 + $0x48] sm:$0xf]  ;;  %vm6912_vm13 = vmmov %vm6910_vm4 }
 0x1b5   : > { %v3661_v33 = vsel %vm6905_vm14, %v3628_v56, %v3224_v17  ;;  %v3609_v17 = vsel %vm3583_vm2, %v3576_v48, %v6533_v20  ;;  %v3543_v20 = vsel %vm3501_vm15, %v4236_v2, %v6446_v52  ;;  %vm6913_vm14 = vmmov %vm6909_vm0  ;;  %p4591_p13 = pnand %p4590_p12, %p4732_p5 }
 0x1b6   : > { %3497 = vrot.lane.b32.xlu1 %v4365_v0, %s4661_s5  ;;  %v3320_v5 = vpop.permute.xlu0 %3319  ;;  %v3642_v35 = vsel %vm6906_vm5, %v3609_v17, %v6575_v22  ;;  %v3578_v22 = vsel %vm3550_vm1, %v3543_v20, %v6499_v4  ;;  %vm6914_vm5 = vmmov %vm6910_vm4 }
 0x1b7   : > { %v3694_v37 = vsel %vm3682_vm6, %v3661_v33, %v3320_v5  ;;  %v3675_v8 = vsel %vm6907_vm8, %v3642_v35, %v3238_v34  ;;  %v3611_v27 = vsel %vm3583_vm2, %v3578_v22, %v6558_v41  ;;  %vm6915_vm8 = vmmov %vm6909_vm0  ;;  %p4592_p0 = pneg %p4591_p13 }
 0x1b8   : > { %v3334_v31 = vpop.permute.xlu1 %3333  ;;  %v3644_v3 = vsel %vm6897_vm3, %v3611_v27, %v6590_v13 }
 0x1b9   : > { %v3708_v46 = vsel %vm3682_vm6, %v3675_v8, %v3334_v31  ;;  %v3677_v25 = vsel %vm6908_vm12, %v3644_v3, %v3240_v29 }
 0x1ba   : > { %3499 = vrot.lane.b32.xlu1 %v4366_v12, %s4661_s5  ;;  %v3398_v54 = vpop.permute.xlu0 %3397  ;;  %s4663_s5 = smov [#allocation4]  }
 0x1bb   : > { %v3725_v40 = vsel %vm3715_vm9, %v3692_v10, %v3398_v54  ;;  %v4584_v10 = vld [vmem:[#allocation2 + $0x4c] sm:$0xf]  ;;  %s4593_s6 = sshll.u32 %s4663_s5, 4  ;;  %s4594_s6 = int_to_ptr.vmem [resolvable:$false] %s4593_s6 }
 0x1bc   : > { %s4595_s8 = scalar_lea.vmem %s4594_s6, 8192  ;;  %p4596_p1 = scmp.lt.s32.totalorder %s6800_s23, %s4594_s6 }
 0x1bd   : > { %p4597_p2 = scmp.lt.s32.totalorder %s4595_s8, %s4589_s30 }
 0x1bf   : > { %p4598_p3 = por %p4597_p2, %p4596_p1 }
 0x1c1   : > { %p4599_p4 = pnand %p4598_p3, %p4592_p0 }
 0x1c2   : > { %v3400_v51 = vpop.permute.xlu0 %3399 }
 0x1c3   : > { %v3727_v11 = vsel %vm3715_vm9, %v3694_v37, %v3400_v51 }
 0x1c6   : > { %v3478_v44 = vpop.permute.xlu0 %3477 }
 0x1c7   : > { %v3758_v53 = vsel %vm3748_vm10, %v3725_v40, %v3478_v44  ;;  %v3336_v7 = vpop.permute.xlu1 %3335  ;;  %v4229_v40 = vcombine.low %v4583_v36, %v4584_v10 }
 0x1c8   : > { %4427 = vmatprep.mubr.msk.bf16.mxu0 %vm3811_vm11, %v3758_v53  ;;  %v3710_v12 = vsel %vm3682_vm6, %v3677_v25, %v3336_v7  ;;  %v6678_v53 = vld [vmem:[%s6852_s3] ss:$0 sm:$0xff]  ;;  %v4585_v7 = vld [vmem:[#allocation2 + $0x54] sm:$0xf] }
 0x1c9   : > { %v4230_v24 = vcombine.low %v4585_v7, %v4586_v15 }
 0x1cb   : > { %v3414_v47 = vpop.permute.xlu1 %3413 }
 0x1cc   : > { %v6619_v30 = vpop.permute.xlu0 %2889  ;;  %v3741_v61 = vsel %vm3715_vm9, %v3708_v46, %v3414_v47 }
 0x1cd   : > { %v3522_v6 = vsel %vm3501_vm15, %v4229_v40, %v6619_v30 }
 0x1d0   : > { %v3480_v39 = vpop.permute.xlu0 %3479 }
 0x1d1   : > { %v3760_v42 = vsel %vm3748_vm10, %v3727_v11, %v3480_v39 }
 0x1d2   : > { %4428 = vmatmul.mubr.msk.bf16.gmra.mrb[8].mxu0 %vm3811_vm11, %v3760_v42 }
 0x1d5   : > { %v3416_v60 = vpop.permute.xlu1 %3415 }
 0x1d6   : > { %v3743_v52 = vsel %vm3715_vm9, %v3710_v12, %v3416_v60 }
 0x1d9   : > { %v3494_v63 = vpop.permute.xlu1 %3493  ;;  %v2892_v28 = vpop.permute.xlu0 %2891 }
 0x1da   : > { %v3774_v18 = vsel %vm3748_vm10, %v3741_v61, %v3494_v63  ;;  %v3525_v45 = vsel %vm3501_vm15, %v4230_v24, %v2892_v28  ;;  %v4587_v63 = vld [vmem:[#allocation2 + $0xa8] sm:$0xf]  ;;  %v4588_v28 = vld [vmem:[#allocation2 + $0xac] sm:$0xf] }
 0x1db   : > { %4443 = vmatprep.mubr.msk.bf16.mxu1 %vm3811_vm11, %v3774_v18  ;;  %v4237_v18 = vcombine.low %v4587_v63, %v4588_v28 }
 0x1dd   : > { %v6647_v26 = vpop.permute.xlu1 %2905 }
 0x1de   : > { %v2970_v0 = vpop.permute.xlu0 %2969 }
 0x1df   : > { %v3564_v47 = vsel %vm3550_vm1, %v3522_v6, %v2970_v0 }
 0x1e1   : > { %v3496_v5 = vpop.permute.xlu1 %3495 }
 0x1e2   : > { %v2972_v34 = vpop.permute.xlu0 %2971  ;;  %v3776_v57 = vsel %vm3748_vm10, %v3743_v52, %v3496_v5 }
 0x1e3   : > { %4444 = vmatmul.mubr.msk.bf16.gmra.mrb[8].mxu1 %vm3811_vm11, %v3776_v57  ;;  %v3566_v43 = vsel %vm3550_vm1, %v3525_v45, %v2972_v34  ;;  %v3546_v57 = vsel %vm3501_vm15, %v4237_v18, %v6647_v26 }
 0x1e6   : > { %v3066_v4 = vpop.permute.xlu0 %3065 }
 0x1e7   : > { %v3597_v30 = vsel %vm3583_vm2, %v3564_v47, %v3066_v4  ;;  %v4238_v4 = vcombine.low %v6236_v19, %v6245_v50 }
 0x1e8   : > { %v6656_v41 = vpop.permute.xlu1 %2907 }
 0x1ea   : > { %v3068_v58 = vpop.permute.xlu0 %3067 }
 0x1eb   : > { %v3599_v8 = vsel %vm3583_vm2, %v3566_v43, %v3068_v58 }
 0x1ec   : > { %v6658_v9 = vpop.permute.xlu1 %2985 }
 0x1f0   : > { %v6660_v54 = vpop.permute.xlu1 %2987 }
 0x1f3   : > { %v3146_v13 = vpop.permute.xlu0 %3145 }
 0x1f4   : > { %v6662_v23 = vpop.permute.xlu1 %3081  ;;  %v3630_v60 = vsel %vm6909_vm0, %v3597_v30, %v3146_v13 }
 0x1f8   : > { %v3148_v29 = vpop.permute.xlu0 %3147 }
 0x1f9   : > { %v3632_v20 = vsel %vm6911_vm7, %v3599_v8, %v3148_v29 }
 0x1fc   : > { %v3226_v55 = vpop.permute.xlu0 %3225 }
 0x1fd   : > { %v3663_v35 = vsel %vm6910_vm4, %v3630_v60, %v3226_v55  ;;  %v3580_v55 = vsel %vm3550_vm1, %v3546_v57, %v6658_v9  ;;  %v3549_v9 = vsel %vm3501_vm15, %v4238_v4, %v6656_v41  ;;  %vm6916_vm15 = vmmov %vm6910_vm4 }
 0x1fe   : > { %v3613_v26 = vsel %vm3583_vm2, %v3580_v55, %v6662_v23  ;;  %v3582_v10 = vsel %vm3550_vm1, %v3549_v9, %v6660_v54 }
 0x201   : > { %v3228_v1 = vpop.permute.xlu0 %3227 }
 0x202   : > { %v3665_v27 = vsel %vm6912_vm13, %v3632_v20, %v3228_v1 }
 0x203   : > { %v6664_v51 = vpop.permute.xlu1 %3083 }
 0x204   : > { %v3615_v40 = vsel %vm3583_vm2, %v3582_v10, %v6664_v51 }
 0x205   : > { %v3322_v31 = vpop.permute.xlu0 %3321 }
 0x206   : > { %v3696_v49 = vsel %vm3682_vm6, %v3663_v35, %v3322_v31 }
 0x207   : > { %v6666_v21 = vpop.permute.xlu1 %3161 }
 0x208   : > { %v3646_v50 = vsel %vm6913_vm14, %v3613_v26, %v6666_v21 }
 0x209   : > { %v3324_v14 = vpop.permute.xlu0 %3323 }
 0x20a   : > { %v3698_v0 = vsel %vm3682_vm6, %v3665_v27, %v3324_v14 }
 0x20c   : > { %v6668_v38 = vpop.permute.xlu1 %3163 }
 0x20d   : > { %v3648_v7 = vsel %vm6915_vm8, %v3615_v40, %v6668_v38 }
 0x210   : > { %v6671_v32 = vpop.permute.xlu1 %3241 }
 0x211   : > { %v3679_v36 = vsel %vm6914_vm5, %v3646_v50, %v6671_v32 }
 0x213   : > { %v3402_v44 = vpop.permute.xlu0 %3401 }
 0x214   : > { %v6680_v16 = vpop.permute.xlu1 %3243  ;;  %v3729_v46 = vsel %vm3715_vm9, %v3696_v49, %v3402_v44 }
 0x215   : > { %v4421_v56 = vpop.f32.mrb[0].mxu0  ;;  %v3681_v32 = vsel %vm6916_vm15, %v3648_v7, %v6680_v16 }
 0x216   : > { %v3894_v33 = vadd.f32 %v4421_v56, %v6678_v53  ;;  %v3885_v62 = vpop.f32.mrb[1].mxu0 }
 0x217   : > { %v3886_v59 = vadd.f32 %v6678_v53, %v3885_v62  ;;  %v4422_v37 = vpop.f32.mrb[2].mxu0 }
 0x218   : > { %v3338_v11 = vpop.permute.xlu1 %3337  ;;  %4014 = vst [vmem:[%s6687_s16 + $0x10] sm:$0xff] %v3894_v33  ;;  %v3897_v39 = vadd.f32 %v4422_v37, %v6678_v53  ;;  %v3888_v42 = vpop.f32.mrb[3].mxu0 }
 0x219   : > { %v3404_v48 = vpop.permute.xlu0 %3403  ;;  %4012 = vst [vmem:[%s6687_s16] sm:$0xff] %v3886_v59  ;;  %v3889_v17 = vadd.f32 %v6678_v53, %v3888_v42  ;;  %v3712_v23 = vsel %vm3682_vm6, %v3679_v36, %v3338_v11 }
 0x21a   : > { %4015 = vst [vmem:[%s6687_s16 + $0x18] sm:$0xff] %v3897_v39  ;;  %v3731_v12 = vsel %vm3715_vm9, %v3698_v0, %v3404_v48 }
 0x21b   : > { %4013 = vst [vmem:[%s6687_s16 + $0x8] sm:$0xff] %v3889_v17 }
 0x21c   : > { %v3340_v2 = vpop.permute.xlu1 %3339 }
 0x21d   : > { %v3482_v61 = vpop.permute.xlu0 %3481  ;;  %v3714_v54 = vsel %vm3682_vm6, %v3681_v32, %v3340_v2 }
 0x21e   : > { %v3762_v22 = vsel %vm3748_vm10, %v3729_v46, %v3482_v61 }
 0x21f   : > { %4431 = vmatprep.mubr.msk.bf16.mxu0 %vm3811_vm11, %v3762_v22 }
 0x220   : > { %v3418_v3 = vpop.permute.xlu1 %3417  ;;  %v4437_v25 = vpop.f32.mrb[0].mxu1 }
 0x221   : > { %v3484_v52 = vpop.permute.xlu0 %3483  ;;  %v3958_v5 = vadd.f32 %v4437_v25, %v6678_v53  ;;  %v3949_v34 = vpop.f32.mrb[1].mxu1  ;;  %v3745_v44 = vsel %vm3715_vm9, %v3712_v23, %v3418_v3 }
 0x222   : > { %v3764_v58 = vsel %vm3748_vm10, %v3731_v12, %v3484_v52  ;;  %v3950_v13 = vadd.f32 %v6678_v53, %v3949_v34  ;;  %v4438_v29 = vpop.f32.mrb[2].mxu1 }
 0x223   : > { %4432 = vmatmul.mubr.msk.bf16.gmra.mrb[12].mxu0 %vm3811_vm11, %v3764_v58  ;;  %4030 = vst [vmem:[%s6687_s16 + $0x90] sm:$0xff] %v3958_v5  ;;  %v3961_v1 = vadd.f32 %v4438_v29, %v6678_v53  ;;  %v3952_v31 = vpop.f32.mrb[3].mxu1 }
 0x224   : > { %v3420_v14 = vpop.permute.xlu1 %3419  ;;  %4028 = vst [vmem:[%s6687_s16 + $0x80] sm:$0xff] %v3950_v13  ;;  %v3953_v19 = vadd.f32 %v6678_v53, %v3952_v31 }
 0x225   : > { %4031 = vst [vmem:[%s6687_s16 + $0x98] sm:$0xff] %v3961_v1  ;;  %v3747_v51 = vsel %vm3715_vm9, %v3714_v54, %v3420_v14 }
 0x226   : > { %4029 = vst [vmem:[%s6687_s16 + $0x88] sm:$0xff] %v3953_v19 }
 0x228   : > { %v3498_v21 = vpop.permute.xlu1 %3497 }
 0x229   : > { %v3778_v41 = vsel %vm3748_vm10, %v3745_v44, %v3498_v21 }
 0x22a   : > { %4447 = vmatprep.mubr.msk.bf16.mxu1 %vm3811_vm11, %v3778_v41 }
 0x22c   : > { %v3500_v15 = vpop.permute.xlu1 %3499 }
 0x22d   : > { %v3780_v24 = vsel %vm3748_vm10, %v3747_v51, %v3500_v15 }
 0x22e   : > { %4448 = vmatmul.mubr.msk.bf16.gmra.mrb[12].mxu1 %vm3811_vm11, %v3780_v24 }
 0x26e   : > { %v4425_v38 = vpop.f32.mrb[4].mxu0 }
 0x26f   : > { %v3910_v56 = vadd.f32 %v4425_v38, %v6678_v53  ;;  %v3901_v33 = vpop.f32.mrb[5].mxu0 }
 0x270   : > { %v3902_v16 = vadd.f32 %v6678_v53, %v3901_v33  ;;  %v4426_v62 = vpop.f32.mrb[6].mxu0 }
 0x271   : > { %4018 = vst [vmem:[%s6687_s16 + $0x30] sm:$0xff] %v3910_v56  ;;  %v3913_v6 = vadd.f32 %v4426_v62, %v6678_v53  ;;  %v3904_v59 = vpop.f32.mrb[7].mxu0 }
 0x272   : > { %4016 = vst [vmem:[%s6687_s16 + $0x20] sm:$0xff] %v3902_v16  ;;  %v3905_v37 = vadd.f32 %v6678_v53, %v3904_v59 }
 0x273   : > { %4019 = vst [vmem:[%s6687_s16 + $0x38] sm:$0xff] %v3913_v6 }
 0x274   : > { %4017 = vst [vmem:[%s6687_s16 + $0x28] sm:$0xff] %v3905_v37 }
 0x278   : > { %v4441_v47 = vpop.f32.mrb[4].mxu1 }
 0x279   : > { %v3974_v11 = vadd.f32 %v4441_v47, %v6678_v53  ;;  %v3965_v39 = vpop.f32.mrb[5].mxu1 }
 0x27a   : > { %v3966_v42 = vadd.f32 %v6678_v53, %v3965_v39  ;;  %v4442_v45 = vpop.f32.mrb[6].mxu1 }
 0x27b   : > { %4034 = vst [vmem:[%s6687_s16 + $0xb0] sm:$0xff] %v3974_v11  ;;  %v3977_v30 = vadd.f32 %v4442_v45, %v6678_v53  ;;  %v3968_v48 = vpop.f32.mrb[7].mxu1 }
 0x27c   : > { %4032 = vst [vmem:[%s6687_s16 + $0xa0] sm:$0xff] %v3966_v42  ;;  %v3969_v17 = vadd.f32 %v6678_v53, %v3968_v48 }
 0x27d   : > { %4035 = vst [vmem:[%s6687_s16 + $0xb8] sm:$0xff] %v3977_v30 }
 0x27e   : > { %4033 = vst [vmem:[%s6687_s16 + $0xa8] sm:$0xff] %v3969_v17 }
 0x2a5   : > { %v4429_v60 = vpop.f32.mrb[8].mxu0 }
 0x2a6   : > { %v3926_v35 = vadd.f32 %v4429_v60, %v6678_v53  ;;  %v3917_v43 = vpop.f32.mrb[9].mxu0 }
 0x2a7   : > { %v3918_v49 = vadd.f32 %v6678_v53, %v3917_v43  ;;  %v4430_v2 = vpop.f32.mrb[10].mxu0 }
 0x2a8   : > { %4022 = vst [vmem:[%s6687_s16 + $0x50] sm:$0xff] %v3926_v35  ;;  %v3929_v8 = vadd.f32 %v4430_v2, %v6678_v53  ;;  %v3920_v46 = vpop.f32.mrb[11].mxu0 }
 0x2a9   : > { %4020 = vst [vmem:[%s6687_s16 + $0x40] sm:$0xff] %v3918_v49  ;;  %v3921_v61 = vadd.f32 %v6678_v53, %v3920_v46 }
 0x2aa   : > { %4023 = vst [vmem:[%s6687_s16 + $0x58] sm:$0xff] %v3929_v8 }
 0x2ab   : > { %4021 = vst [vmem:[%s6687_s16 + $0x48] sm:$0xff] %v3921_v61 }
 0x2b6   : > { %v4445_v63 = vpop.f32.mrb[8].mxu1 }
 0x2b7   : > { %v3990_v28 = vadd.f32 %v4445_v63, %v6678_v53  ;;  %v3981_v18 = vpop.f32.mrb[9].mxu1 }
 0x2b8   : > { %v3982_v20 = vadd.f32 %v6678_v53, %v3981_v18  ;;  %v4446_v22 = vpop.f32.mrb[10].mxu1 }
 0x2b9   : > { %4038 = vst [vmem:[%s6687_s16 + $0xd0] sm:$0xff] %v3990_v28  ;;  %v3993_v27 = vadd.f32 %v4446_v22, %v6678_v53  ;;  %v3984_v0 = vpop.f32.mrb[11].mxu1 }
 0x2ba   : > { %4036 = vst [vmem:[%s6687_s16 + $0xc0] sm:$0xff] %v3982_v20  ;;  %v3985_v3 = vadd.f32 %v6678_v53, %v3984_v0 }
 0x2bb   : > { %4039 = vst [vmem:[%s6687_s16 + $0xd8] sm:$0xff] %v3993_v27 }
 0x2bc   : > { %4037 = vst [vmem:[%s6687_s16 + $0xc8] sm:$0xff] %v3985_v3 }
 0x2f6   : > { %v4433_v25 = vpop.f32.mrb[12].mxu0 }
 0x2f7   : > { %v3942_v12 = vadd.f32 %v4433_v25, %v6678_v53  ;;  %v3933_v52 = vpop.f32.mrb[13].mxu0 }
 0x2f8   : > { %v3934_v5 = vadd.f32 %v6678_v53, %v3933_v52  ;;  %v4434_v34 = vpop.f32.mrb[14].mxu0 }
 0x2f9   : > { %4026 = vst [vmem:[%s6687_s16 + $0x70] sm:$0xff] %v3942_v12  ;;  %v3945_v57 = vadd.f32 %v4434_v34, %v6678_v53  ;;  %v3936_v4 = vpop.f32.mrb[15].mxu0 }
 0x2fa   : > { %4024 = vst [vmem:[%s6687_s16 + $0x60] sm:$0xff] %v3934_v5  ;;  %v3937_v58 = vadd.f32 %v6678_v53, %v3936_v4 }
 0x2fb   : > { %4027 = vst [vmem:[%s6687_s16 + $0x78] sm:$0xff] %v3945_v57 }
 0x2fc   : > { %4025 = vst [vmem:[%s6687_s16 + $0x68] sm:$0xff] %v3937_v58 }
 0x301   : > { %v4449_v13 = vpop.f32.mrb[12].mxu1 }
 0x302   : > { %v4006_v29 = vadd.f32 %v4449_v13, %v6678_v53  ;;  %v3997_v55 = vpop.f32.mrb[13].mxu1 }
 0x303   : > { %v3998_v1 = vadd.f32 %v6678_v53, %v3997_v55  ;;  %v4450_v31 = vpop.f32.mrb[14].mxu1 }
 0x304   : > { %4042 = vst [vmem:[%s6687_s16 + $0xf0] sm:$0xff] %v4006_v29  ;;  %v4009_v26 = vadd.f32 %v4450_v31, %v6678_v53  ;;  %v4000_v14 = vpop.f32.mrb[15].mxu1 }
 0x305   : > { %4040 = vst [vmem:[%s6687_s16 + $0xe0] sm:$0xff] %v3998_v1  ;;  %v4001_v19 = vadd.f32 %v6678_v53, %v4000_v14 }
 0x306   : > { %4043 = vst [vmem:[%s6687_s16 + $0xf8] sm:$0xff] %v4009_v26 }
 0x307   : > { %4041 = vst [vmem:[%s6687_s16 + $0xe8] sm:$0xff] %v4001_v19 }
 0x308   : > { %4602 = shalt.err (!%p4599_p4)
}
 0x309   : > { %s4603_s9 = scalar_lea.hbm %s6798_s29, 4096  ;;  %s4607_s12 = scalar_lea.hbm %s6853_s4, 8192 }
 0x30a   : > { %p4604_p7 = scmp.ne.s32.totalorder %s6798_s29, %s4603_s9  ;;  %p4608_p10 = scmp.lt.u32.totalorder %s6798_s29, %s6853_s4 }
 0x30b   : > { %p4609_p11 = scmp.lt.u32.totalorder %s4607_s12, %s4603_s9  ;;  %p4611_p13 = scmp.lt.u32.totalorder %s4603_s9, %s6798_s29 }
 0x30c   : > { %p4605_p8 = pnand %p4604_p7, %p4732_p5 }
 0x30d   : > { %p4610_p12 = por %p4609_p11, %p4608_p10 }
 0x30e   : > { %p4606_p9 = pneg %p4605_p8 }
 0x30f   : > { %p4612_p0 = por %p4611_p13, %p4610_p12 }
 0x311   : > { %p4613_p1 = pnand %p4612_p0, %p4606_p9 }
 0x313   : > { %4616 = shalt.err (!%p4613_p1)
}
 0x314   : > { %s4664_s14 = smov 128   ;;  %s4665_s15 = smov 8  }
 0x315   : > { %4457 = dma.vmem_to_hbm [thread:$0]  (%p4732_p5), %s6800_s23, 4096, %s6798_s29, %s6808_s0, %s4664_s14, %s4664_s14, %s4665_s15  }
 0x316 PF: > { %p4463_p2 = scmp.ge.s32.totalorder %s4651_s20, 2  ;;  %s4073_s16 = sand.u32 1, %s4639_s17  }
 0x317   : > { %s4074_s21 = scalar_lea.sflag [#allocation5], %s4073_s16 }
 0x318   : > { %p4460_p3 = pnand %p4463_p2, %p4736_p6 }
 0x31a   : > { %4634 = dma.done.wait (!%p4460_p3), %s4074_s21, 4096  }
 0x31b   : > { %4636 = vsyncadd (!%p4460_p3), %s4074_s21, 4294963200  ;;  %p15_p4 = scmp.ge.s32.totalorder %s4719_s22, 4   ;;  %s6917_s17 = smov %s4643_s18 }
 0x31c   : > { %s6918_s18 = smov %s4647_s19  ;;  %s6919_s19 = smov %s4730_s25 }
 0x31d   : > { %s6920_s20 = smov %s4719_s22  ;;  %17 = sbr.rel (!%p15_p4) target bundleno = 5 (0x5), region = 73 }
 0x324   :  { %4079 = vsyncpa [#allocation5], 1 }
 0x325   :  { %4081 = vsyncpa [#allocation5 + $0x1], 1 }

</bundles_post_ra>
